<compile_context>
chip_gen: v7x
topology: tpu7x:2x2x1
jax: 0.10.0
libtpu: 0.0.40
codegen_flags: <defaults>
</compile_context>

<pallas_src>
import functools

import jax
import jax.numpy as jnp
from jax import lax
from jax.experimental import pallas as pl
from jax.experimental.pallas import tpu as pltpu

BN_EPS = 1e-5


def _score_kernel(t_ref, bias_ref, e_ref, out_ref):
    """One entity tile: sigmoid([ta_s|tb_s] @ [Ea|Eb]_tile^T + bias)."""
    # Contract on the 2D axis of both operands (transposed-RHS contraction,
    # no materialized XLU transpose per tile).
    dn = (((1,), (1,)), ((), ()))
    t = t_ref[...].astype(e_ref.dtype)       # tiny; cast on-chip, table stays narrow in HBM
    score = lax.dot_general(t, e_ref[...], dn, preferred_element_type=jnp.float32)
    score = score + bias_ref[...]            # (B, 1) broadcasts over tile columns
    out_ref[...] = jax.nn.sigmoid(score).astype(out_ref.dtype)


def prepare_entity_table(E_a, E_b, *, tn=4096, dtype=jnp.bfloat16):
    """Model-load-time prep (OUTSIDE jit, run once): build the streaming table.

    Concatenates real|imag into (N, 2D), casts to the streaming dtype, and pads
    the entity axis up to a multiple of `tn`, so the jitted forward generates
    no per-call cast/pad/concat HBM traffic.
    """
    assert tn % 128 == 0, "entity tile must be a multiple of 128 (lane-dense output)"
    N = E_a.shape[0]
    e = jnp.concatenate([E_a, E_b], axis=1).astype(dtype)       # (N, 2D)
    n_pad = pl.cdiv(N, tn) * tn
    if n_pad != N:
        e = jnp.pad(e, ((0, n_pad - N), (0, 0)))
    return e


def blaschke_forward(h_idx, r_idx, params, e_table, *, tn=4096,
                     out_dtype=jnp.float32, entity_buffers=None):
    """Returns sigmoid scores of shape (B, num_entities).

    `e_table` must come from `prepare_entity_table(E_a, E_b, tn=tn, ...)`.
    """
    E_a, E_b, R_a, R_b, g_a, be_a, g_b, be_b = params
    N, D = E_a.shape
    n_pad, two_d = e_table.shape
    assert two_d == 2 * D and n_pad % tn == 0 and n_pad >= N, \
        "e_table must be built by prepare_entity_table with the same tn"
    n_blocks = n_pad // tn

    h_idx = h_idx.reshape(-1)
    r_idx = r_idx.reshape(-1)
    B = h_idx.shape[0]

    # ---- query-side glue (O(B*D), once per call, not per entity tile) --------
    h_a, h_b = E_a[h_idx], E_b[h_idx]
    r_a, r_b = R_a[r_idx], R_b[r_idx]

    # BlaschkeMult: t = (h - r) / (h * conj(r) - 1)
    top_a, top_b = h_a - r_a, h_b - r_b
    bot_a = h_a * r_a + h_b * r_b - 1.0
    bot_b = h_b * r_a - h_a * r_b
    inv_den = 1.0 / (bot_a * bot_a + bot_b * bot_b)
    t_a = (top_a * bot_a + top_b * bot_b) * inv_den
    t_b = (top_b * bot_a - top_a * bot_b) * inv_den

    # Eval-mode ComplexBatchNorm1d (running_mean=0, running_var=1) folded onto t:
    #   t @ (E*s + be).T  ==  (t*s) @ E.T  +  sum(t*be)
    # Query stays f32 at the kernel boundary; cast to bf16 happens in-kernel.
    inv_std = 1.0 / jnp.sqrt(1.0 + BN_EPS)
    t_cat = jnp.concatenate([t_a * (g_a * inv_std), t_b * (g_b * inv_std)],
                            axis=1).astype(jnp.float32)              # (B, 2D)
    bias = jnp.sum(t_a * be_a + t_b * be_b, axis=1, keepdims=True)    # (B, 1)
    bias = bias.astype(jnp.float32)

    # ---- VMEM budget (with headroom); safe on v5e/v6e/v7x ---------------------
    e_bufs = entity_buffers if entity_buffers is not None else 2
    it_e = jnp.dtype(e_table.dtype).itemsize
    it_o = jnp.dtype(out_dtype).itemsize
    vmem_est = (e_bufs * tn * two_d * it_e            # entity tiles (multi-buffered)
                + 2 * (B * two_d * 4 + 512)           # broadcast query block + bias
                + 2 * B * tn * it_o)                  # output tile (double-buffered)
    vmem_limit = int(min(max(vmem_est * 3 // 2, 16 << 20), 48 << 20))

    e_spec_kw = {}
    if entity_buffers is not None and entity_buffers != 2:
        # Optional deeper pipelining of the entity stream; sweep and keep only
        # if the profile shows DMA gaps (compute per step is near zero).
        e_spec_kw["pipeline_mode"] = pl.Buffered(entity_buffers)

    bcast = lambda j: (0, 0)
    out = pl.pallas_call(
        _score_kernel,
        out_shape=jax.ShapeDtypeStruct((B, n_pad), out_dtype),
        grid_spec=pltpu.PrefetchScalarGridSpec(
            num_scalar_prefetch=0,
            grid=(n_blocks,),
            in_specs=[
                pl.BlockSpec((B, two_d), bcast),                  # [t_a*s | t_b*s]
                pl.BlockSpec((B, 1), bcast),                      # folded BN bias
                pl.BlockSpec((tn, two_d), lambda j: (j, 0),       # [E_a | E_b] tile
                             **e_spec_kw),
            ],
            out_specs=pl.BlockSpec((B, tn), lambda j: (0, j)),
        ),
        # "parallel": megacore-shard the entity axis.
        # TODO(synk): on v7x verify in the profile that both TensorCores each
        #             stream half the table; if not, switch to pltpu.CORE_PARALLEL.
        compiler_params=pltpu.CompilerParams(
            dimension_semantics=("parallel",),
            vmem_limit_bytes=vmem_limit),
    )(t_cat, bias, e_table)

    return out[:, :N] if n_pad != N else out


def reference_forward(h_idx, r_idx, params):
    """Pure-JAX f32 reference matching the PyTorch module (inference)."""
    E_a, E_b, R_a, R_b, g_a, be_a, g_b, be_b = params
    h_idx = h_idx.reshape(-1)
    r_idx = r_idx.reshape(-1)
    ha, hb = E_a[h_idx], E_b[h_idx]
    ra, rb = R_a[r_idx], R_b[r_idx]
    top_a, top_b = ha - ra, hb - rb
    bot_a = ha * ra + hb * rb - 1.0
    bot_b = hb * ra - ha * rb
    den = bot_a ** 2 + bot_b ** 2
    t_a = (top_a * bot_a + top_b * bot_b) / den
    t_b = (top_b * bot_a - top_a * bot_b) / den
    inv_std = 1.0 / jnp.sqrt(1.0 + BN_EPS)
    ea = E_a * inv_std * g_a + be_a
    eb = E_b * inv_std * g_b + be_b
    return jax.nn.sigmoid(t_a @ ea.T + t_b @ eb.T)


if __name__ == "__main__":
    # Small shapes consistent with the module's forward.  num_entities is NOT a
    # multiple of tn so tail padding/slicing is exercised; 3 grid steps at TN.
    num_entities = 9000
    num_relations = 32
    embedding_dim = 128
    batch = 8
    TN = 4096                 # sweep {2048, 4096, 8192}; prefer 8192+ on v7x

    key = jax.random.PRNGKey(0)
    k_ea, k_eb, k_ra, k_rb, k_h, k_r = jax.random.split(key, 6)

    # ComplexEmbedding: two real tables per embedding.
    E_a = jax.random.normal(k_ea, (num_entities, embedding_dim), jnp.float32) * 0.1
    E_b = jax.random.normal(k_eb, (num_entities, embedding_dim), jnp.float32) * 0.1
    R_a = jax.random.normal(k_ra, (num_relations, embedding_dim), jnp.float32) * 0.1
    R_b = jax.random.normal(k_rb, (num_relations, embedding_dim), jnp.float32) * 0.1
    # ComplexBatchNorm1d affine params: non-trivial values to exercise the BN fold.
    g_a = 1.0 + 0.05 * jax.random.normal(jax.random.PRNGKey(1), (1, embedding_dim), jnp.float32)
    be_a = 0.05 * jax.random.normal(jax.random.PRNGKey(2), (1, embedding_dim), jnp.float32)
    g_b = 1.0 + 0.05 * jax.random.normal(jax.random.PRNGKey(3), (1, embedding_dim), jnp.float32)
    be_b = 0.05 * jax.random.normal(jax.random.PRNGKey(4), (1, embedding_dim), jnp.float32)
    params = (E_a, E_b, R_a, R_b, g_a, be_a, g_b, be_b)

    h_idx = jax.random.randint(k_h, (batch,), 0, num_entities, jnp.int32)
    r_idx = jax.random.randint(k_r, (batch,), 0, num_relations, jnp.int32)

    ref = reference_forward(h_idx, r_idx, params)

    # Model-load-time table prep (once, OUTSIDE jit) — the key perf fix.
    e_table_f32 = jax.block_until_ready(
        prepare_entity_table(E_a, E_b, tn=TN, dtype=jnp.float32))
    e_table_bf16 = jax.block_until_ready(
        prepare_entity_table(E_a, E_b, tn=TN, dtype=jnp.bfloat16))

    fwd = jax.jit(functools.partial(blaschke_forward, tn=TN))

    # Full-precision streaming path (tight check).
    out_f32 = jax.block_until_ready(fwd(h_idx, r_idx, params, e_table_f32))
    assert out_f32.shape == (batch, num_entities)
    assert jnp.allclose(out_f32, ref, atol=1e-5, rtol=1e-5), "f32 mismatch vs reference"

    # bf16-streamed path (default deployment path; looser tolerance).
    out_bf16 = jax.block_until_ready(fwd(h_idx, r_idx, params, e_table_bf16))
    assert out_bf16.shape == (batch, num_entities)
    assert jnp.allclose(out_bf16, ref, atol=1e-2, rtol=1e-2), "bf16 mismatch vs reference"

    print("KERNEL_OK")
</pallas_src>

<mosaic_0001>
module attributes {stable_mosaic.version = 11 : i64} {
  func.func @_score_kernel(%arg0: i32, %arg1: memref<8x256xf32, #tpu.memory_space<vmem>>, %arg2: memref<8x1xf32, #tpu.memory_space<vmem>>, %arg3: memref<4096x256xf32, #tpu.memory_space<vmem>>, %arg4: memref<8x4096xf32, #tpu.memory_space<vmem>>) attributes {dimension_semantics = [#tpu.dimension_semantics<parallel>], iteration_bounds = array<i64: 3>, scalar_prefetch = 0 : i64, scratch_operands = 0 : i64, tpu.core_type = #tpu.core_type<tc>, window_params = [{pipeline_mode = #tpu.pipeline_mode<synchronous>, transform_indices = @transform_0, window_bounds = array<i64: 8, 256>}, {pipeline_mode = #tpu.pipeline_mode<synchronous>, transform_indices = @transform_1, window_bounds = array<i64: 8, 1>}, {transform_indices = @transform_2, window_bounds = array<i64: 4096, 256>}, {transform_indices = @transform_3, window_bounds = array<i64: 8, 4096>}]} {
    %c0 = arith.constant 0 : index
    %c0_0 = arith.constant 0 : index
    %0 = vector.load %arg1[%c0, %c0_0] : memref<8x256xf32, #tpu.memory_space<vmem>>, vector<8x256xf32>
    %c0_1 = arith.constant 0 : index
    %c0_2 = arith.constant 0 : index
    %1 = vector.load %arg3[%c0_1, %c0_2] : memref<4096x256xf32, #tpu.memory_space<vmem>>, vector<4096x256xf32>
    %cst = arith.constant dense<0.000000e+00> : vector<8x4096xf32>
    %2 = tpu.matmul %0, %1, %cst {dimension_numbers = #tpu.dot_dimension_numbers<[1], [1], [0], [0], [0, 0, 1, 0], [], []>} : vector<8x256xf32>, vector<4096x256xf32>, vector<8x4096xf32> -> vector<8x4096xf32>
    %c0_3 = arith.constant 0 : index
    %c0_4 = arith.constant 0 : index
    %3 = vector.load %arg2[%c0_3, %c0_4] : memref<8x1xf32, #tpu.memory_space<vmem>>, vector<8x1xf32>
    %4 = vector.broadcast %3 : vector<8x1xf32> to vector<8x4096xf32>
    %5 = arith.addf %2, %4 : vector<8x4096xf32>
    %6 = arith.negf %5 : vector<8x4096xf32>
    %7 = math.exp %6 : vector<8x4096xf32>
    %cst_5 = arith.constant 1.000000e+00 : f32
    %8 = vector.broadcast %cst_5 : f32 to vector<8x4096xf32>
    %9 = arith.addf %8, %7 : vector<8x4096xf32>
    %10 = arith.divf %8, %9 : vector<8x4096xf32>
    %c0_6 = arith.constant 0 : index
    %c0_7 = arith.constant 0 : index
    %11 = vector.load %arg4[%c0_6, %c0_7] : memref<8x4096xf32, #tpu.memory_space<vmem>>, vector<8x4096xf32>
    tpu.vector_store %arg4[%c0_6, %c0_7], %10 {strides = array<i32>} : memref<8x4096xf32, #tpu.memory_space<vmem>>, vector<8x4096xf32>,
    return
  }
  func.func @transform_0(%arg0: i32) -> (i32, i32) {
    %c0_i32 = arith.constant 0 : i32
    %c0_i32_0 = arith.constant 0 : i32
    %c0_i32_1 = arith.constant 0 : i32
    return %c0_i32, %c0_i32_0 : i32, i32
  }
  func.func @transform_1(%arg0: i32) -> (i32, i32) {
    %c0_i32 = arith.constant 0 : i32
    %c0_i32_0 = arith.constant 0 : i32
    %c0_i32_1 = arith.constant 0 : i32
    return %c0_i32, %c0_i32_0 : i32, i32
  }
  func.func @transform_2(%arg0: i32) -> (i32, i32) {
    %c0_i32 = arith.constant 0 : i32
    %c0_i32_0 = arith.constant 0 : i32
    return %arg0, %c0_i32 : i32, i32
  }
  func.func @transform_3(%arg0: i32) -> (i32, i32) {
    %c0_i32 = arith.constant 0 : i32
    %c0_i32_0 = arith.constant 0 : i32
    return %c0_i32, %arg0 : i32, i32
  }
}

</mosaic_0001>

<bundles_post_ra>
// kernel: blaschke_forward.1
= control target key start
LH: loop header
LB: loop body
LE: loop exit
PB: predicated region body
PF: predicated region fallthrough
CT: control target
= control target key end

     0   :  { %8 = vsyncpa [#allocation3], 0  ;;  %s5265_s0 = inlined_call_operand.vmem [shape: f32[8,256], index: 0, kind: input, shape index: {}]   ;;  %s5266_s1 = inlined_call_operand.vmem [shape: f32[8,1], index: 1, kind: input, shape index: {}]   ;;  %s5267_s2 = inlined_call_operand.hbm [shape: f32[12288,256], index: 2, kind: input, shape index: {}]   ;;  %s5268_s3 = inlined_call_operand.vmem [shape: f32[8,12288], index: 3, kind: output, shape index: {}]  }
   0x1   :  { %10 = vsyncpa [#allocation3 + $0x1], 0  ;;  %s3992_s12 = smov 0   ;;  %s3994_s13 = smov 0  }
   0x2   :  { %s3996_s14 = smov 0   ;;  %s3998_s15 = smov 0  }
   0x3 LB: > { %s2653_s16 = sadd.s32 4294967295, %s3966_s15   ;;  %s4012_s17 = sadd.s32 1, %s3966_s15   ;;  %s3966_s15 = sphi %s3998_s15, %s5275_s15   ;;  %s3962_s14 = sphi %s3996_s14, %s5274_s14   ;;  %s3958_s13 = sphi %s3994_s13, %s5273_s13   ;;  %s3954_s12 = sphi %s3992_s12, %s5272_s12  }
   0x4   : > { %s62_s18 = ssub.s32 %s3966_s15, %s4012_s17  ;;  %s65_s19 = sadd.s32 1, %s3962_s14 }
   0x5   : > { %p63_p0 = scmp.eq.s32.totalorder %s62_s18, 0  ;;  %p72_p1 = scmp.ne.s32.totalorder %s3962_s14, %s3958_s13 }
   0x6   : > { %p73_p2 = scmp.eq.s32.totalorder %s3966_s15, 0  ;;  %p78_p3 = scmp.ne.s32.totalorder %s3958_s13, %s3954_s12 }
   0x7   : > { %s4022_s20 = scalar_select %p63_p0, %s3962_s14, %s65_s19  }
   0x8   : > { %p74_p4 = por %p73_p2, %p72_p1  ;;  %p79_p5 = scmp.eq.s32.totalorder %s2653_s16, 0 }
   0x9   : > { %p3731_p6 = scmp.lt.s32.totalorder %s3966_s15, 3  ;;  %s134_s22 = sand.u32 1, %s3962_s14  }
   0xa   : > { %p4027_p7 = por %p79_p5, %p78_p3  ;;  %s2657_s23 = sshll.u32 %s134_s22, 13 }
   0xb   : > { %s2700_s24 = sshll.u32 %s3966_s15, 17  ;;  %s138_s28 = scalar_lea.vmem [#allocation2], %s2657_s23 }
   0xc   : > { %s4036_s27 = scalar_lea.hbm %s5267_s2, %s2700_s24  ;;  %s146_s29 = sshll.u32 %s138_s28, 4  ;;  %s4038_s29 = int_to_ptr.vmem [resolvable:$true] %s146_s29 }
   0xd   : > { %p4040_p8 = pnand %p3731_p6, %p74_p4  ;;  %s4045_s4 = scalar_lea.sflag [#allocation3], %s134_s22 }
   0xe   : > { %s3902_s5 = scalar_lea.hbm %s4036_s27, 131072  ;;  %s3907_s8 = scalar_lea.hbm %s5267_s2, 393216 }
   0xf   : > { %p3903_p10 = scmp.ne.s32.totalorder %s4036_s27, %s3902_s5  ;;  %p3904_p11 = pneg %p4040_p8 }
  0x10   : > { %p3908_p0 = scmp.lt.u32.totalorder %s4036_s27, %s5267_s2  ;;  %p3909_p1 = scmp.lt.u32.totalorder %s3907_s8, %s3902_s5 }
  0x11   : > { %p3905_p12 = pnand %p3904_p11, %p3903_p10  ;;  %p3911_p3 = scmp.lt.u32.totalorder %s3902_s5, %s4036_s27 }
  0x12   : > { %p3910_p2 = por %p3909_p1, %p3908_p0 }
  0x13   : > { %p3906_p13 = pneg %p3905_p12 }
  0x14   : > { %p3912_p4 = por %p3911_p3, %p3910_p2 }
  0x16   : > { %p3913_p5 = pnand %p3912_p4, %p3906_p13 }
  0x18   : > { %3916 = shalt.err (!%p3913_p5)
}
  0x19   : > { %s3917_s11 = scalar_lea.vmem %s4038_s29, 131072  ;;  %s3968_s12 = smov [#allocation2]  }
  0x1a   : > { %p3918_p6 = scmp.ne.s32.totalorder %s4038_s29, %s3917_s11  ;;  %s3922_s18 = sshll.u32 %s3968_s12, 4  ;;  %s3923_s18 = int_to_ptr.vmem [resolvable:$false] %s3922_s18 }
  0x1b   : > { %s3924_s19 = scalar_lea.vmem %s3923_s18, 262144  ;;  %p3925_p9 = scmp.lt.s32.totalorder %s4038_s29, %s3923_s18 }
  0x1c   : > { %p3920_p10 = pnand %p3918_p6, %p3904_p11  ;;  %p3926_p0 = scmp.lt.s32.totalorder %s3924_s19, %s3917_s11 }
  0x1e   : > { %p3921_p12 = pneg %p3920_p10  ;;  %p3927_p1 = por %p3926_p0, %p3925_p9 }
  0x20   : > { %p3928_p2 = pnand %p3927_p1, %p3921_p12 }
  0x22   : > { %3931 = shalt.err (!%p3928_p2)
}
  0x23   : > { %s3969_s22 = smov 256   ;;  %s3970_s23 = smov 16  }
  0x24   : > { %3730 = dma.hbm_to_vmem [thread:$0]  (!%p4040_p8), %s4036_s27, 131072, %s4038_s29, %s4045_s4, %s3969_s22, %s3969_s22, %s3970_s23  }
  0x25   : > { %p154_p11 = scmp.lt.s32.totalorder %s3966_s15, 4  ;;  %p5271_p13 = scmp.ge.s32.totalorder %s3966_s15, 1 }
  0x27   : > { %p155_p3 = pnand %p5271_p13, %p154_p11 }
  0x28   : > { %s160_s24 = sand.u32 (!%p155_p3), 1, %s3958_s13  }
  0x29   : > { %158 = sbr.rel (%p155_p3) target bundleno = 1321 (0x529), region = 32  ;;  %s2662_s25 = sshll.u32 (!%p155_p3), %s160_s24, 13 }
  0x2a   : > { %s161_s26 = scalar_lea.sflag (!%p155_p3), [#allocation3], %s160_s24  ;;  %s4077_s28 = scalar_lea.vmem (!%p155_p3), [#allocation2], %s2662_s25 }
  0x30   : > { %3949 = dma.done.wait (%p4027_p7), %s161_s26, 131072  }
  0x31   : > { %3951 = vsyncadd (%p4027_p7), %s161_s26, 4294836224  ;;  %v197_v0 = vld [vmem:[%s4077_s28 + $0x8] sm:$0xff]  ;;  %v199_v1 = vld [vmem:[%s4077_s28 + $0x18] sm:$0xff]  ;;  %s2663_s6 = sshll.u32 %s2653_s16, 5 }
  0x32   : > { %v261_v2 = vld [vmem:[%s4077_s28 + $0x208] sm:$0xff]  ;;  %v2701_v3 = vpack.c.bf16 %v199_v1, %v197_v0  ;;  %v263_v4 = vld [vmem:[%s4077_s28 + $0x218] sm:$0xff]  ;;  %v196_v5 = vld [vmem:[%s4077_s28] sm:$0xff]  ;;  %p189_p7 = scmp.lt.s32.totalorder %s2663_s6, 95 }
  0x33   : > { %v198_v6 = vld [vmem:[%s4077_s28 + $0x10] sm:$0xff]  ;;  %v2765_v7 = vpack.c.bf16 %v263_v4, %v261_v2  ;;  %v260_v9 = vld [vmem:[%s4077_s28 + $0x200] sm:$0xff]  ;;  %v201_v11 = vld [vmem:[%s4077_s28 + $0x28] sm:$0xff] }
  0x34   : > { %v2703_v8 = vpack.c.bf16 %v198_v6, %v196_v5  ;;  %v262_v10 = vld [vmem:[%s4077_s28 + $0x210] sm:$0xff]  ;;  %2702 = vmatprep.subr.bf16.mxu0 %v2701_v3  ;;  %v203_v13 = vld [vmem:[%s4077_s28 + $0x38] sm:$0xff]  ;;  %v265_v14 = vld [vmem:[%s4077_s28 + $0x228] sm:$0xff]  ;;  %s5277_s6 = smov (!%p189_p7, %s2663_s6), 95 }
  0x35   : > { %v2767_v12 = vpack.c.bf16 %v262_v10, %v260_v9  ;;  %v267_v15 = vld [vmem:[%s4077_s28 + $0x238] sm:$0xff]  ;;  %2766 = vmatprep.subr.bf16.mxu1 %v2765_v7  ;;  %v2705_v16 = vpack.c.bf16 %v203_v13, %v201_v11  ;;  %v200_v18 = vld [vmem:[%s4077_s28 + $0x20] sm:$0xff]  ;;  %v202_v19 = vld [vmem:[%s4077_s28 + $0x30] sm:$0xff]  ;;  %s2664_s15 = sshll.u32 %s5277_s6, 3 }
  0x36   : > { %2704 = vmatpush1.bf16.xpose.msra.mxu0 %v2703_v8  ;;  %v2769_v17 = vpack.c.bf16 %v267_v15, %v265_v14  ;;  %v264_v20 = vld [vmem:[%s4077_s28 + $0x220] sm:$0xff]  ;;  %v266_v21 = vld [vmem:[%s4077_s28 + $0x230] sm:$0xff]  ;;  %v205_v22 = vld [vmem:[%s4077_s28 + $0x48] sm:$0xff]  ;;  %v2707_v26 = vpack.c.bf16 %v202_v19, %v200_v18  ;;  %s4498_s8 = scalar_lea.vmem %s5268_s3, %s2664_s15 }
  0x37   : > { %2768 = vmatpush1.bf16.xpose.msra.mxu1 %v2767_v12  ;;  %2706 = vmatprep.subr.bf16.mxu0 %v2705_v16  ;;  %v207_v23 = vld [vmem:[%s4077_s28 + $0x58] sm:$0xff]  ;;  %v269_v24 = vld [vmem:[%s4077_s28 + $0x248] sm:$0xff]  ;;  %v2771_v27 = vpack.c.bf16 %v266_v21, %v264_v20  ;;  %v204_v30 = vld [vmem:[%s4077_s28 + $0x40] sm:$0xff] }
  0x38   : > { %2770 = vmatprep.subr.bf16.mxu1 %v2769_v17  ;;  %v271_v25 = vld [vmem:[%s4077_s28 + $0x258] sm:$0xff]  ;;  %v2709_v28 = vpack.c.bf16 %v207_v23, %v205_v22  ;;  %v206_v31 = vld [vmem:[%s4077_s28 + $0x50] sm:$0xff]  ;;  %v268_v32 = vld [vmem:[%s4077_s28 + $0x240] sm:$0xff] }
  0x39   : > { %v2773_v29 = vpack.c.bf16 %v271_v25, %v269_v24  ;;  %v270_v33 = vld [vmem:[%s4077_s28 + $0x250] sm:$0xff]  ;;  %v209_v34 = vld [vmem:[%s4077_s28 + $0x68] sm:$0xff]  ;;  %v211_v35 = vld [vmem:[%s4077_s28 + $0x78] sm:$0xff]  ;;  %v2711_v38 = vpack.c.bf16 %v206_v31, %v204_v30 }
  0x3a   : > { %v273_v36 = vld [vmem:[%s4077_s28 + $0x268] sm:$0xff]  ;;  %v275_v37 = vld [vmem:[%s4077_s28 + $0x278] sm:$0xff]  ;;  %v2775_v39 = vpack.c.bf16 %v270_v33, %v268_v32  ;;  %v2713_v40 = vpack.c.bf16 %v211_v35, %v209_v34  ;;  %v208_v42 = vld [vmem:[%s4077_s28 + $0x60] sm:$0xff] }
  0x3b   : > { %v2777_v41 = vpack.c.bf16 %v275_v37, %v273_v36  ;;  %v210_v43 = vld [vmem:[%s4077_s28 + $0x70] sm:$0xff]  ;;  %v272_v44 = vld [vmem:[%s4077_s28 + $0x260] sm:$0xff]  ;;  %v213_v46 = vld [vmem:[%s4077_s28 + $0x88] sm:$0xff] }
  0x3c   : > { %v274_v45 = vld [vmem:[%s4077_s28 + $0x270] sm:$0xff]  ;;  %v215_v47 = vld [vmem:[%s4077_s28 + $0x98] sm:$0xff]  ;;  %v277_v48 = vld [vmem:[%s4077_s28 + $0x288] sm:$0xff]  ;;  %v2715_v50 = vpack.c.bf16 %v210_v43, %v208_v42 }
  0x3d   : > { %v279_v49 = vld [vmem:[%s4077_s28 + $0x298] sm:$0xff]  ;;  %v2779_v51 = vpack.c.bf16 %v274_v45, %v272_v44  ;;  %v2717_v52 = vpack.c.bf16 %v215_v47, %v213_v46  ;;  %v212_v54 = vld [vmem:[%s4077_s28 + $0x80] sm:$0xff]  ;;  %v214_v55 = vld [vmem:[%s4077_s28 + $0x90] sm:$0xff] }
  0x3e   : > { %2708 = vmatpush1.bf16.xpose.msra.mxu0 %v2707_v26  ;;  %v2781_v53 = vpack.c.bf16 %v279_v49, %v277_v48  ;;  %v276_v56 = vld [vmem:[%s4077_s28 + $0x280] sm:$0xff]  ;;  %v278_v57 = vld [vmem:[%s4077_s28 + $0x290] sm:$0xff]  ;;  %v217_v58 = vld [vmem:[%s4077_s28 + $0xa8] sm:$0xff]  ;;  %v2719_v62 = vpack.c.bf16 %v214_v55, %v212_v54 }
  0x3f   : > { %2772 = vmatpush1.bf16.xpose.msra.mxu1 %v2771_v27  ;;  %2710 = vmatprep.subr.bf16.mxu0 %v2709_v28  ;;  %v219_v59 = vld [vmem:[%s4077_s28 + $0xb8] sm:$0xff]  ;;  %v281_v60 = vld [vmem:[%s4077_s28 + $0x2a8] sm:$0xff]  ;;  %v2783_v63 = vpack.c.bf16 %v278_v57, %v276_v56  ;;  %v216_v2 = vld [vmem:[%s4077_s28 + $0xa0] sm:$0xff] }
  0x40   : > { %2774 = vmatprep.subr.bf16.mxu1 %v2773_v29  ;;  %v283_v61 = vld [vmem:[%s4077_s28 + $0x2b8] sm:$0xff]  ;;  %v2721_v0 = vpack.c.bf16 %v219_v59, %v217_v58  ;;  %v218_v3 = vld [vmem:[%s4077_s28 + $0xb0] sm:$0xff]  ;;  %v280_v4 = vld [vmem:[%s4077_s28 + $0x2a0] sm:$0xff] }
  0x41   : > { %v2785_v1 = vpack.c.bf16 %v283_v61, %v281_v60  ;;  %v282_v5 = vld [vmem:[%s4077_s28 + $0x2b0] sm:$0xff]  ;;  %v221_v6 = vld [vmem:[%s4077_s28 + $0xc8] sm:$0xff]  ;;  %v223_v7 = vld [vmem:[%s4077_s28 + $0xd8] sm:$0xff]  ;;  %v2723_v10 = vpack.c.bf16 %v218_v3, %v216_v2 }
  0x42   : > { %v285_v8 = vld [vmem:[%s4077_s28 + $0x2c8] sm:$0xff]  ;;  %v287_v9 = vld [vmem:[%s4077_s28 + $0x2d8] sm:$0xff]  ;;  %v2787_v11 = vpack.c.bf16 %v282_v5, %v280_v4  ;;  %v2725_v12 = vpack.c.bf16 %v223_v7, %v221_v6  ;;  %v220_v15 = vld [vmem:[%s4077_s28 + $0xc0] sm:$0xff] }
  0x43   : > { %v2789_v13 = vpack.c.bf16 %v287_v9, %v285_v8  ;;  %v4138_v14 = vld [vmem:[%s5265_s0 + $0x8] sm:$0xff]  ;;  %v222_v16 = vld [vmem:[%s4077_s28 + $0xd0] sm:$0xff]  ;;  %v284_v17 = vld [vmem:[%s4077_s28 + $0x2c0] sm:$0xff] }
  0x44   : > { %1290 = vmatprep.mubr.f32.mxu0 %v4138_v14  ;;  %1361 = vmatprep.mubr.f32.mxu1 %v4138_v14  ;;  %v286_v18 = vld [vmem:[%s4077_s28 + $0x2d0] sm:$0xff]  ;;  %v225_v19 = vld [vmem:[%s4077_s28 + $0xe8] sm:$0xff]  ;;  %v227_v20 = vld [vmem:[%s4077_s28 + $0xf8] sm:$0xff]  ;;  %v2727_v23 = vpack.c.bf16 %v222_v16, %v220_v15 }
  0x45   : > { %v289_v21 = vld [vmem:[%s4077_s28 + $0x2e8] sm:$0xff]  ;;  %v291_v22 = vld [vmem:[%s4077_s28 + $0x2f8] sm:$0xff]  ;;  %v2791_v24 = vpack.c.bf16 %v286_v18, %v284_v17  ;;  %v2729_v25 = vpack.c.bf16 %v227_v20, %v225_v19  ;;  %v224_v27 = vld [vmem:[%s4077_s28 + $0xe0] sm:$0xff]  ;;  %v3971_v19 = vmov 0  }
  0x46   : > { %2712 = vmatpush1.bf16.xpose.msra.mxu0 %v2711_v38  ;;  %v2793_v26 = vpack.c.bf16 %v291_v22, %v289_v21  ;;  %v226_v28 = vld [vmem:[%s4077_s28 + $0xf0] sm:$0xff]  ;;  %v288_v29 = vld [vmem:[%s4077_s28 + $0x2e0] sm:$0xff]  ;;  %v229_v31 = vld [vmem:[%s4077_s28 + $0x108] sm:$0xff]  ;;  %3767 = vset.pattern.permute.xlu0 %v3971_v19 }
  0x47   : > { %2776 = vmatpush1.bf16.xpose.msra.mxu1 %v2775_v39  ;;  %2714 = vmatprep.subr.bf16.mxu0 %v2713_v40  ;;  %v290_v30 = vld [vmem:[%s4077_s28 + $0x2f0] sm:$0xff]  ;;  %v231_v32 = vld [vmem:[%s4077_s28 + $0x118] sm:$0xff]  ;;  %v293_v33 = vld [vmem:[%s4077_s28 + $0x308] sm:$0xff]  ;;  %v2731_v35 = vpack.c.bf16 %v226_v28, %v224_v27 }
  0x48   : > { %2778 = vmatprep.subr.bf16.mxu1 %v2777_v41  ;;  %v295_v34 = vld [vmem:[%s4077_s28 + $0x318] sm:$0xff]  ;;  %v2795_v36 = vpack.c.bf16 %v290_v30, %v288_v29  ;;  %v2733_v37 = vpack.c.bf16 %v231_v32, %v229_v31  ;;  %v228_v39 = vld [vmem:[%s4077_s28 + $0x100] sm:$0xff]  ;;  %v230_v40 = vld [vmem:[%s4077_s28 + $0x110] sm:$0xff] }
  0x49   : > { %v2797_v38 = vpack.c.bf16 %v295_v34, %v293_v33  ;;  %v292_v41 = vld [vmem:[%s4077_s28 + $0x300] sm:$0xff]  ;;  %v294_v42 = vld [vmem:[%s4077_s28 + $0x310] sm:$0xff]  ;;  %v233_v43 = vld [vmem:[%s4077_s28 + $0x128] sm:$0xff]  ;;  %v2735_v47 = vpack.c.bf16 %v230_v40, %v228_v39 }
  0x4a   : > { %v235_v44 = vld [vmem:[%s4077_s28 + $0x138] sm:$0xff]  ;;  %v297_v45 = vld [vmem:[%s4077_s28 + $0x328] sm:$0xff]  ;;  %v2799_v48 = vpack.c.bf16 %v294_v42, %v292_v41  ;;  %v298_v54 = vld [vmem:[%s4077_s28 + $0x330] sm:$0xff] }
  0x4b   : > { %v299_v46 = vld [vmem:[%s4077_s28 + $0x338] sm:$0xff]  ;;  %v2737_v49 = vpack.c.bf16 %v235_v44, %v233_v43  ;;  %v237_v55 = vld [vmem:[%s4077_s28 + $0x148] sm:$0xff]  ;;  %v302_v2 = vld [vmem:[%s4077_s28 + $0x350] sm:$0xff] }
  0x4c   : > { %v239_v56 = vld [vmem:[%s4077_s28 + $0x158] sm:$0xff]  ;;  %v301_v57 = vld [vmem:[%s4077_s28 + $0x348] sm:$0xff]  ;;  %v1220_v15 = vld [vmem:[%s5266_s1] sm:$0xff] }
  0x4d   : > { %v303_v58 = vld [vmem:[%s4077_s28 + $0x358] sm:$0xff]  ;;  %v2741_v61 = vpack.c.bf16 %v239_v56, %v237_v55  ;;  %v241_v3 = vld [vmem:[%s4077_s28 + $0x168] sm:$0xff]  ;;  %v306_v16 = vld [vmem:[%s4077_s28 + $0x370] sm:$0xff]  ;;  %1223 = vperm.xlu0 %3767, %v1220_v15  }
  0x4e   : > { %2716 = vmatpush1.bf16.xpose.msra.mxu0 %v2715_v50  ;;  %v2801_v50 = vpack.c.bf16 %v299_v46, %v297_v45  ;;  %v243_v4 = vld [vmem:[%s4077_s28 + $0x178] sm:$0xff]  ;;  %v305_v5 = vld [vmem:[%s4077_s28 + $0x368] sm:$0xff]  ;;  %v246_v27 = vld [vmem:[%s4077_s28 + $0x190] sm:$0xff] }
  0x4f   : > { %2780 = vmatpush1.bf16.xpose.msra.mxu1 %v2779_v51  ;;  %2718 = vmatprep.subr.bf16.mxu0 %v2717_v52  ;;  %v232_v51 = vld [vmem:[%s4077_s28 + $0x120] sm:$0xff]  ;;  %v234_v52 = vld [vmem:[%s4077_s28 + $0x130] sm:$0xff]  ;;  %v307_v6 = vld [vmem:[%s4077_s28 + $0x378] sm:$0xff]  ;;  %v2745_v9 = vpack.c.bf16 %v243_v4, %v241_v3 }
  0x50   : > { %2782 = vmatprep.subr.bf16.mxu1 %v2781_v53  ;;  %v296_v53 = vld [vmem:[%s4077_s28 + $0x320] sm:$0xff]  ;;  %v2739_v59 = vpack.c.bf16 %v234_v52, %v232_v51  ;;  %v245_v17 = vld [vmem:[%s4077_s28 + $0x188] sm:$0xff]  ;;  %v247_v18 = vld [vmem:[%s4077_s28 + $0x198] sm:$0xff] }
  0x51   : > { %v2803_v60 = vpack.c.bf16 %v298_v54, %v296_v53  ;;  %v309_v20 = vld [vmem:[%s4077_s28 + $0x388] sm:$0xff]  ;;  %v311_v21 = vld [vmem:[%s4077_s28 + $0x398] sm:$0xff]  ;;  %v308_v28 = vld [vmem:[%s4077_s28 + $0x380] sm:$0xff] }
  0x52   : > { %v310_v29 = vld [vmem:[%s4077_s28 + $0x390] sm:$0xff]  ;;  %v249_v30 = vld [vmem:[%s4077_s28 + $0x1a8] sm:$0xff]  ;;  %v251_v31 = vld [vmem:[%s4077_s28 + $0x1b8] sm:$0xff] }
  0x53   : > { %v313_v32 = vld [vmem:[%s4077_s28 + $0x3a8] sm:$0xff]  ;;  %v315_v33 = vld [vmem:[%s4077_s28 + $0x3b8] sm:$0xff]  ;;  %v250_v39 = vld [vmem:[%s4077_s28 + $0x1b0] sm:$0xff] }
  0x54   : > { %v312_v40 = vld [vmem:[%s4077_s28 + $0x3a0] sm:$0xff]  ;;  %v314_v41 = vld [vmem:[%s4077_s28 + $0x3b0] sm:$0xff]  ;;  %v253_v42 = vld [vmem:[%s4077_s28 + $0x1c8] sm:$0xff] }
  0x55   : > { %v255_v43 = vld [vmem:[%s4077_s28 + $0x1d8] sm:$0xff]  ;;  %v317_v44 = vld [vmem:[%s4077_s28 + $0x3c8] sm:$0xff]  ;;  %v254_v51 = vld [vmem:[%s4077_s28 + $0x1d0] sm:$0xff] }
  0x56   : > { %2720 = vmatpush1.bf16.xpose.msra.mxu0 %v2719_v62  ;;  %v2805_v62 = vpack.c.bf16 %v303_v58, %v301_v57  ;;  %v319_v45 = vld [vmem:[%s4077_s28 + $0x3d8] sm:$0xff]  ;;  %v316_v52 = vld [vmem:[%s4077_s28 + $0x3c0] sm:$0xff]  ;;  %v318_v53 = vld [vmem:[%s4077_s28 + $0x3d0] sm:$0xff] }
  0x57   : > { %2784 = vmatpush1.bf16.xpose.msra.mxu1 %v2783_v63  ;;  %2722 = vmatprep.subr.bf16.mxu0 %v2721_v0  ;;  %v236_v63 = vld [vmem:[%s4077_s28 + $0x140] sm:$0xff]  ;;  %v238_v0 = vld [vmem:[%s4077_s28 + $0x150] sm:$0xff]  ;;  %v257_v54 = vld [vmem:[%s4077_s28 + $0x1e8] sm:$0xff] }
  0x58   : > { %2786 = vmatprep.subr.bf16.mxu1 %v2785_v1  ;;  %v300_v1 = vld [vmem:[%s4077_s28 + $0x340] sm:$0xff]  ;;  %v2743_v7 = vpack.c.bf16 %v238_v0, %v236_v63  ;;  %v259_v55 = vld [vmem:[%s4077_s28 + $0x1f8] sm:$0xff]  ;;  %v321_v56 = vld [vmem:[%s4077_s28 + $0x3e8] sm:$0xff] }
  0x59   : > { %v2807_v8 = vpack.c.bf16 %v302_v2, %v300_v1  ;;  %v323_v57 = vld [vmem:[%s4077_s28 + $0x3f8] sm:$0xff]  ;;  %v258_v63 = vld [vmem:[%s4077_s28 + $0x1f0] sm:$0xff]  ;;  %v320_v0 = vld [vmem:[%s4077_s28 + $0x3e0] sm:$0xff] }
  0x5a   : > { %v322_v1 = vld [vmem:[%s4077_s28 + $0x3f0] sm:$0xff]  ;;  %v325_v2 = vld [vmem:[%s4077_s28 + $0x408] sm:$0xff]  ;;  %v327_v3 = vld [vmem:[%s4077_s28 + $0x418] sm:$0xff] }
  0x5b   : > { %v389_v4 = vld [vmem:[%s4077_s28 + $0x608] sm:$0xff]  ;;  %v4236_v19 = vld [vmem:[%s5265_s0] sm:$0xff] }
  0x5c   : > { %v329_v15 = vld [vmem:[%s4077_s28 + $0x428] sm:$0xff] }
  0x5e   : > { %2724 = vmatpush1.bf16.xpose.msra.mxu0 %v2723_v10  ;;  %v2809_v10 = vpack.c.bf16 %v307_v6, %v305_v5  ;;  %v391_v5 = vld [vmem:[%s4077_s28 + $0x618] sm:$0xff] }
  0x5f   : > { %2788 = vmatpush1.bf16.xpose.msra.mxu1 %v2787_v11  ;;  %2726 = vmatprep.subr.bf16.mxu0 %v2725_v12  ;;  %v240_v11 = vld [vmem:[%s4077_s28 + $0x160] sm:$0xff]  ;;  %v242_v12 = vld [vmem:[%s4077_s28 + $0x170] sm:$0xff] }
  0x60   : > { %2790 = vmatprep.subr.bf16.mxu1 %v2789_v13  ;;  %v304_v13 = vld [vmem:[%s4077_s28 + $0x360] sm:$0xff]  ;;  %v2747_v22 = vpack.c.bf16 %v242_v12, %v240_v11  ;;  %v326_v11 = vld [vmem:[%s4077_s28 + $0x410] sm:$0xff] }
  0x61   : > { %v388_v12 = vld [vmem:[%s4077_s28 + $0x600] sm:$0xff] }
  0x66   : > { %2728 = vmatpush1.bf16.xpose.msra.mxu0 %v2727_v23  ;;  %v2811_v23 = vpack.c.bf16 %v306_v16, %v304_v13  ;;  %v390_v13 = vld [vmem:[%s4077_s28 + $0x610] sm:$0xff]  ;;  %v331_v16 = vld [vmem:[%s4077_s28 + $0x438] sm:$0xff] }
  0x67   : > { %2792 = vmatpush1.bf16.xpose.msra.mxu1 %v2791_v24  ;;  %2730 = vmatprep.subr.bf16.mxu0 %v2729_v25  ;;  %v2749_v24 = vpack.c.bf16 %v247_v18, %v245_v17  ;;  %v2813_v25 = vpack.c.bf16 %v311_v21, %v309_v20  ;;  %v393_v17 = vld [vmem:[%s4077_s28 + $0x628] sm:$0xff]  ;;  %v395_v18 = vld [vmem:[%s4077_s28 + $0x638] sm:$0xff]  ;;  %v2895_v21 = vpack.c.bf16 %v390_v13, %v388_v12 }
  0x68   : > { %2794 = vmatprep.subr.bf16.mxu1 %v2793_v26  ;;  %v244_v26 = vld [vmem:[%s4077_s28 + $0x180] sm:$0xff]  ;;  %v349_v12 = vld [vmem:[%s4077_s28 + $0x4c8] sm:$0xff]  ;;  %v351_v13 = vld [vmem:[%s4077_s28 + $0x4d8] sm:$0xff] }
  0x69   : > { %v2751_v34 = vpack.c.bf16 %v246_v27, %v244_v26  ;;  %v392_v26 = vld [vmem:[%s4077_s28 + $0x620] sm:$0xff]  ;;  %v394_v27 = vld [vmem:[%s4077_s28 + $0x630] sm:$0xff] }
  0x6e   : > { %2732 = vmatpush1.bf16.xpose.msra.mxu0 %v2731_v35  ;;  %v2815_v35 = vpack.c.bf16 %v310_v29, %v308_v28  ;;  %v333_v28 = vld [vmem:[%s4077_s28 + $0x448] sm:$0xff]  ;;  %v335_v29 = vld [vmem:[%s4077_s28 + $0x458] sm:$0xff] }
  0x6f   : > { %2796 = vmatpush1.bf16.xpose.msra.mxu1 %v2795_v36  ;;  %2734 = vmatprep.subr.bf16.mxu0 %v2733_v37  ;;  %v2753_v36 = vpack.c.bf16 %v251_v31, %v249_v30  ;;  %v2817_v37 = vpack.c.bf16 %v315_v33, %v313_v32  ;;  %v397_v30 = vld [vmem:[%s4077_s28 + $0x648] sm:$0xff]  ;;  %v399_v31 = vld [vmem:[%s4077_s28 + $0x658] sm:$0xff]  ;;  %v2899_v33 = vpack.c.bf16 %v394_v27, %v392_v26 }
  0x70   : > { %2798 = vmatprep.subr.bf16.mxu1 %v2797_v38  ;;  %v248_v38 = vld [vmem:[%s4077_s28 + $0x1a0] sm:$0xff]  ;;  %v353_v26 = vld [vmem:[%s4077_s28 + $0x4e8] sm:$0xff]  ;;  %v355_v27 = vld [vmem:[%s4077_s28 + $0x4f8] sm:$0xff] }
  0x71   : > { %v2755_v46 = vpack.c.bf16 %v250_v39, %v248_v38  ;;  %v396_v38 = vld [vmem:[%s4077_s28 + $0x640] sm:$0xff]  ;;  %v398_v39 = vld [vmem:[%s4077_s28 + $0x650] sm:$0xff] }
  0x76   : > { %2736 = vmatpush1.bf16.xpose.msra.mxu0 %v2735_v47  ;;  %v2819_v47 = vpack.c.bf16 %v314_v41, %v312_v40  ;;  %v337_v40 = vld [vmem:[%s4077_s28 + $0x468] sm:$0xff]  ;;  %v339_v41 = vld [vmem:[%s4077_s28 + $0x478] sm:$0xff] }
  0x77   : > { %2800 = vmatpush1.bf16.xpose.msra.mxu1 %v2799_v48  ;;  %2738 = vmatprep.subr.bf16.mxu0 %v2737_v49  ;;  %v2757_v48 = vpack.c.bf16 %v255_v43, %v253_v42  ;;  %v2821_v49 = vpack.c.bf16 %v319_v45, %v317_v44  ;;  %v401_v42 = vld [vmem:[%s4077_s28 + $0x668] sm:$0xff]  ;;  %v403_v43 = vld [vmem:[%s4077_s28 + $0x678] sm:$0xff]  ;;  %v2903_v45 = vpack.c.bf16 %v398_v39, %v396_v38 }
  0x78   : > { %2802 = vmatprep.subr.bf16.mxu1 %v2801_v50  ;;  %v252_v50 = vld [vmem:[%s4077_s28 + $0x1c0] sm:$0xff]  ;;  %v357_v38 = vld [vmem:[%s4077_s28 + $0x508] sm:$0xff]  ;;  %v359_v39 = vld [vmem:[%s4077_s28 + $0x518] sm:$0xff] }
  0x79   : > { %v2759_v58 = vpack.c.bf16 %v254_v51, %v252_v50  ;;  %v400_v50 = vld [vmem:[%s4077_s28 + $0x660] sm:$0xff]  ;;  %v402_v51 = vld [vmem:[%s4077_s28 + $0x670] sm:$0xff] }
  0x7e   : > { %2740 = vmatpush1.bf16.xpose.msra.mxu0 %v2739_v59  ;;  %v2823_v59 = vpack.c.bf16 %v318_v53, %v316_v52  ;;  %v341_v52 = vld [vmem:[%s4077_s28 + $0x488] sm:$0xff]  ;;  %v343_v53 = vld [vmem:[%s4077_s28 + $0x498] sm:$0xff] }
  0x7f   : > { %2804 = vmatpush1.bf16.xpose.msra.mxu1 %v2803_v60  ;;  %2742 = vmatprep.subr.bf16.mxu0 %v2741_v61  ;;  %v2761_v60 = vpack.c.bf16 %v259_v55, %v257_v54  ;;  %v2825_v61 = vpack.c.bf16 %v323_v57, %v321_v56  ;;  %v405_v54 = vld [vmem:[%s4077_s28 + $0x688] sm:$0xff]  ;;  %v407_v55 = vld [vmem:[%s4077_s28 + $0x698] sm:$0xff]  ;;  %v2907_v57 = vpack.c.bf16 %v402_v51, %v400_v50 }
  0x80   : > { %2806 = vmatprep.subr.bf16.mxu1 %v2805_v62  ;;  %v256_v62 = vld [vmem:[%s4077_s28 + $0x1e0] sm:$0xff]  ;;  %v361_v50 = vld [vmem:[%s4077_s28 + $0x528] sm:$0xff]  ;;  %v363_v51 = vld [vmem:[%s4077_s28 + $0x538] sm:$0xff] }
  0x81   : > { %v2763_v6 = vpack.c.bf16 %v258_v63, %v256_v62  ;;  %v404_v62 = vld [vmem:[%s4077_s28 + $0x680] sm:$0xff]  ;;  %v406_v63 = vld [vmem:[%s4077_s28 + $0x690] sm:$0xff] }
  0x86   : > { %2744 = vmatpush1.bf16.xpose.msra.mxu0 %v2743_v7  ;;  %v2827_v7 = vpack.c.bf16 %v322_v1, %v320_v0  ;;  %v345_v0 = vld [vmem:[%s4077_s28 + $0x4a8] sm:$0xff]  ;;  %v347_v1 = vld [vmem:[%s4077_s28 + $0x4b8] sm:$0xff] }
  0x87   : > { %2808 = vmatpush1.bf16.xpose.msra.mxu1 %v2807_v8  ;;  %2746 = vmatprep.subr.bf16.mxu0 %v2745_v9  ;;  %v2829_v8 = vpack.c.bf16 %v327_v3, %v325_v2  ;;  %v2893_v9 = vpack.c.bf16 %v391_v5, %v389_v4  ;;  %v409_v2 = vld [vmem:[%s4077_s28 + $0x6a8] sm:$0xff]  ;;  %v411_v3 = vld [vmem:[%s4077_s28 + $0x6b8] sm:$0xff]  ;;  %v2911_v5 = vpack.c.bf16 %v406_v63, %v404_v62 }
  0x88   : > { %2810 = vmatprep.subr.bf16.mxu1 %v2809_v10  ;;  %v324_v10 = vld [vmem:[%s4077_s28 + $0x400] sm:$0xff]  ;;  %v365_v62 = vld [vmem:[%s4077_s28 + $0x548] sm:$0xff]  ;;  %v367_v63 = vld [vmem:[%s4077_s28 + $0x558] sm:$0xff] }
  0x89   : > { %v2831_v20 = vpack.c.bf16 %v326_v11, %v324_v10  ;;  %v408_v10 = vld [vmem:[%s4077_s28 + $0x6a0] sm:$0xff]  ;;  %v410_v11 = vld [vmem:[%s4077_s28 + $0x6b0] sm:$0xff] }
  0x8e   : > { %2748 = vmatpush1.bf16.xpose.msra.mxu0 %v2747_v22  ;;  %v2833_v22 = vpack.c.bf16 %v331_v16, %v329_v15  ;;  %v413_v15 = vld [vmem:[%s4077_s28 + $0x6c8] sm:$0xff]  ;;  %v415_v16 = vld [vmem:[%s4077_s28 + $0x6d8] sm:$0xff] }
  0x8f   : > { %2812 = vmatpush1.bf16.xpose.msra.mxu1 %v2811_v23  ;;  %2750 = vmatprep.subr.bf16.mxu0 %v2749_v24  ;;  %v2897_v23 = vpack.c.bf16 %v395_v18, %v393_v17  ;;  %v328_v24 = vld [vmem:[%s4077_s28 + $0x420] sm:$0xff]  ;;  %v2915_v18 = vpack.c.bf16 %v410_v11, %v408_v10  ;;  %v369_v10 = vld [vmem:[%s4077_s28 + $0x568] sm:$0xff]  ;;  %v371_v11 = vld [vmem:[%s4077_s28 + $0x578] sm:$0xff] }
  0x90   : > { %2814 = vmatprep.subr.bf16.mxu1 %v2813_v25  ;;  %v330_v25 = vld [vmem:[%s4077_s28 + $0x430] sm:$0xff] }
  0x91   : > { %v2835_v32 = vpack.c.bf16 %v330_v25, %v328_v24  ;;  %v412_v24 = vld [vmem:[%s4077_s28 + $0x6c0] sm:$0xff]  ;;  %v414_v25 = vld [vmem:[%s4077_s28 + $0x6d0] sm:$0xff] }
  0x96   : > { %2752 = vmatpush1.bf16.xpose.msra.mxu0 %v2751_v34  ;;  %v2837_v34 = vpack.c.bf16 %v335_v29, %v333_v28  ;;  %v417_v28 = vld [vmem:[%s4077_s28 + $0x6e8] sm:$0xff]  ;;  %v419_v29 = vld [vmem:[%s4077_s28 + $0x6f8] sm:$0xff] }
  0x97   : > { %2816 = vmatpush1.bf16.xpose.msra.mxu1 %v2815_v35  ;;  %2754 = vmatprep.subr.bf16.mxu0 %v2753_v36  ;;  %v2901_v35 = vpack.c.bf16 %v399_v31, %v397_v30  ;;  %v332_v36 = vld [vmem:[%s4077_s28 + $0x440] sm:$0xff]  ;;  %v2919_v31 = vpack.c.bf16 %v414_v25, %v412_v24  ;;  %v373_v24 = vld [vmem:[%s4077_s28 + $0x588] sm:$0xff]  ;;  %v375_v25 = vld [vmem:[%s4077_s28 + $0x598] sm:$0xff] }
  0x98   : > { %2818 = vmatprep.subr.bf16.mxu1 %v2817_v37  ;;  %v334_v37 = vld [vmem:[%s4077_s28 + $0x450] sm:$0xff] }
  0x99   : > { %v2839_v44 = vpack.c.bf16 %v334_v37, %v332_v36  ;;  %v416_v36 = vld [vmem:[%s4077_s28 + $0x6e0] sm:$0xff]  ;;  %v418_v37 = vld [vmem:[%s4077_s28 + $0x6f0] sm:$0xff] }
  0x9e   : > { %2756 = vmatpush1.bf16.xpose.msra.mxu0 %v2755_v46  ;;  %v2841_v46 = vpack.c.bf16 %v339_v41, %v337_v40  ;;  %v421_v40 = vld [vmem:[%s4077_s28 + $0x708] sm:$0xff]  ;;  %v423_v41 = vld [vmem:[%s4077_s28 + $0x718] sm:$0xff] }
  0x9f   : > { %2820 = vmatpush1.bf16.xpose.msra.mxu1 %v2819_v47  ;;  %2758 = vmatprep.subr.bf16.mxu0 %v2757_v48  ;;  %v2905_v47 = vpack.c.bf16 %v403_v43, %v401_v42  ;;  %v336_v48 = vld [vmem:[%s4077_s28 + $0x460] sm:$0xff]  ;;  %v2923_v43 = vpack.c.bf16 %v418_v37, %v416_v36  ;;  %v377_v36 = vld [vmem:[%s4077_s28 + $0x5a8] sm:$0xff]  ;;  %v379_v37 = vld [vmem:[%s4077_s28 + $0x5b8] sm:$0xff] }
  0xa0   : > { %2822 = vmatprep.subr.bf16.mxu1 %v2821_v49  ;;  %v338_v49 = vld [vmem:[%s4077_s28 + $0x470] sm:$0xff] }
  0xa1   : > { %v2843_v56 = vpack.c.bf16 %v338_v49, %v336_v48  ;;  %v420_v48 = vld [vmem:[%s4077_s28 + $0x700] sm:$0xff]  ;;  %v422_v49 = vld [vmem:[%s4077_s28 + $0x710] sm:$0xff] }
  0xa6   : > { %2760 = vmatpush1.bf16.xpose.msra.mxu0 %v2759_v58  ;;  %v2845_v58 = vpack.c.bf16 %v343_v53, %v341_v52  ;;  %v425_v52 = vld [vmem:[%s4077_s28 + $0x728] sm:$0xff]  ;;  %v427_v53 = vld [vmem:[%s4077_s28 + $0x738] sm:$0xff] }
  0xa7   : > { %2824 = vmatpush1.bf16.xpose.msra.mxu1 %v2823_v59  ;;  %2762 = vmatprep.subr.bf16.mxu0 %v2761_v60  ;;  %v2909_v59 = vpack.c.bf16 %v407_v55, %v405_v54  ;;  %v340_v60 = vld [vmem:[%s4077_s28 + $0x480] sm:$0xff]  ;;  %v2927_v55 = vpack.c.bf16 %v422_v49, %v420_v48  ;;  %v381_v48 = vld [vmem:[%s4077_s28 + $0x5c8] sm:$0xff]  ;;  %v383_v49 = vld [vmem:[%s4077_s28 + $0x5d8] sm:$0xff] }
  0xa8   : > { %2826 = vmatprep.subr.bf16.mxu1 %v2825_v61  ;;  %v342_v61 = vld [vmem:[%s4077_s28 + $0x490] sm:$0xff] }
  0xa9   : > { %v2847_v4 = vpack.c.bf16 %v342_v61, %v340_v60  ;;  %v424_v60 = vld [vmem:[%s4077_s28 + $0x720] sm:$0xff]  ;;  %v426_v61 = vld [vmem:[%s4077_s28 + $0x730] sm:$0xff] }
  0xae   : > { %2764 = vmatpush1.bf16.xpose.msra.mxu0 %v2763_v6  ;;  %v2849_v6 = vpack.c.bf16 %v347_v1, %v345_v0  ;;  %v429_v0 = vld [vmem:[%s4077_s28 + $0x748] sm:$0xff]  ;;  %v431_v1 = vld [vmem:[%s4077_s28 + $0x758] sm:$0xff] }
  0xaf   : > { %2828 = vmatpush1.bf16.xpose.msra.mxu1 %v2827_v7  ;;  %2830 = vmatprep.subr.bf16.mxu0 %v2829_v8  ;;  %v2913_v7 = vpack.c.bf16 %v411_v3, %v409_v2  ;;  %v344_v8 = vld [vmem:[%s4077_s28 + $0x4a0] sm:$0xff]  ;;  %v2931_v3 = vpack.c.bf16 %v426_v61, %v424_v60  ;;  %v385_v60 = vld [vmem:[%s4077_s28 + $0x5e8] sm:$0xff]  ;;  %v387_v61 = vld [vmem:[%s4077_s28 + $0x5f8] sm:$0xff] }
  0xb0   : > { %2894 = vmatprep.subr.bf16.mxu1 %v2893_v9  ;;  %v346_v9 = vld [vmem:[%s4077_s28 + $0x4b0] sm:$0xff] }
  0xb1   : > { %v2851_v17 = vpack.c.bf16 %v346_v9, %v344_v8  ;;  %v428_v8 = vld [vmem:[%s4077_s28 + $0x740] sm:$0xff]  ;;  %v430_v9 = vld [vmem:[%s4077_s28 + $0x750] sm:$0xff] }
  0xb5   : > { %1291 = vmatmul.mubr.f32.vlgmr.msra.gmra.mrb[0].mxu0 %v4236_v19 }
  0xb6   : > { %1362 = vmatmul.mubr.f32.vlgmr.msra.gmra.mrb[0].mxu1 %v4236_v19  ;;  %2832 = vmatpush1.bf16.xpose.msra.mxu0 %v2831_v20  ;;  %v2853_v20 = vpack.c.bf16 %v351_v13, %v349_v12  ;;  %v433_v12 = vld [vmem:[%s4077_s28 + $0x768] sm:$0xff]  ;;  %v435_v13 = vld [vmem:[%s4077_s28 + $0x778] sm:$0xff] }
  0xb7   : > { %2896 = vmatpush1.bf16.xpose.msra.mxu1 %v2895_v21  ;;  %2834 = vmatprep.subr.bf16.mxu0 %v2833_v22  ;;  %v2917_v21 = vpack.c.bf16 %v415_v16, %v413_v15  ;;  %v348_v22 = vld [vmem:[%s4077_s28 + $0x4c0] sm:$0xff]  ;;  %v2935_v16 = vpack.c.bf16 %v430_v9, %v428_v8  ;;  %v453_v8 = vld [vmem:[%s4077_s28 + $0x808] sm:$0xff]  ;;  %v455_v9 = vld [vmem:[%s4077_s28 + $0x818] sm:$0xff] }
  0xb8   : > { %2898 = vmatprep.subr.bf16.mxu1 %v2897_v23  ;;  %1432 = vmatprep.mubr.f32.mxu0 %v4138_v14  ;;  %v350_v23 = vld [vmem:[%s4077_s28 + $0x4d0] sm:$0xff] }
  0xb9   : > { %1503 = vmatprep.mubr.f32.mxu1 %v4138_v14  ;;  %v2855_v30 = vpack.c.bf16 %v350_v23, %v348_v22  ;;  %v432_v22 = vld [vmem:[%s4077_s28 + $0x760] sm:$0xff]  ;;  %v434_v23 = vld [vmem:[%s4077_s28 + $0x770] sm:$0xff] }
  0xbe   : > { %2836 = vmatpush1.bf16.xpose.msra.mxu0 %v2835_v32  ;;  %v2857_v32 = vpack.c.bf16 %v355_v27, %v353_v26  ;;  %v437_v26 = vld [vmem:[%s4077_s28 + $0x788] sm:$0xff]  ;;  %v439_v27 = vld [vmem:[%s4077_s28 + $0x798] sm:$0xff] }
  0xbf   : > { %2900 = vmatpush1.bf16.xpose.msra.mxu1 %v2899_v33  ;;  %2838 = vmatprep.subr.bf16.mxu0 %v2837_v34  ;;  %v2921_v33 = vpack.c.bf16 %v419_v29, %v417_v28  ;;  %v352_v34 = vld [vmem:[%s4077_s28 + $0x4e0] sm:$0xff]  ;;  %v2939_v29 = vpack.c.bf16 %v434_v23, %v432_v22  ;;  %v457_v22 = vld [vmem:[%s4077_s28 + $0x828] sm:$0xff]  ;;  %v459_v23 = vld [vmem:[%s4077_s28 + $0x838] sm:$0xff] }
  0xc0   : > { %2902 = vmatprep.subr.bf16.mxu1 %v2901_v35  ;;  %v354_v35 = vld [vmem:[%s4077_s28 + $0x4f0] sm:$0xff] }
  0xc1   : > { %v2859_v42 = vpack.c.bf16 %v354_v35, %v352_v34  ;;  %v436_v34 = vld [vmem:[%s4077_s28 + $0x780] sm:$0xff]  ;;  %v438_v35 = vld [vmem:[%s4077_s28 + $0x790] sm:$0xff] }
  0xc6   : > { %2840 = vmatpush1.bf16.xpose.msra.mxu0 %v2839_v44  ;;  %v2861_v44 = vpack.c.bf16 %v359_v39, %v357_v38  ;;  %v441_v38 = vld [vmem:[%s4077_s28 + $0x7a8] sm:$0xff]  ;;  %v443_v39 = vld [vmem:[%s4077_s28 + $0x7b8] sm:$0xff] }
  0xc7   : > { %2904 = vmatpush1.bf16.xpose.msra.mxu1 %v2903_v45  ;;  %2842 = vmatprep.subr.bf16.mxu0 %v2841_v46  ;;  %v2925_v45 = vpack.c.bf16 %v423_v41, %v421_v40  ;;  %v356_v46 = vld [vmem:[%s4077_s28 + $0x500] sm:$0xff]  ;;  %v2943_v41 = vpack.c.bf16 %v438_v35, %v436_v34  ;;  %v461_v34 = vld [vmem:[%s4077_s28 + $0x848] sm:$0xff]  ;;  %v463_v35 = vld [vmem:[%s4077_s28 + $0x858] sm:$0xff] }
  0xc8   : > { %2906 = vmatprep.subr.bf16.mxu1 %v2905_v47  ;;  %v358_v47 = vld [vmem:[%s4077_s28 + $0x510] sm:$0xff] }
  0xc9   : > { %v2863_v54 = vpack.c.bf16 %v358_v47, %v356_v46  ;;  %v440_v46 = vld [vmem:[%s4077_s28 + $0x7a0] sm:$0xff]  ;;  %v442_v47 = vld [vmem:[%s4077_s28 + $0x7b0] sm:$0xff] }
  0xce   : > { %2844 = vmatpush1.bf16.xpose.msra.mxu0 %v2843_v56  ;;  %v2865_v56 = vpack.c.bf16 %v363_v51, %v361_v50  ;;  %v445_v50 = vld [vmem:[%s4077_s28 + $0x7c8] sm:$0xff]  ;;  %v447_v51 = vld [vmem:[%s4077_s28 + $0x7d8] sm:$0xff] }
  0xcf   : > { %2908 = vmatpush1.bf16.xpose.msra.mxu1 %v2907_v57  ;;  %2846 = vmatprep.subr.bf16.mxu0 %v2845_v58  ;;  %v2929_v57 = vpack.c.bf16 %v427_v53, %v425_v52  ;;  %v360_v58 = vld [vmem:[%s4077_s28 + $0x520] sm:$0xff]  ;;  %v2947_v53 = vpack.c.bf16 %v442_v47, %v440_v46  ;;  %v529_v46 = vld [vmem:[%s4077_s28 + $0xa68] sm:$0xff]  ;;  %v531_v47 = vld [vmem:[%s4077_s28 + $0xa78] sm:$0xff] }
  0xd0   : > { %2910 = vmatprep.subr.bf16.mxu1 %v2909_v59  ;;  %v362_v59 = vld [vmem:[%s4077_s28 + $0x530] sm:$0xff] }
  0xd1   : > { %v2867_v2 = vpack.c.bf16 %v362_v59, %v360_v58  ;;  %v444_v58 = vld [vmem:[%s4077_s28 + $0x7c0] sm:$0xff]  ;;  %v446_v59 = vld [vmem:[%s4077_s28 + $0x7d0] sm:$0xff] }
  0xd6   : > { %2848 = vmatpush1.bf16.xpose.msra.mxu0 %v2847_v4  ;;  %v2869_v4 = vpack.c.bf16 %v367_v63, %v365_v62  ;;  %v449_v62 = vld [vmem:[%s4077_s28 + $0x7e8] sm:$0xff]  ;;  %v451_v63 = vld [vmem:[%s4077_s28 + $0x7f8] sm:$0xff] }
  0xd7   : > { %2912 = vmatpush1.bf16.xpose.msra.mxu1 %v2911_v5  ;;  %2850 = vmatprep.subr.bf16.mxu0 %v2849_v6  ;;  %v2933_v5 = vpack.c.bf16 %v431_v1, %v429_v0  ;;  %v364_v6 = vld [vmem:[%s4077_s28 + $0x540] sm:$0xff]  ;;  %v2951_v1 = vpack.c.bf16 %v446_v59, %v444_v58  ;;  %v533_v58 = vld [vmem:[%s4077_s28 + $0xa88] sm:$0xff]  ;;  %v535_v59 = vld [vmem:[%s4077_s28 + $0xa98] sm:$0xff] }
  0xd8   : > { %2914 = vmatprep.subr.bf16.mxu1 %v2913_v7  ;;  %v366_v7 = vld [vmem:[%s4077_s28 + $0x550] sm:$0xff] }
  0xd9   : > { %v2871_v15 = vpack.c.bf16 %v366_v7, %v364_v6  ;;  %v448_v6 = vld [vmem:[%s4077_s28 + $0x7e0] sm:$0xff]  ;;  %v450_v7 = vld [vmem:[%s4077_s28 + $0x7f0] sm:$0xff] }
  0xde   : > { %2852 = vmatpush1.bf16.xpose.msra.mxu0 %v2851_v17  ;;  %v2873_v17 = vpack.c.bf16 %v371_v11, %v369_v10  ;;  %v517_v10 = vld [vmem:[%s4077_s28 + $0xa08] sm:$0xff]  ;;  %v519_v11 = vld [vmem:[%s4077_s28 + $0xa18] sm:$0xff] }
  0xdf   : > { %2916 = vmatpush1.bf16.xpose.msra.mxu1 %v2915_v18  ;;  %2854 = vmatprep.subr.bf16.mxu0 %v2853_v20  ;;  %v2937_v18 = vpack.c.bf16 %v435_v13, %v433_v12  ;;  %v368_v20 = vld [vmem:[%s4077_s28 + $0x560] sm:$0xff]  ;;  %v2955_v13 = vpack.c.bf16 %v450_v7, %v448_v6  ;;  %v537_v6 = vld [vmem:[%s4077_s28 + $0xaa8] sm:$0xff]  ;;  %v539_v7 = vld [vmem:[%s4077_s28 + $0xab8] sm:$0xff] }
  0xe0   : > { %2918 = vmatprep.subr.bf16.mxu1 %v2917_v21  ;;  %v370_v21 = vld [vmem:[%s4077_s28 + $0x570] sm:$0xff] }
  0xe1   : > { %v2875_v28 = vpack.c.bf16 %v370_v21, %v368_v20  ;;  %v516_v20 = vld [vmem:[%s4077_s28 + $0xa00] sm:$0xff]  ;;  %v518_v21 = vld [vmem:[%s4077_s28 + $0xa10] sm:$0xff] }
  0xe6   : > { %2856 = vmatpush1.bf16.xpose.msra.mxu0 %v2855_v30  ;;  %v2877_v30 = vpack.c.bf16 %v375_v25, %v373_v24  ;;  %v521_v24 = vld [vmem:[%s4077_s28 + $0xa28] sm:$0xff]  ;;  %v523_v25 = vld [vmem:[%s4077_s28 + $0xa38] sm:$0xff] }
  0xe7   : > { %2920 = vmatpush1.bf16.xpose.msra.mxu1 %v2919_v31  ;;  %2858 = vmatprep.subr.bf16.mxu0 %v2857_v32  ;;  %v2941_v31 = vpack.c.bf16 %v439_v27, %v437_v26  ;;  %v372_v32 = vld [vmem:[%s4077_s28 + $0x580] sm:$0xff]  ;;  %v3023_v27 = vpack.c.bf16 %v518_v21, %v516_v20  ;;  %v541_v20 = vld [vmem:[%s4077_s28 + $0xac8] sm:$0xff]  ;;  %v543_v21 = vld [vmem:[%s4077_s28 + $0xad8] sm:$0xff] }
  0xe8   : > { %2922 = vmatprep.subr.bf16.mxu1 %v2921_v33  ;;  %v374_v33 = vld [vmem:[%s4077_s28 + $0x590] sm:$0xff] }
  0xe9   : > { %v2879_v40 = vpack.c.bf16 %v374_v33, %v372_v32  ;;  %v520_v32 = vld [vmem:[%s4077_s28 + $0xa20] sm:$0xff]  ;;  %v522_v33 = vld [vmem:[%s4077_s28 + $0xa30] sm:$0xff] }
  0xee   : > { %2860 = vmatpush1.bf16.xpose.msra.mxu0 %v2859_v42  ;;  %v2881_v42 = vpack.c.bf16 %v379_v37, %v377_v36  ;;  %v525_v36 = vld [vmem:[%s4077_s28 + $0xa48] sm:$0xff] }
  0xef   : > { %2924 = vmatpush1.bf16.xpose.msra.mxu1 %v2923_v43  ;;  %2862 = vmatprep.subr.bf16.mxu0 %v2861_v44  ;;  %v2945_v43 = vpack.c.bf16 %v443_v39, %v441_v38  ;;  %v376_v44 = vld [vmem:[%s4077_s28 + $0x5a0] sm:$0xff]  ;;  %v3027_v38 = vpack.c.bf16 %v522_v33, %v520_v32  ;;  %v2965_v39 = vpack.c.bf16 %v463_v35, %v461_v34  ;;  %v545_v32 = vld [vmem:[%s4077_s28 + $0xae8] sm:$0xff]  ;;  %v547_v33 = vld [vmem:[%s4077_s28 + $0xaf8] sm:$0xff] }
  0xf0   : > { %2926 = vmatprep.subr.bf16.mxu1 %v2925_v45  ;;  %v378_v45 = vld [vmem:[%s4077_s28 + $0x5b0] sm:$0xff] }
  0xf1   : > { %v2883_v52 = vpack.c.bf16 %v378_v45, %v376_v44  ;;  %v526_v44 = vld [vmem:[%s4077_s28 + $0xa50] sm:$0xff]  ;;  %v465_v45 = vld [vmem:[%s4077_s28 + $0x868] sm:$0xff] }
  0xf6   : > { %2864 = vmatpush1.bf16.xpose.msra.mxu0 %v2863_v54  ;;  %v2885_v54 = vpack.c.bf16 %v383_v49, %v381_v48 }
  0xf7   : > { %2928 = vmatpush1.bf16.xpose.msra.mxu1 %v2927_v55  ;;  %2866 = vmatprep.subr.bf16.mxu0 %v2865_v56  ;;  %v2949_v55 = vpack.c.bf16 %v447_v51, %v445_v50  ;;  %v380_v56 = vld [vmem:[%s4077_s28 + $0x5c0] sm:$0xff]  ;;  %v3033_v51 = vpack.c.bf16 %v531_v47, %v529_v46 }
  0xf8   : > { %2930 = vmatprep.subr.bf16.mxu1 %v2929_v57  ;;  %v382_v57 = vld [vmem:[%s4077_s28 + $0x5d0] sm:$0xff] }
  0xf9   : > { %v2887_v0 = vpack.c.bf16 %v382_v57, %v380_v56  ;;  %v469_v56 = vld [vmem:[%s4077_s28 + $0x888] sm:$0xff]  ;;  %v471_v57 = vld [vmem:[%s4077_s28 + $0x898] sm:$0xff] }
  0xfe   : > { %2868 = vmatpush1.bf16.xpose.msra.mxu0 %v2867_v2  ;;  %v2889_v2 = vpack.c.bf16 %v387_v61, %v385_v60 }
  0xff   : > { %2932 = vmatpush1.bf16.xpose.msra.mxu1 %v2931_v3  ;;  %2870 = vmatprep.subr.bf16.mxu0 %v2869_v4  ;;  %v2953_v3 = vpack.c.bf16 %v451_v63, %v449_v62  ;;  %v384_v4 = vld [vmem:[%s4077_s28 + $0x5e0] sm:$0xff]  ;;  %v2973_v62 = vpack.c.bf16 %v471_v57, %v469_v56  ;;  %v3037_v63 = vpack.c.bf16 %v535_v59, %v533_v58 }
 0x100   : > { %2934 = vmatprep.subr.bf16.mxu1 %v2933_v5  ;;  %v386_v5 = vld [vmem:[%s4077_s28 + $0x5f0] sm:$0xff] }
 0x101   : > { %v2891_v12 = vpack.c.bf16 %v386_v5, %v384_v4  ;;  %v473_v4 = vld [vmem:[%s4077_s28 + $0x8a8] sm:$0xff]  ;;  %v475_v5 = vld [vmem:[%s4077_s28 + $0x8b8] sm:$0xff] }
 0x106   : > { %2872 = vmatpush1.bf16.xpose.msra.mxu0 %v2871_v15  ;;  %v2957_v15 = vpack.c.bf16 %v455_v9, %v453_v8 }
 0x107   : > { %2936 = vmatpush1.bf16.xpose.msra.mxu1 %v2935_v16  ;;  %2874 = vmatprep.subr.bf16.mxu0 %v2873_v17  ;;  %v3021_v16 = vpack.c.bf16 %v519_v11, %v517_v10  ;;  %v452_v17 = vld [vmem:[%s4077_s28 + $0x800] sm:$0xff]  ;;  %v2977_v10 = vpack.c.bf16 %v475_v5, %v473_v4  ;;  %v3041_v11 = vpack.c.bf16 %v539_v7, %v537_v6 }
 0x108   : > { %2938 = vmatprep.subr.bf16.mxu1 %v2937_v18  ;;  %v454_v18 = vld [vmem:[%s4077_s28 + $0x810] sm:$0xff] }
 0x109   : > { %v2959_v26 = vpack.c.bf16 %v454_v18, %v452_v17  ;;  %v477_v17 = vld [vmem:[%s4077_s28 + $0x8c8] sm:$0xff]  ;;  %v479_v18 = vld [vmem:[%s4077_s28 + $0x8d8] sm:$0xff] }
 0x10e   : > { %2876 = vmatpush1.bf16.xpose.msra.mxu0 %v2875_v28  ;;  %v2961_v28 = vpack.c.bf16 %v459_v23, %v457_v22 }
 0x10f   : > { %2940 = vmatpush1.bf16.xpose.msra.mxu1 %v2939_v29  ;;  %2878 = vmatprep.subr.bf16.mxu0 %v2877_v30  ;;  %v3025_v29 = vpack.c.bf16 %v523_v25, %v521_v24  ;;  %v456_v30 = vld [vmem:[%s4077_s28 + $0x820] sm:$0xff]  ;;  %v2981_v24 = vpack.c.bf16 %v479_v18, %v477_v17  ;;  %v3045_v25 = vpack.c.bf16 %v543_v21, %v541_v20 }
 0x110   : > { %2942 = vmatprep.subr.bf16.mxu1 %v2941_v31  ;;  %v458_v31 = vld [vmem:[%s4077_s28 + $0x830] sm:$0xff] }
 0x111   : > { %v2963_v37 = vpack.c.bf16 %v458_v31, %v456_v30  ;;  %v481_v30 = vld [vmem:[%s4077_s28 + $0x8e8] sm:$0xff]  ;;  %v483_v31 = vld [vmem:[%s4077_s28 + $0x8f8] sm:$0xff] }
 0x116   : > { %2880 = vmatpush1.bf16.xpose.msra.mxu0 %v2879_v40 }
 0x117   : > { %2944 = vmatpush1.bf16.xpose.msra.mxu1 %v2943_v41  ;;  %2882 = vmatprep.subr.bf16.mxu0 %v2881_v42  ;;  %v460_v41 = vld [vmem:[%s4077_s28 + $0x840] sm:$0xff]  ;;  %v462_v42 = vld [vmem:[%s4077_s28 + $0x850] sm:$0xff] }
 0x118   : > { %2946 = vmatprep.subr.bf16.mxu1 %v2945_v43  ;;  %v524_v43 = vld [vmem:[%s4077_s28 + $0xa40] sm:$0xff]  ;;  %v2967_v48 = vpack.c.bf16 %v462_v42, %v460_v41  ;;  %v485_v41 = vld [vmem:[%s4077_s28 + $0x908] sm:$0xff]  ;;  %v487_v42 = vld [vmem:[%s4077_s28 + $0x918] sm:$0xff] }
 0x119   : > { %v3031_v49 = vpack.c.bf16 %v526_v44, %v524_v43  ;;  %v549_v43 = vld [vmem:[%s4077_s28 + $0xb08] sm:$0xff]  ;;  %v551_v44 = vld [vmem:[%s4077_s28 + $0xb18] sm:$0xff]  ;;  %v2989_v46 = vpack.c.bf16 %v487_v42, %v485_v41 }
 0x11a   : > { %v3053_v47 = vpack.c.bf16 %v551_v44, %v549_v43 }
 0x11e   : > { %2884 = vmatpush1.bf16.xpose.msra.mxu0 %v2883_v52  ;;  %v464_v52 = vld [vmem:[%s4077_s28 + $0x860] sm:$0xff] }
 0x11f   : > { %2948 = vmatpush1.bf16.xpose.msra.mxu1 %v2947_v53  ;;  %2886 = vmatprep.subr.bf16.mxu0 %v2885_v54  ;;  %v466_v53 = vld [vmem:[%s4077_s28 + $0x870] sm:$0xff]  ;;  %v528_v54 = vld [vmem:[%s4077_s28 + $0xa60] sm:$0xff] }
 0x120   : > { %2950 = vmatprep.subr.bf16.mxu1 %v2949_v55  ;;  %v530_v55 = vld [vmem:[%s4077_s28 + $0xa70] sm:$0xff]  ;;  %v2971_v60 = vpack.c.bf16 %v466_v53, %v464_v52  ;;  %v489_v52 = vld [vmem:[%s4077_s28 + $0x928] sm:$0xff]  ;;  %v491_v53 = vld [vmem:[%s4077_s28 + $0x938] sm:$0xff] }
 0x121   : > { %v3035_v61 = vpack.c.bf16 %v530_v55, %v528_v54  ;;  %v553_v54 = vld [vmem:[%s4077_s28 + $0xb28] sm:$0xff]  ;;  %v555_v55 = vld [vmem:[%s4077_s28 + $0xb38] sm:$0xff]  ;;  %v2993_v58 = vpack.c.bf16 %v491_v53, %v489_v52 }
 0x122   : > { %v3057_v59 = vpack.c.bf16 %v555_v55, %v553_v54  ;;  %v571_v52 = vld [vmem:[%s4077_s28 + $0xbb8] sm:$0xff] }
 0x126   : > { %2888 = vmatpush1.bf16.xpose.msra.mxu0 %v2887_v0  ;;  %v468_v0 = vld [vmem:[%s4077_s28 + $0x880] sm:$0xff] }
 0x127   : > { %2952 = vmatpush1.bf16.xpose.msra.mxu1 %v2951_v1  ;;  %2890 = vmatprep.subr.bf16.mxu0 %v2889_v2  ;;  %v470_v1 = vld [vmem:[%s4077_s28 + $0x890] sm:$0xff]  ;;  %v532_v2 = vld [vmem:[%s4077_s28 + $0xa80] sm:$0xff] }
 0x128   : > { %2954 = vmatprep.subr.bf16.mxu1 %v2953_v3  ;;  %v534_v3 = vld [vmem:[%s4077_s28 + $0xa90] sm:$0xff]  ;;  %v2975_v8 = vpack.c.bf16 %v470_v1, %v468_v0  ;;  %v493_v0 = vld [vmem:[%s4077_s28 + $0x948] sm:$0xff]  ;;  %v495_v1 = vld [vmem:[%s4077_s28 + $0x958] sm:$0xff] }
 0x129   : > { %v3039_v9 = vpack.c.bf16 %v534_v3, %v532_v2  ;;  %v557_v2 = vld [vmem:[%s4077_s28 + $0xb48] sm:$0xff]  ;;  %v559_v3 = vld [vmem:[%s4077_s28 + $0xb58] sm:$0xff]  ;;  %v2997_v6 = vpack.c.bf16 %v495_v1, %v493_v0 }
 0x12a   : > { %v3061_v7 = vpack.c.bf16 %v559_v3, %v557_v2  ;;  %v509_v0 = vld [vmem:[%s4077_s28 + $0x9c8] sm:$0xff]  ;;  %v511_v1 = vld [vmem:[%s4077_s28 + $0x9d8] sm:$0xff] }
 0x12e   : > { %2892 = vmatpush1.bf16.xpose.msra.mxu0 %v2891_v12  ;;  %v472_v12 = vld [vmem:[%s4077_s28 + $0x8a0] sm:$0xff] }
 0x12f   : > { %2956 = vmatpush1.bf16.xpose.msra.mxu1 %v2955_v13  ;;  %2958 = vmatprep.subr.bf16.mxu0 %v2957_v15  ;;  %v474_v13 = vld [vmem:[%s4077_s28 + $0x8b0] sm:$0xff]  ;;  %v536_v15 = vld [vmem:[%s4077_s28 + $0xaa0] sm:$0xff] }
 0x130   : > { %3022 = vmatprep.subr.bf16.mxu1 %v3021_v16  ;;  %v538_v16 = vld [vmem:[%s4077_s28 + $0xab0] sm:$0xff]  ;;  %v2979_v22 = vpack.c.bf16 %v474_v13, %v472_v12  ;;  %v497_v12 = vld [vmem:[%s4077_s28 + $0x968] sm:$0xff]  ;;  %v499_v13 = vld [vmem:[%s4077_s28 + $0x978] sm:$0xff] }
 0x131   : > { %v3043_v23 = vpack.c.bf16 %v538_v16, %v536_v15  ;;  %v561_v15 = vld [vmem:[%s4077_s28 + $0xb68] sm:$0xff]  ;;  %v563_v16 = vld [vmem:[%s4077_s28 + $0xb78] sm:$0xff]  ;;  %v3001_v20 = vpack.c.bf16 %v499_v13, %v497_v12  ;;  %v508_v13 = vld [vmem:[%s4077_s28 + $0x9c0] sm:$0xff] }
 0x132   : > { %v3065_v21 = vpack.c.bf16 %v563_v16, %v561_v15  ;;  %v510_v15 = vld [vmem:[%s4077_s28 + $0x9d0] sm:$0xff]  ;;  %v572_v16 = vld [vmem:[%s4077_s28 + $0xbc0] sm:$0xff] }
 0x135   : > { %1433 = vmatmul.mubr.f32.vlgmr.msra.gmra.mrb[2].mxu0 %v4236_v19 }
 0x136   : > { %1504 = vmatmul.mubr.f32.vlgmr.msra.gmra.mrb[2].mxu1 %v4236_v19  ;;  %2960 = vmatpush1.bf16.xpose.msra.mxu0 %v2959_v26  ;;  %v527_v19 = vld [vmem:[%s4077_s28 + $0xa58] sm:$0xff]  ;;  %v476_v26 = vld [vmem:[%s4077_s28 + $0x8c0] sm:$0xff] }
 0x137   : > { %3024 = vmatpush1.bf16.xpose.msra.mxu1 %v3023_v27  ;;  %2962 = vmatprep.subr.bf16.mxu0 %v2961_v28  ;;  %v3029_v40 = vpack.c.bf16 %v527_v19, %v525_v36  ;;  %v478_v27 = vld [vmem:[%s4077_s28 + $0x8d0] sm:$0xff]  ;;  %v540_v28 = vld [vmem:[%s4077_s28 + $0xac0] sm:$0xff]  ;;  %v2985_v36 = vpack.c.bf16 %v483_v31, %v481_v30  ;;  %v3049_v19 = vpack.c.bf16 %v547_v33, %v545_v32  ;;  %v565_v33 = vld [vmem:[%s4077_s28 + $0xb88] sm:$0xff] }
 0x138   : > { %3026 = vmatprep.subr.bf16.mxu1 %v3025_v29  ;;  %1574 = vmatprep.mubr.f32.mxu0 %v4138_v14  ;;  %v542_v29 = vld [vmem:[%s4077_s28 + $0xad0] sm:$0xff]  ;;  %v2983_v34 = vpack.c.bf16 %v478_v27, %v476_v26 }
 0x139   : > { %1645 = vmatprep.mubr.f32.mxu1 %v4138_v14  ;;  %v467_v14 = vld [vmem:[%s4077_s28 + $0x878] sm:$0xff]  ;;  %v3047_v35 = vpack.c.bf16 %v542_v29, %v540_v28  ;;  %v562_v27 = vld [vmem:[%s4077_s28 + $0xb70] sm:$0xff]  ;;  %v501_v28 = vld [vmem:[%s4077_s28 + $0x988] sm:$0xff] }
 0x13a   : > { %v2969_v50 = vpack.c.bf16 %v467_v14, %v465_v45  ;;  %v503_v29 = vld [vmem:[%s4077_s28 + $0x998] sm:$0xff] }
 0x13b   : > { %v3005_v41 = vpack.c.bf16 %v503_v29, %v501_v28 }
 0x13e   : > { %2964 = vmatpush1.bf16.xpose.msra.mxu0 %v2963_v37  ;;  %v480_v37 = vld [vmem:[%s4077_s28 + $0x8e0] sm:$0xff] }
 0x13f   : > { %3028 = vmatpush1.bf16.xpose.msra.mxu1 %v3027_v38  ;;  %2966 = vmatprep.subr.bf16.mxu0 %v2965_v39  ;;  %v482_v38 = vld [vmem:[%s4077_s28 + $0x8f0] sm:$0xff]  ;;  %v544_v39 = vld [vmem:[%s4077_s28 + $0xae0] sm:$0xff] }
 0x140   : > { %3030 = vmatprep.subr.bf16.mxu1 %v3029_v40  ;;  %v546_v40 = vld [vmem:[%s4077_s28 + $0xaf0] sm:$0xff]  ;;  %v2987_v45 = vpack.c.bf16 %v482_v38, %v480_v37 }
 0x141   : > { %v3051_v14 = vpack.c.bf16 %v546_v40, %v544_v39 }
 0x146   : > { %2968 = vmatpush1.bf16.xpose.msra.mxu0 %v2967_v48  ;;  %v484_v48 = vld [vmem:[%s4077_s28 + $0x900] sm:$0xff] }
 0x147   : > { %3032 = vmatpush1.bf16.xpose.msra.mxu1 %v3031_v49  ;;  %2970 = vmatprep.subr.bf16.mxu0 %v2969_v50  ;;  %v486_v49 = vld [vmem:[%s4077_s28 + $0x910] sm:$0xff]  ;;  %v548_v50 = vld [vmem:[%s4077_s28 + $0xb00] sm:$0xff] }
 0x148   : > { %3034 = vmatprep.subr.bf16.mxu1 %v3033_v51  ;;  %v550_v51 = vld [vmem:[%s4077_s28 + $0xb10] sm:$0xff]  ;;  %v2991_v56 = vpack.c.bf16 %v486_v49, %v484_v48  ;;  %v505_v49 = vld [vmem:[%s4077_s28 + $0x9a8] sm:$0xff] }
 0x149   : > { %v3055_v57 = vpack.c.bf16 %v550_v51, %v548_v50  ;;  %v566_v48 = vld [vmem:[%s4077_s28 + $0xb90] sm:$0xff]  ;;  %v507_v50 = vld [vmem:[%s4077_s28 + $0x9b8] sm:$0xff]  ;;  %v569_v51 = vld [vmem:[%s4077_s28 + $0xba8] sm:$0xff] }
 0x14a   : > { %v3009_v55 = vpack.c.bf16 %v507_v50, %v505_v49  ;;  %v651_v49 = vld [vmem:[%s4077_s28 + $0xe38] sm:$0xff] }
 0x14e   : > { %2972 = vmatpush1.bf16.xpose.msra.mxu0 %v2971_v60  ;;  %v488_v60 = vld [vmem:[%s4077_s28 + $0x920] sm:$0xff] }
 0x14f   : > { %3036 = vmatpush1.bf16.xpose.msra.mxu1 %v3035_v61  ;;  %2974 = vmatprep.subr.bf16.mxu0 %v2973_v62  ;;  %v490_v61 = vld [vmem:[%s4077_s28 + $0x930] sm:$0xff]  ;;  %v552_v62 = vld [vmem:[%s4077_s28 + $0xb20] sm:$0xff] }
 0x150   : > { %3038 = vmatprep.subr.bf16.mxu1 %v3037_v63  ;;  %v554_v63 = vld [vmem:[%s4077_s28 + $0xb30] sm:$0xff]  ;;  %v2995_v4 = vpack.c.bf16 %v490_v61, %v488_v60  ;;  %v568_v60 = vld [vmem:[%s4077_s28 + $0xba0] sm:$0xff] }
 0x151   : > { %v3059_v5 = vpack.c.bf16 %v554_v63, %v552_v62  ;;  %v570_v63 = vld [vmem:[%s4077_s28 + $0xbb0] sm:$0xff] }
 0x156   : > { %2976 = vmatpush1.bf16.xpose.msra.mxu0 %v2975_v8  ;;  %v492_v8 = vld [vmem:[%s4077_s28 + $0x940] sm:$0xff] }
 0x157   : > { %3040 = vmatpush1.bf16.xpose.msra.mxu1 %v3039_v9  ;;  %2978 = vmatprep.subr.bf16.mxu0 %v2977_v10  ;;  %v494_v9 = vld [vmem:[%s4077_s28 + $0x950] sm:$0xff]  ;;  %v556_v10 = vld [vmem:[%s4077_s28 + $0xb40] sm:$0xff] }
 0x158   : > { %3042 = vmatprep.subr.bf16.mxu1 %v3041_v11  ;;  %v558_v11 = vld [vmem:[%s4077_s28 + $0xb50] sm:$0xff]  ;;  %v2999_v17 = vpack.c.bf16 %v494_v9, %v492_v8 }
 0x159   : > { %v3063_v18 = vpack.c.bf16 %v558_v11, %v556_v10  ;;  %v3075_v10 = vpack.c.bf16 %v570_v63, %v568_v60  ;;  %v3013_v11 = vpack.c.bf16 %v511_v1, %v509_v0  ;;  %v591_v60 = vld [vmem:[%s4077_s28 + $0xc58] sm:$0xff] }
 0x15a   : > { %v655_v63 = vld [vmem:[%s4077_s28 + $0xe58] sm:$0xff] }
 0x15e   : > { %2980 = vmatpush1.bf16.xpose.msra.mxu0 %v2979_v22  ;;  %v4454_v22 = vpop.permute.xlu0 %1223 }
 0x15f   : > { %3044 = vmatpush1.bf16.xpose.msra.mxu1 %v3043_v23  ;;  %2982 = vmatprep.subr.bf16.mxu0 %v2981_v24  ;;  %v496_v23 = vld [vmem:[%s4077_s28 + $0x960] sm:$0xff]  ;;  %v498_v24 = vld [vmem:[%s4077_s28 + $0x970] sm:$0xff] }
 0x160   : > { %3046 = vmatprep.subr.bf16.mxu1 %v3045_v25  ;;  %v560_v25 = vld [vmem:[%s4077_s28 + $0xb60] sm:$0xff]  ;;  %v3003_v37 = vpack.c.bf16 %v498_v24, %v496_v23  ;;  %v579_v23 = vld [vmem:[%s4077_s28 + $0xbf8] sm:$0xff]  ;;  %v3015_v24 = vpack.c.bf16 %v510_v15, %v508_v13 }
 0x161   : > { %v3067_v40 = vpack.c.bf16 %v562_v27, %v560_v25 }
 0x166   : > { %2984 = vmatpush1.bf16.xpose.msra.mxu0 %v2983_v34  ;;  %v567_v34 = vld [vmem:[%s4077_s28 + $0xb98] sm:$0xff] }
 0x167   : > { %3048 = vmatpush1.bf16.xpose.msra.mxu1 %v3047_v35  ;;  %2986 = vmatprep.subr.bf16.mxu0 %v2985_v36  ;;  %v3069_v44 = vpack.c.bf16 %v567_v34, %v565_v33  ;;  %v514_v33 = vld [vmem:[%s4077_s28 + $0x9f0] sm:$0xff]  ;;  %v576_v34 = vld [vmem:[%s4077_s28 + $0xbe0] sm:$0xff] }
 0x168   : > { %3050 = vmatprep.subr.bf16.mxu1 %v3049_v19 }
 0x16e   : > { %2988 = vmatpush1.bf16.xpose.msra.mxu0 %v2987_v45 }
 0x16f   : > { %3052 = vmatpush1.bf16.xpose.msra.mxu1 %v3051_v14  ;;  %2990 = vmatprep.subr.bf16.mxu0 %v2989_v46  ;;  %v500_v14 = vld [vmem:[%s4077_s28 + $0x980] sm:$0xff]  ;;  %v502_v46 = vld [vmem:[%s4077_s28 + $0x990] sm:$0xff] }
 0x170   : > { %3054 = vmatprep.subr.bf16.mxu1 %v3053_v47  ;;  %v564_v47 = vld [vmem:[%s4077_s28 + $0xb80] sm:$0xff]  ;;  %v3007_v53 = vpack.c.bf16 %v502_v46, %v500_v14  ;;  %v646_v14 = vld [vmem:[%s4077_s28 + $0xe10] sm:$0xff]  ;;  %v585_v46 = vld [vmem:[%s4077_s28 + $0xc28] sm:$0xff] }
 0x171   : > { %v3071_v54 = vpack.c.bf16 %v566_v48, %v564_v47  ;;  %v587_v47 = vld [vmem:[%s4077_s28 + $0xc38] sm:$0xff]  ;;  %v649_v48 = vld [vmem:[%s4077_s28 + $0xe28] sm:$0xff] }
 0x176   : > { %2992 = vmatpush1.bf16.xpose.msra.mxu0 %v2991_v56  ;;  %v3073_v56 = vpack.c.bf16 %v571_v52, %v569_v51  ;;  %v3089_v52 = vpack.c.bf16 %v587_v47, %v585_v46  ;;  %v607_v46 = vld [vmem:[%s4077_s28 + $0xcd8] sm:$0xff]  ;;  %v669_v47 = vld [vmem:[%s4077_s28 + $0xec8] sm:$0xff] }
 0x177   : > { %3056 = vmatpush1.bf16.xpose.msra.mxu1 %v3055_v57  ;;  %2994 = vmatprep.subr.bf16.mxu0 %v2993_v58  ;;  %v504_v58 = vld [vmem:[%s4077_s28 + $0x9a0] sm:$0xff] }
 0x178   : > { %3058 = vmatprep.subr.bf16.mxu1 %v3057_v59  ;;  %v506_v59 = vld [vmem:[%s4077_s28 + $0x9b0] sm:$0xff] }
 0x179   : > { %v3011_v8 = vpack.c.bf16 %v506_v59, %v504_v58  ;;  %v650_v58 = vld [vmem:[%s4077_s28 + $0xe30] sm:$0xff]  ;;  %v589_v59 = vld [vmem:[%s4077_s28 + $0xc48] sm:$0xff] }
 0x17e   : > { %2996 = vmatpush1.bf16.xpose.msra.mxu0 %v2995_v4  ;;  %v573_v4 = vld [vmem:[%s4077_s28 + $0xbc8] sm:$0xff] }
 0x17f   : > { %3060 = vmatpush1.bf16.xpose.msra.mxu1 %v3059_v5  ;;  %2998 = vmatprep.subr.bf16.mxu0 %v2997_v6  ;;  %v575_v5 = vld [vmem:[%s4077_s28 + $0xbd8] sm:$0xff] }
 0x180   : > { %3062 = vmatprep.subr.bf16.mxu1 %v3061_v7  ;;  %v3077_v12 = vpack.c.bf16 %v575_v5, %v573_v4  ;;  %v588_v4 = vld [vmem:[%s4077_s28 + $0xc40] sm:$0xff]  ;;  %v590_v5 = vld [vmem:[%s4077_s28 + $0xc50] sm:$0xff] }
 0x186   : > { %3000 = vmatpush1.bf16.xpose.msra.mxu0 %v2999_v17  ;;  %v574_v17 = vld [vmem:[%s4077_s28 + $0xbd0] sm:$0xff] }
 0x187   : > { %3064 = vmatpush1.bf16.xpose.msra.mxu1 %v3063_v18  ;;  %3002 = vmatprep.subr.bf16.mxu0 %v3001_v20  ;;  %v513_v18 = vld [vmem:[%s4077_s28 + $0x9e8] sm:$0xff]  ;;  %v515_v20 = vld [vmem:[%s4077_s28 + $0x9f8] sm:$0xff]  ;;  %v3079_v25 = vpack.c.bf16 %v574_v17, %v572_v16  ;;  %v592_v17 = vld [vmem:[%s4077_s28 + $0xc60] sm:$0xff] }
 0x188   : > { %v1292_v26 = vpop.f32.mrb[0].mxu0  ;;  %3066 = vmatprep.subr.bf16.mxu1 %v3065_v21  ;;  %v577_v21 = vld [vmem:[%s4077_s28 + $0xbe8] sm:$0xff] }
 0x189   : > { %v1363_v30 = vpop.f32.mrb[0].mxu1  ;;  %v1293_v31 = vadd.f32 %v1292_v26, %v4454_v22  ;;  %v1294_v32 = vpop.f32.mrb[1].mxu0  ;;  %v3017_v26 = vpack.c.bf16 %v515_v20, %v513_v18  ;;  %v3081_v28 = vpack.c.bf16 %v579_v23, %v577_v21  ;;  %v594_v18 = vld [vmem:[%s4077_s28 + $0xc70] sm:$0xff]  ;;  %v656_v20 = vld [vmem:[%s4077_s28 + $0xe60] sm:$0xff]  ;;  %v597_v23 = vld [vmem:[%s4077_s28 + $0xc88] sm:$0xff] }
 0x18a   : > { %v1364_v35 = vadd.f32 %v1363_v30, %v4454_v22  ;;  %v1295_v36 = vadd.f32 %v1294_v32, %v4454_v22  ;;  %v1365_v19 = vpop.f32.mrb[1].mxu1  ;;  %v512_v32 = vld [vmem:[%s4077_s28 + $0x9e0] sm:$0xff]  ;;  %v658_v21 = vld [vmem:[%s4077_s28 + $0xe70] sm:$0xff] }
 0x18b   : > { %v2665_v38 = vmul.f32 -1.442695, %v1293_v31  ;;  %v1366_v39 = vadd.f32 %v1365_v19, %v4454_v22  ;;  %v583_v19 = vld [vmem:[%s4077_s28 + $0xc18] sm:$0xff] }
 0x18c   : > { %v2667_v42 = vmul.f32 -1.442695, %v1364_v35  ;;  %v2666_v43 = vmul.f32 -1.442695, %v1295_v36  ;;  %v578_v35 = vld [vmem:[%s4077_s28 + $0xbf0] sm:$0xff]  ;;  %v581_v36 = vld [vmem:[%s4077_s28 + $0xc08] sm:$0xff] }
 0x18d   : > { %3768 = vpow2.f32 %v2665_v38  ;;  %v2668_v45 = vmul.f32 -1.442695, %v1366_v39  ;;  %v647_v38 = vld [vmem:[%s4077_s28 + $0xe18] sm:$0xff]  ;;  %v3019_v39 = vpack.c.bf16 %v514_v33, %v512_v32  ;;  %v598_v32 = vld [vmem:[%s4077_s28 + $0xc90] sm:$0xff]  ;;  %v660_v33 = vld [vmem:[%s4077_s28 + $0xe80] sm:$0xff] }
 0x18e   : > { %3770 = vpow2.f32 %v2667_v42  ;;  %3004 = vmatpush1.bf16.xpose.msra.mxu0 %v3003_v37  ;;  %v645_v37 = vld [vmem:[%s4077_s28 + $0xe08] sm:$0xff] }
 0x18f   : > { %3772 = vpow2.f32 %v2666_v43  ;;  %3068 = vmatpush1.bf16.xpose.msra.mxu1 %v3067_v40  ;;  %3006 = vmatprep.subr.bf16.mxu0 %v3005_v41  ;;  %v3083_v40 = vpack.c.bf16 %v578_v35, %v576_v34  ;;  %v3085_v41 = vpack.c.bf16 %v583_v19, %v581_v36  ;;  %v3149_v42 = vpack.c.bf16 %v647_v38, %v645_v37  ;;  %v580_v43 = vld [vmem:[%s4077_s28 + $0xc00] sm:$0xff]  ;;  %v662_v34 = vld [vmem:[%s4077_s28 + $0xe90] sm:$0xff]  ;;  %v601_v35 = vld [vmem:[%s4077_s28 + $0xca8] sm:$0xff] }
 0x190   : > { %3774 = vpow2.f32 %v2668_v45  ;;  %3070 = vmatprep.subr.bf16.mxu1 %v3069_v44  ;;  %v582_v44 = vld [vmem:[%s4077_s28 + $0xc10] sm:$0xff]  ;;  %v644_v45 = vld [vmem:[%s4077_s28 + $0xe00] sm:$0xff]  ;;  %v603_v36 = vld [vmem:[%s4077_s28 + $0xcb8] sm:$0xff] }
 0x191   : > { %v3087_v50 = vpack.c.bf16 %v582_v44, %v580_v43  ;;  %v3151_v51 = vpack.c.bf16 %v646_v14, %v644_v45  ;;  %v665_v19 = vld [vmem:[%s4077_s28 + $0xea8] sm:$0xff]  ;;  %v667_v37 = vld [vmem:[%s4077_s28 + $0xeb8] sm:$0xff]  ;;  %v602_v43 = vld [vmem:[%s4077_s28 + $0xcb0] sm:$0xff] }
 0x192   : > { %v664_v44 = vld [vmem:[%s4077_s28 + $0xea0] sm:$0xff]  ;;  %v666_v45 = vld [vmem:[%s4077_s28 + $0xeb0] sm:$0xff]  ;;  %v605_v14 = vld [vmem:[%s4077_s28 + $0xcc8] sm:$0xff] }
 0x196   : > { %3008 = vmatpush1.bf16.xpose.msra.mxu0 %v3007_v53  ;;  %v3153_v53 = vpack.c.bf16 %v651_v49, %v649_v48  ;;  %v671_v48 = vld [vmem:[%s4077_s28 + $0xed8] sm:$0xff] }
 0x197   : > { %v3769_v57 = vpop.eup %3768  ;;  %3072 = vmatpush1.bf16.xpose.msra.mxu1 %v3071_v54  ;;  %3010 = vmatprep.subr.bf16.mxu0 %v3009_v55  ;;  %v4523_v54 = vld [vmem:[%s5265_s0] sm:$0xff] }
 0x198   : > { %v3771_v61 = vpop.eup %3770  ;;  %v2458_v62 = vadd.f32 1.0, %v3769_v57  ;;  %3074 = vmatprep.subr.bf16.mxu1 %v3073_v56  ;;  %v584_v55 = vld [vmem:[%s4077_s28 + $0xc20] sm:$0xff]  ;;  %v586_v56 = vld [vmem:[%s4077_s28 + $0xc30] sm:$0xff] }
 0x199   : > { %v3773_v2 = vpop.eup %3772  ;;  %v2460_v3 = vadd.f32 1.0, %v3771_v61  ;;  %v648_v57 = vld [vmem:[%s4077_s28 + $0xe20] sm:$0xff]  ;;  %v4536_v61 = vld [vmem:[%s5265_s0 + $0x8] sm:$0xff]  ;;  %v3091_v0 = vpack.c.bf16 %v586_v56, %v584_v55  ;;  %v606_v55 = vld [vmem:[%s4077_s28 + $0xcd0] sm:$0xff] }
 0x19a   : > { %v3775_v6 = vpop.eup %3774  ;;  %3776 = vrcp.f32 %v2458_v62  ;;  %v2459_v7 = vadd.f32 1.0, %v3773_v2  ;;  %v653_v62 = vld [vmem:[%s4077_s28 + $0xe48] sm:$0xff]  ;;  %v3155_v1 = vpack.c.bf16 %v650_v58, %v648_v57  ;;  %v3093_v2 = vpack.c.bf16 %v591_v60, %v589_v59  ;;  %v668_v56 = vld [vmem:[%s4077_s28 + $0xec0] sm:$0xff]  ;;  %v670_v57 = vld [vmem:[%s4077_s28 + $0xed0] sm:$0xff] }
 0x19b   : > { %3778 = vrcp.f32 %v2460_v3  ;;  %v2461_v9 = vadd.f32 1.0, %v3775_v6  ;;  %v3157_v3 = vpack.c.bf16 %v655_v63, %v653_v62  ;;  %v652_v6 = vld [vmem:[%s4077_s28 + $0xe40] sm:$0xff]  ;;  %v609_v58 = vld [vmem:[%s4077_s28 + $0xce8] sm:$0xff]  ;;  %v611_v59 = vld [vmem:[%s4077_s28 + $0xcf8] sm:$0xff] }
 0x19c   : > { %3780 = vrcp.f32 %v2459_v7  ;;  %v654_v7 = vld [vmem:[%s4077_s28 + $0xe50] sm:$0xff]  ;;  %v673_v60 = vld [vmem:[%s4077_s28 + $0xee8] sm:$0xff]  ;;  %v675_v62 = vld [vmem:[%s4077_s28 + $0xef8] sm:$0xff] }
 0x19d   : > { %3782 = vrcp.f32 %v2461_v9  ;;  %v595_v9 = vld [vmem:[%s4077_s28 + $0xc78] sm:$0xff]  ;;  %v3159_v13 = vpack.c.bf16 %v654_v7, %v652_v6  ;;  %v674_v6 = vld [vmem:[%s4077_s28 + $0xef0] sm:$0xff]  ;;  %v613_v7 = vld [vmem:[%s4077_s28 + $0xd08] sm:$0xff] }
 0x19e   : > { %3012 = vmatpush1.bf16.xpose.msra.mxu0 %v3011_v8  ;;  %v593_v8 = vld [vmem:[%s4077_s28 + $0xc68] sm:$0xff] }
 0x19f   : > { %3076 = vmatpush1.bf16.xpose.msra.mxu1 %v3075_v10  ;;  %3014 = vmatprep.subr.bf16.mxu0 %v3013_v11  ;;  %v657_v10 = vld [vmem:[%s4077_s28 + $0xe68] sm:$0xff]  ;;  %v659_v11 = vld [vmem:[%s4077_s28 + $0xe78] sm:$0xff]  ;;  %v3097_v15 = vpack.c.bf16 %v595_v9, %v593_v8 }
 0x1a0   : > { %3078 = vmatprep.subr.bf16.mxu1 %v3077_v12  ;;  %v3095_v12 = vpack.c.bf16 %v590_v5, %v588_v4  ;;  %v3161_v16 = vpack.c.bf16 %v659_v11, %v657_v10  ;;  %v610_v4 = vld [vmem:[%s4077_s28 + $0xcf0] sm:$0xff]  ;;  %v672_v5 = vld [vmem:[%s4077_s28 + $0xee0] sm:$0xff]  ;;  %v615_v8 = vld [vmem:[%s4077_s28 + $0xd18] sm:$0xff] }
 0x1a1   : > { %v677_v9 = vld [vmem:[%s4077_s28 + $0xf08] sm:$0xff]  ;;  %v679_v10 = vld [vmem:[%s4077_s28 + $0xf18] sm:$0xff] }
 0x1a4   : > { %v3777_v27 = vpop.eup %3776 }
 0x1a5   : > { %v3779_v29 = vpop.eup %3778  ;;  %2554 = vst [vmem:[%s4498_s8] sm:$0xff] %v3777_v27  ;;  %v3099_v27 = vpack.c.bf16 %v594_v18, %v592_v17  ;;  %v614_v17 = vld [vmem:[%s4077_s28 + $0xd10] sm:$0xff]  ;;  %v676_v18 = vld [vmem:[%s4077_s28 + $0xf00] sm:$0xff] }
 0x1a6   : > { %v3781_v30 = vpop.eup %3780  ;;  %2556 = vst [vmem:[%s4498_s8 + $0x10] sm:$0xff] %v3779_v29  ;;  %3016 = vmatpush1.bf16.xpose.msra.mxu0 %v3015_v24  ;;  %v599_v24 = vld [vmem:[%s4077_s28 + $0xc98] sm:$0xff] }
 0x1a7   : > { %v3783_v31 = vpop.eup %3782  ;;  %2555 = vst [vmem:[%s4498_s8 + $0x8] sm:$0xff] %v3781_v30  ;;  %3080 = vmatpush1.bf16.xpose.msra.mxu1 %v3079_v25  ;;  %3018 = vmatprep.subr.bf16.mxu0 %v3017_v26  ;;  %v661_v25 = vld [vmem:[%s4077_s28 + $0xe88] sm:$0xff]  ;;  %v663_v26 = vld [vmem:[%s4077_s28 + $0xe98] sm:$0xff]  ;;  %v3101_v29 = vpack.c.bf16 %v599_v24, %v597_v23 }
 0x1a8   : > { %2557 = vst [vmem:[%s4498_s8 + $0x18] sm:$0xff] %v3783_v31  ;;  %3082 = vmatprep.subr.bf16.mxu1 %v3081_v28  ;;  %v3163_v28 = vpack.c.bf16 %v658_v21, %v656_v20  ;;  %v3165_v30 = vpack.c.bf16 %v663_v26, %v661_v25  ;;  %v596_v31 = vld [vmem:[%s4077_s28 + $0xc80] sm:$0xff]  ;;  %v678_v20 = vld [vmem:[%s4077_s28 + $0xf10] sm:$0xff]  ;;  %v617_v21 = vld [vmem:[%s4077_s28 + $0xd28] sm:$0xff] }
 0x1a9   : > { %v3103_v38 = vpack.c.bf16 %v598_v32, %v596_v31  ;;  %v619_v23 = vld [vmem:[%s4077_s28 + $0xd38] sm:$0xff]  ;;  %v681_v24 = vld [vmem:[%s4077_s28 + $0xf28] sm:$0xff]  ;;  %v618_v31 = vld [vmem:[%s4077_s28 + $0xd30] sm:$0xff] }
 0x1aa   : > { %v683_v25 = vld [vmem:[%s4077_s28 + $0xf38] sm:$0xff]  ;;  %v680_v32 = vld [vmem:[%s4077_s28 + $0xf20] sm:$0xff] }
 0x1ae   : > { %3020 = vmatpush1.bf16.xpose.msra.mxu0 %v3019_v39  ;;  %v3167_v39 = vpack.c.bf16 %v662_v34, %v660_v33  ;;  %v682_v33 = vld [vmem:[%s4077_s28 + $0xf30] sm:$0xff]  ;;  %v621_v34 = vld [vmem:[%s4077_s28 + $0xd48] sm:$0xff] }
 0x1af   : > { %3084 = vmatpush1.bf16.xpose.msra.mxu1 %v3083_v40  ;;  %3086 = vmatprep.subr.bf16.mxu0 %v3085_v41  ;;  %v3105_v40 = vpack.c.bf16 %v603_v36, %v601_v35  ;;  %v3169_v41 = vpack.c.bf16 %v667_v37, %v665_v19  ;;  %v623_v35 = vld [vmem:[%s4077_s28 + $0xd58] sm:$0xff]  ;;  %v685_v36 = vld [vmem:[%s4077_s28 + $0xf48] sm:$0xff] }
 0x1b0   : > { %3150 = vmatprep.subr.bf16.mxu1 %v3149_v42  ;;  %v600_v42 = vld [vmem:[%s4077_s28 + $0xca0] sm:$0xff]  ;;  %v687_v19 = vld [vmem:[%s4077_s28 + $0xf58] sm:$0xff] }
 0x1b1   : > { %v3107_v49 = vpack.c.bf16 %v602_v43, %v600_v42  ;;  %v622_v42 = vld [vmem:[%s4077_s28 + $0xd50] sm:$0xff]  ;;  %v684_v43 = vld [vmem:[%s4077_s28 + $0xf40] sm:$0xff] }
 0x1b5   : > { %1575 = vmatmul.mubr.f32.vlgmr.msra.gmra.mrb[4].mxu0 %v4523_v54 }
 0x1b6   : > { %1646 = vmatmul.mubr.f32.vlgmr.msra.gmra.mrb[4].mxu1 %v4523_v54  ;;  %3088 = vmatpush1.bf16.xpose.msra.mxu0 %v3087_v50  ;;  %v3171_v50 = vpack.c.bf16 %v666_v45, %v664_v44  ;;  %v686_v44 = vld [vmem:[%s4077_s28 + $0xf50] sm:$0xff]  ;;  %v625_v45 = vld [vmem:[%s4077_s28 + $0xd68] sm:$0xff] }
 0x1b7   : > { %3152 = vmatpush1.bf16.xpose.msra.mxu1 %v3151_v51  ;;  %3090 = vmatprep.subr.bf16.mxu0 %v3089_v52  ;;  %v3109_v51 = vpack.c.bf16 %v607_v46, %v605_v14  ;;  %v3173_v52 = vpack.c.bf16 %v671_v48, %v669_v47  ;;  %v627_v14 = vld [vmem:[%s4077_s28 + $0xd78] sm:$0xff]  ;;  %v689_v46 = vld [vmem:[%s4077_s28 + $0xf68] sm:$0xff] }
 0x1b8   : > { %3154 = vmatprep.subr.bf16.mxu1 %v3153_v53  ;;  %1716 = vmatprep.mubr.f32.mxu0 %v4536_v61  ;;  %v604_v53 = vld [vmem:[%s4077_s28 + $0xcc0] sm:$0xff]  ;;  %v691_v47 = vld [vmem:[%s4077_s28 + $0xf78] sm:$0xff] }
 0x1b9   : > { %1787 = vmatprep.mubr.f32.mxu1 %v4536_v61  ;;  %v3111_v63 = vpack.c.bf16 %v606_v55, %v604_v53  ;;  %v626_v53 = vld [vmem:[%s4077_s28 + $0xd70] sm:$0xff]  ;;  %v688_v55 = vld [vmem:[%s4077_s28 + $0xf60] sm:$0xff] }
 0x1be   : > { %3092 = vmatpush1.bf16.xpose.msra.mxu0 %v3091_v0  ;;  %v3175_v0 = vpack.c.bf16 %v670_v57, %v668_v56  ;;  %v690_v57 = vld [vmem:[%s4077_s28 + $0xf70] sm:$0xff] }
 0x1bf   : > { %3156 = vmatpush1.bf16.xpose.msra.mxu1 %v3155_v1  ;;  %3094 = vmatprep.subr.bf16.mxu0 %v3093_v2  ;;  %v3113_v1 = vpack.c.bf16 %v611_v59, %v609_v58  ;;  %v3177_v2 = vpack.c.bf16 %v675_v62, %v673_v60  ;;  %v629_v58 = vld [vmem:[%s4077_s28 + $0xd88] sm:$0xff]  ;;  %v631_v59 = vld [vmem:[%s4077_s28 + $0xd98] sm:$0xff] }
 0x1c0   : > { %3158 = vmatprep.subr.bf16.mxu1 %v3157_v3  ;;  %v608_v3 = vld [vmem:[%s4077_s28 + $0xce0] sm:$0xff] }
 0x1c1   : > { %v3115_v11 = vpack.c.bf16 %v610_v4, %v608_v3 }
 0x1c6   : > { %3096 = vmatpush1.bf16.xpose.msra.mxu0 %v3095_v12  ;;  %v3179_v12 = vpack.c.bf16 %v674_v6, %v672_v5 }
 0x1c7   : > { %3160 = vmatpush1.bf16.xpose.msra.mxu1 %v3159_v13  ;;  %3098 = vmatprep.subr.bf16.mxu0 %v3097_v15  ;;  %v3117_v13 = vpack.c.bf16 %v615_v8, %v613_v7  ;;  %v3181_v15 = vpack.c.bf16 %v679_v10, %v677_v9  ;;  %v3195_v8 = vpack.c.bf16 %v690_v57, %v688_v55  ;;  %v707_v55 = vld [vmem:[%s4077_s28 + $0xff8] sm:$0xff] }
 0x1c8   : > { %3162 = vmatprep.subr.bf16.mxu1 %v3161_v16  ;;  %v612_v16 = vld [vmem:[%s4077_s28 + $0xd00] sm:$0xff]  ;;  %v3133_v9 = vpack.c.bf16 %v631_v59, %v629_v58 }
 0x1c9   : > { %v3119_v26 = vpack.c.bf16 %v614_v17, %v612_v16  ;;  %v630_v16 = vld [vmem:[%s4077_s28 + $0xd90] sm:$0xff]  ;;  %v692_v17 = vld [vmem:[%s4077_s28 + $0xf80] sm:$0xff] }
 0x1ce   : > { %3100 = vmatpush1.bf16.xpose.msra.mxu0 %v3099_v27  ;;  %v3183_v27 = vpack.c.bf16 %v678_v20, %v676_v18  ;;  %v694_v18 = vld [vmem:[%s4077_s28 + $0xf90] sm:$0xff]  ;;  %v633_v20 = vld [vmem:[%s4077_s28 + $0xda8] sm:$0xff] }
 0x1cf   : > { %3164 = vmatpush1.bf16.xpose.msra.mxu1 %v3163_v28  ;;  %3102 = vmatprep.subr.bf16.mxu0 %v3101_v29  ;;  %v3121_v28 = vpack.c.bf16 %v619_v23, %v617_v21  ;;  %v3185_v29 = vpack.c.bf16 %v683_v25, %v681_v24  ;;  %v635_v21 = vld [vmem:[%s4077_s28 + $0xdb8] sm:$0xff]  ;;  %v697_v23 = vld [vmem:[%s4077_s28 + $0xfa8] sm:$0xff] }
 0x1d0   : > { %3166 = vmatprep.subr.bf16.mxu1 %v3165_v30  ;;  %v616_v30 = vld [vmem:[%s4077_s28 + $0xd20] sm:$0xff]  ;;  %v699_v24 = vld [vmem:[%s4077_s28 + $0xfb8] sm:$0xff] }
 0x1d1   : > { %v3123_v37 = vpack.c.bf16 %v618_v31, %v616_v30  ;;  %v632_v30 = vld [vmem:[%s4077_s28 + $0xda0] sm:$0xff]  ;;  %v634_v31 = vld [vmem:[%s4077_s28 + $0xdb0] sm:$0xff] }
 0x1d6   : > { %3104 = vmatpush1.bf16.xpose.msra.mxu0 %v3103_v38  ;;  %v3187_v38 = vpack.c.bf16 %v682_v33, %v680_v32  ;;  %v696_v32 = vld [vmem:[%s4077_s28 + $0xfa0] sm:$0xff] }
 0x1d7   : > { %3168 = vmatpush1.bf16.xpose.msra.mxu1 %v3167_v39  ;;  %3106 = vmatprep.subr.bf16.mxu0 %v3105_v40  ;;  %v3125_v39 = vpack.c.bf16 %v623_v35, %v621_v34  ;;  %v3189_v40 = vpack.c.bf16 %v687_v19, %v685_v36  ;;  %v698_v35 = vld [vmem:[%s4077_s28 + $0xfb0] sm:$0xff]  ;;  %v637_v36 = vld [vmem:[%s4077_s28 + $0xdc8] sm:$0xff]  ;;  %v639_v19 = vld [vmem:[%s4077_s28 + $0xdd8] sm:$0xff] }
 0x1d8   : > { %3170 = vmatprep.subr.bf16.mxu1 %v3169_v41  ;;  %v620_v41 = vld [vmem:[%s4077_s28 + $0xd40] sm:$0xff] }
 0x1d9   : > { %v3127_v48 = vpack.c.bf16 %v622_v42, %v620_v41 }
 0x1de   : > { %3108 = vmatpush1.bf16.xpose.msra.mxu0 %v3107_v49  ;;  %v3191_v49 = vpack.c.bf16 %v686_v44, %v684_v43  ;;  %v3139_v43 = vpack.c.bf16 %v634_v31, %v632_v30  ;;  %v776_v30 = vld [vmem:[%s4077_s28 + $0x1220] sm:$0xff]  ;;  %v778_v31 = vld [vmem:[%s4077_s28 + $0x1230] sm:$0xff] }
 0x1df   : > { %3172 = vmatpush1.bf16.xpose.msra.mxu1 %v3171_v50  ;;  %3110 = vmatprep.subr.bf16.mxu0 %v3109_v51  ;;  %v3129_v50 = vpack.c.bf16 %v627_v14, %v625_v45  ;;  %v3193_v51 = vpack.c.bf16 %v691_v47, %v689_v46  ;;  %v3203_v45 = vpack.c.bf16 %v698_v35, %v696_v32  ;;  %v636_v47 = vld [vmem:[%s4077_s28 + $0xdc0] sm:$0xff]  ;;  %v717_v32 = vld [vmem:[%s4077_s28 + $0x1048] sm:$0xff] }
 0x1e0   : > { %3174 = vmatprep.subr.bf16.mxu1 %v3173_v52  ;;  %v624_v52 = vld [vmem:[%s4077_s28 + $0xd60] sm:$0xff]  ;;  %v3141_v14 = vpack.c.bf16 %v639_v19, %v637_v36  ;;  %v3283_v36 = vpack.c.bf16 %v778_v31, %v776_v30  ;;  %v739_v30 = vld [vmem:[%s4077_s28 + $0x10f8] sm:$0xff]  ;;  %v801_v31 = vld [vmem:[%s4077_s28 + $0x12e8] sm:$0xff] }
 0x1e1   : > { %v3131_v5 = vpack.c.bf16 %v626_v53, %v624_v52  ;;  %v643_v52 = vld [vmem:[%s4077_s28 + $0xdf8] sm:$0xff]  ;;  %v705_v53 = vld [vmem:[%s4077_s28 + $0xfe8] sm:$0xff] }
 0x1e6   : > { %3112 = vmatpush1.bf16.xpose.msra.mxu0 %v3111_v63 }
 0x1e7   : > { %3176 = vmatpush1.bf16.xpose.msra.mxu1 %v3175_v0  ;;  %3114 = vmatprep.subr.bf16.mxu0 %v3113_v1  ;;  %v693_v0 = vld [vmem:[%s4077_s28 + $0xf88] sm:$0xff]  ;;  %v695_v1 = vld [vmem:[%s4077_s28 + $0xf98] sm:$0xff] }
 0x1e8   : > { %3178 = vmatprep.subr.bf16.mxu1 %v3177_v2 }
 0x1ee   : > { %3116 = vmatpush1.bf16.xpose.msra.mxu0 %v3115_v11 }
 0x1ef   : > { %3180 = vmatpush1.bf16.xpose.msra.mxu1 %v3179_v12  ;;  %3118 = vmatprep.subr.bf16.mxu0 %v3117_v13  ;;  %v3197_v12 = vpack.c.bf16 %v695_v1, %v693_v0  ;;  %v640_v1 = vld [vmem:[%s4077_s28 + $0xde0] sm:$0xff] }
 0x1f0   : > { %3182 = vmatprep.subr.bf16.mxu1 %v3181_v15  ;;  %v628_v15 = vld [vmem:[%s4077_s28 + $0xd80] sm:$0xff] }
 0x1f1   : > { %v3135_v25 = vpack.c.bf16 %v630_v16, %v628_v15  ;;  %v710_v15 = vld [vmem:[%s4077_s28 + $0x1010] sm:$0xff]  ;;  %v772_v16 = vld [vmem:[%s4077_s28 + $0x1200] sm:$0xff] }
 0x1f6   : > { %3120 = vmatpush1.bf16.xpose.msra.mxu0 %v3119_v26  ;;  %v3199_v26 = vpack.c.bf16 %v694_v18, %v692_v17  ;;  %v774_v17 = vld [vmem:[%s4077_s28 + $0x1210] sm:$0xff]  ;;  %v713_v18 = vld [vmem:[%s4077_s28 + $0x1028] sm:$0xff] }
 0x1f7   : > { %3184 = vmatpush1.bf16.xpose.msra.mxu1 %v3183_v27  ;;  %3122 = vmatprep.subr.bf16.mxu0 %v3121_v28  ;;  %v3137_v27 = vpack.c.bf16 %v635_v21, %v633_v20  ;;  %v3201_v28 = vpack.c.bf16 %v699_v24, %v697_v23  ;;  %v715_v20 = vld [vmem:[%s4077_s28 + $0x1038] sm:$0xff]  ;;  %v777_v21 = vld [vmem:[%s4077_s28 + $0x1228] sm:$0xff] }
 0x1f8   : > { %3186 = vmatprep.subr.bf16.mxu1 %v3185_v29  ;;  %v779_v23 = vld [vmem:[%s4077_s28 + $0x1238] sm:$0xff] }
 0x1fe   : > { %3124 = vmatpush1.bf16.xpose.msra.mxu0 %v3123_v37 }
 0x1ff   : > { %3188 = vmatpush1.bf16.xpose.msra.mxu1 %v3187_v38  ;;  %3126 = vmatprep.subr.bf16.mxu0 %v3125_v39  ;;  %v701_v39 = vld [vmem:[%s4077_s28 + $0xfc8] sm:$0xff] }
 0x200   : > { %3190 = vmatprep.subr.bf16.mxu1 %v3189_v40  ;;  %v703_v40 = vld [vmem:[%s4077_s28 + $0xfd8] sm:$0xff] }
 0x201   : > { %v3205_v46 = vpack.c.bf16 %v703_v40, %v701_v39  ;;  %v718_v39 = vld [vmem:[%s4077_s28 + $0x1050] sm:$0xff]  ;;  %v780_v40 = vld [vmem:[%s4077_s28 + $0x1240] sm:$0xff] }
 0x206   : > { %3128 = vmatpush1.bf16.xpose.msra.mxu0 %v3127_v48  ;;  %v638_v48 = vld [vmem:[%s4077_s28 + $0xdd0] sm:$0xff] }
 0x207   : > { %3192 = vmatpush1.bf16.xpose.msra.mxu1 %v3191_v49  ;;  %3130 = vmatprep.subr.bf16.mxu0 %v3129_v50  ;;  %v700_v49 = vld [vmem:[%s4077_s28 + $0xfc0] sm:$0xff]  ;;  %v702_v50 = vld [vmem:[%s4077_s28 + $0xfd0] sm:$0xff] }
 0x208   : > { %v1434_v56 = vpop.f32.mrb[2].mxu0  ;;  %3194 = vmatprep.subr.bf16.mxu1 %v3193_v51  ;;  %v641_v51 = vld [vmem:[%s4077_s28 + $0xde8] sm:$0xff]  ;;  %v3207_v57 = vpack.c.bf16 %v702_v50, %v700_v49  ;;  %v722_v49 = vld [vmem:[%s4077_s28 + $0x1070] sm:$0xff]  ;;  %v784_v50 = vld [vmem:[%s4077_s28 + $0x1260] sm:$0xff] }
 0x209   : > { %v1435_v60 = vadd.f32 %v1434_v56, %v4454_v22  ;;  %v1505_v62 = vpop.f32.mrb[2].mxu1  ;;  %v1436_v63 = vpop.f32.mrb[3].mxu0  ;;  %v3143_v56 = vpack.c.bf16 %v638_v48, %v636_v47  ;;  %v3145_v58 = vpack.c.bf16 %v643_v52, %v641_v51  ;;  %v720_v48 = vld [vmem:[%s4077_s28 + $0x1060] sm:$0xff]  ;;  %v786_v51 = vld [vmem:[%s4077_s28 + $0x1270] sm:$0xff]  ;;  %v725_v52 = vld [vmem:[%s4077_s28 + $0x1088] sm:$0xff] }
 0x20a   : > { %v1506_v2 = vadd.f32 %v1505_v62, %v4454_v22  ;;  %v1437_v3 = vadd.f32 %v1436_v63, %v4454_v22  ;;  %v1507_v4 = vpop.f32.mrb[3].mxu1 }
 0x20b   : > { %v2669_v6 = vmul.f32 -1.442695, %v1435_v60  ;;  %v1508_v7 = vadd.f32 %v1507_v4, %v4454_v22  ;;  %v3209_v60 = vpack.c.bf16 %v707_v55, %v705_v53  ;;  %v706_v4 = vld [vmem:[%s4077_s28 + $0xff0] sm:$0xff]  ;;  %v727_v53 = vld [vmem:[%s4077_s28 + $0x1098] sm:$0xff]  ;;  %v789_v55 = vld [vmem:[%s4077_s28 + $0x1288] sm:$0xff] }
 0x20c   : > { %v2671_v10 = vmul.f32 -1.442695, %v1506_v2  ;;  %v2670_v11 = vmul.f32 -1.442695, %v1437_v3  ;;  %v642_v2 = vld [vmem:[%s4077_s28 + $0xdf0] sm:$0xff]  ;;  %v704_v3 = vld [vmem:[%s4077_s28 + $0xfe0] sm:$0xff] }
 0x20d   : > { %3784 = vpow2.f32 %v2669_v6  ;;  %v2672_v13 = vmul.f32 -1.442695, %v1508_v7  ;;  %v711_v6 = vld [vmem:[%s4077_s28 + $0x1018] sm:$0xff]  ;;  %v773_v7 = vld [vmem:[%s4077_s28 + $0x1208] sm:$0xff] }
 0x20e   : > { %3786 = vpow2.f32 %v2671_v10  ;;  %3132 = vmatpush1.bf16.xpose.msra.mxu0 %v3131_v5  ;;  %v709_v5 = vld [vmem:[%s4077_s28 + $0x1008] sm:$0xff]  ;;  %v3211_v10 = vpack.c.bf16 %v706_v4, %v704_v3  ;;  %v731_v3 = vld [vmem:[%s4077_s28 + $0x10b8] sm:$0xff] }
 0x20f   : > { %3788 = vpow2.f32 %v2670_v11  ;;  %3196 = vmatpush1.bf16.xpose.msra.mxu1 %v3195_v8  ;;  %3134 = vmatprep.subr.bf16.mxu0 %v3133_v9  ;;  %v775_v8 = vld [vmem:[%s4077_s28 + $0x1218] sm:$0xff]  ;;  %v3147_v9 = vpack.c.bf16 %v642_v2, %v640_v1  ;;  %v3213_v11 = vpack.c.bf16 %v711_v6, %v709_v5  ;;  %v790_v1 = vld [vmem:[%s4077_s28 + $0x1290] sm:$0xff]  ;;  %v729_v2 = vld [vmem:[%s4077_s28 + $0x10a8] sm:$0xff] }
 0x210   : > { %3790 = vpow2.f32 %v2672_v13  ;;  %3198 = vmatprep.subr.bf16.mxu1 %v3197_v12  ;;  %v3277_v12 = vpack.c.bf16 %v775_v8, %v773_v7  ;;  %v708_v13 = vld [vmem:[%s4077_s28 + $0x1000] sm:$0xff]  ;;  %v793_v4 = vld [vmem:[%s4077_s28 + $0x12a8] sm:$0xff]  ;;  %v795_v5 = vld [vmem:[%s4077_s28 + $0x12b8] sm:$0xff]  ;;  %v3233_v8 = vpack.c.bf16 %v731_v3, %v729_v2 }
 0x211   : > { %v3215_v24 = vpack.c.bf16 %v710_v15, %v708_v13  ;;  %v794_v13 = vld [vmem:[%s4077_s28 + $0x12b0] sm:$0xff]  ;;  %v733_v15 = vld [vmem:[%s4077_s28 + $0x10c8] sm:$0xff]  ;;  %v815_v2 = vld [vmem:[%s4077_s28 + $0x1358] sm:$0xff] }
 0x216   : > { %3136 = vmatpush1.bf16.xpose.msra.mxu0 %v3135_v25  ;;  %v3279_v25 = vpack.c.bf16 %v774_v17, %v772_v16  ;;  %v735_v16 = vld [vmem:[%s4077_s28 + $0x10d8] sm:$0xff]  ;;  %v797_v17 = vld [vmem:[%s4077_s28 + $0x12c8] sm:$0xff] }
 0x217   : > { %v3785_v29 = vpop.eup %3784  ;;  %3200 = vmatpush1.bf16.xpose.msra.mxu1 %v3199_v26  ;;  %3138 = vmatprep.subr.bf16.mxu0 %v3137_v27  ;;  %v3217_v26 = vpack.c.bf16 %v715_v20, %v713_v18  ;;  %v3281_v27 = vpack.c.bf16 %v779_v23, %v777_v21  ;;  %v799_v18 = vld [vmem:[%s4077_s28 + $0x12d8] sm:$0xff]  ;;  %v3237_v23 = vpack.c.bf16 %v735_v16, %v733_v15 }
 0x218   : > { %v3787_v33 = vpop.eup %3786  ;;  %v2462_v34 = vadd.f32 1.0, %v3785_v29  ;;  %3202 = vmatprep.subr.bf16.mxu1 %v3201_v28  ;;  %v712_v28 = vld [vmem:[%s4077_s28 + $0x1020] sm:$0xff]  ;;  %v714_v29 = vld [vmem:[%s4077_s28 + $0x1030] sm:$0xff]  ;;  %v819_v15 = vld [vmem:[%s4077_s28 + $0x1378] sm:$0xff] }
 0x219   : > { %v3789_v37 = vpop.eup %3788  ;;  %v2464_v38 = vadd.f32 1.0, %v3787_v33  ;;  %v719_v33 = vld [vmem:[%s4077_s28 + $0x1058] sm:$0xff]  ;;  %v3219_v35 = vpack.c.bf16 %v714_v29, %v712_v28  ;;  %v798_v28 = vld [vmem:[%s4077_s28 + $0x12d0] sm:$0xff]  ;;  %v737_v29 = vld [vmem:[%s4077_s28 + $0x10e8] sm:$0xff] }
 0x21a   : > { %v3791_v41 = vpop.eup %3790  ;;  %3792 = vrcp.f32 %v2462_v34  ;;  %v2463_v42 = vadd.f32 1.0, %v3789_v37  ;;  %v781_v34 = vld [vmem:[%s4077_s28 + $0x1248] sm:$0xff]  ;;  %v3221_v19 = vpack.c.bf16 %v719_v33, %v717_v32  ;;  %v803_v32 = vld [vmem:[%s4077_s28 + $0x12f8] sm:$0xff] }
 0x21b   : > { %3794 = vrcp.f32 %v2464_v38  ;;  %v2465_v44 = vadd.f32 1.0, %v3791_v41  ;;  %v716_v38 = vld [vmem:[%s4077_s28 + $0x1040] sm:$0xff]  ;;  %v782_v41 = vld [vmem:[%s4077_s28 + $0x1250] sm:$0xff] }
 0x21c   : > { %3796 = vrcp.f32 %v2463_v42  ;;  %v721_v42 = vld [vmem:[%s4077_s28 + $0x1068] sm:$0xff] }
 0x21d   : > { %3798 = vrcp.f32 %v2465_v44  ;;  %v787_v44 = vld [vmem:[%s4077_s28 + $0x1278] sm:$0xff] }
 0x21e   : > { %3140 = vmatpush1.bf16.xpose.msra.mxu0 %v3139_v43  ;;  %v785_v43 = vld [vmem:[%s4077_s28 + $0x1268] sm:$0xff] }
 0x21f   : > { %3204 = vmatpush1.bf16.xpose.msra.mxu1 %v3203_v45  ;;  %3142 = vmatprep.subr.bf16.mxu0 %v3141_v14  ;;  %v3223_v45 = vpack.c.bf16 %v718_v39, %v716_v38  ;;  %v3287_v14 = vpack.c.bf16 %v782_v41, %v780_v40  ;;  %v3289_v47 = vpack.c.bf16 %v787_v44, %v785_v43  ;;  %v802_v38 = vld [vmem:[%s4077_s28 + $0x12f0] sm:$0xff]  ;;  %v741_v39 = vld [vmem:[%s4077_s28 + $0x1108] sm:$0xff]  ;;  %v743_v40 = vld [vmem:[%s4077_s28 + $0x1118] sm:$0xff] }
 0x220   : > { %3206 = vmatprep.subr.bf16.mxu1 %v3205_v46  ;;  %v805_v41 = vld [vmem:[%s4077_s28 + $0x1308] sm:$0xff]  ;;  %v3245_v44 = vpack.c.bf16 %v743_v40, %v741_v39 }
 0x224   : > { %v3793_v59 = vpop.eup %3792 }
 0x225   : > { %v3795_v62 = vpop.eup %3794  ;;  %2558 = vst [vmem:[%s4498_s8 + $0x20] sm:$0xff] %v3793_v59  ;;  %v3229_v59 = vpack.c.bf16 %v727_v53, %v725_v52  ;;  %v811_v52 = vld [vmem:[%s4077_s28 + $0x1338] sm:$0xff] }
 0x226   : > { %v3797_v63 = vpop.eup %3796  ;;  %2560 = vst [vmem:[%s4498_s8 + $0x30] sm:$0xff] %v3795_v62  ;;  %3144 = vmatpush1.bf16.xpose.msra.mxu0 %v3143_v56  ;;  %v791_v56 = vld [vmem:[%s4077_s28 + $0x1298] sm:$0xff]  ;;  %v724_v62 = vld [vmem:[%s4077_s28 + $0x1080] sm:$0xff] }
 0x227   : > { %v3799_v0 = vpop.eup %3798  ;;  %2559 = vst [vmem:[%s4498_s8 + $0x28] sm:$0xff] %v3797_v63  ;;  %3208 = vmatpush1.bf16.xpose.msra.mxu1 %v3207_v57  ;;  %3146 = vmatprep.subr.bf16.mxu0 %v3145_v58  ;;  %v3227_v57 = vpack.c.bf16 %v722_v49, %v720_v48  ;;  %v3291_v58 = vpack.c.bf16 %v786_v51, %v784_v50  ;;  %v726_v63 = vld [vmem:[%s4077_s28 + $0x1090] sm:$0xff]  ;;  %v745_v49 = vld [vmem:[%s4077_s28 + $0x1128] sm:$0xff]  ;;  %v747_v50 = vld [vmem:[%s4077_s28 + $0x1138] sm:$0xff] }
 0x228   : > { %2561 = vst [vmem:[%s4498_s8 + $0x38] sm:$0xff] %v3799_v0  ;;  %3210 = vmatprep.subr.bf16.mxu1 %v3209_v60  ;;  %v3293_v60 = vpack.c.bf16 %v791_v56, %v789_v55  ;;  %v788_v0 = vld [vmem:[%s4077_s28 + $0x1280] sm:$0xff]  ;;  %v3231_v6 = vpack.c.bf16 %v726_v63, %v724_v62  ;;  %v806_v48 = vld [vmem:[%s4077_s28 + $0x1310] sm:$0xff]  ;;  %v809_v51 = vld [vmem:[%s4077_s28 + $0x1328] sm:$0xff]  ;;  %v3249_v56 = vpack.c.bf16 %v747_v50, %v745_v49 }
 0x229   : > { %v3295_v7 = vpack.c.bf16 %v790_v1, %v788_v0  ;;  %v810_v62 = vld [vmem:[%s4077_s28 + $0x1330] sm:$0xff]  ;;  %v749_v63 = vld [vmem:[%s4077_s28 + $0x1148] sm:$0xff]  ;;  %v751_v0 = vld [vmem:[%s4077_s28 + $0x1158] sm:$0xff] }
 0x22a   : > { %v813_v1 = vld [vmem:[%s4077_s28 + $0x1348] sm:$0xff]  ;;  %v827_v49 = vld [vmem:[%s4077_s28 + $0x13b8] sm:$0xff] }
 0x22e   : > { %3148 = vmatpush1.bf16.xpose.msra.mxu0 %v3147_v9  ;;  %v3297_v9 = vpack.c.bf16 %v795_v5, %v793_v4  ;;  %v3253_v5 = vpack.c.bf16 %v751_v0, %v749_v63  ;;  %v765_v63 = vld [vmem:[%s4077_s28 + $0x11c8] sm:$0xff]  ;;  %v767_v0 = vld [vmem:[%s4077_s28 + $0x11d8] sm:$0xff] }
 0x22f   : > { %3212 = vmatpush1.bf16.xpose.msra.mxu1 %v3211_v10  ;;  %3214 = vmatprep.subr.bf16.mxu0 %v3213_v11  ;;  %v728_v10 = vld [vmem:[%s4077_s28 + $0x10a0] sm:$0xff]  ;;  %v730_v11 = vld [vmem:[%s4077_s28 + $0x10b0] sm:$0xff] }
 0x230   : > { %3278 = vmatprep.subr.bf16.mxu1 %v3277_v12  ;;  %v792_v12 = vld [vmem:[%s4077_s28 + $0x12a0] sm:$0xff]  ;;  %v3235_v20 = vpack.c.bf16 %v730_v11, %v728_v10  ;;  %v814_v10 = vld [vmem:[%s4077_s28 + $0x1350] sm:$0xff]  ;;  %v753_v11 = vld [vmem:[%s4077_s28 + $0x1168] sm:$0xff] }
 0x231   : > { %v3299_v21 = vpack.c.bf16 %v794_v13, %v792_v12  ;;  %v755_v12 = vld [vmem:[%s4077_s28 + $0x1178] sm:$0xff]  ;;  %v817_v13 = vld [vmem:[%s4077_s28 + $0x1368] sm:$0xff] }
 0x235   : > { %1717 = vmatmul.mubr.f32.vlgmr.msra.gmra.mrb[6].mxu0 %v4523_v54 }
 0x236   : > { %1788 = vmatmul.mubr.f32.vlgmr.msra.gmra.mrb[6].mxu1 %v4523_v54  ;;  %3216 = vmatpush1.bf16.xpose.msra.mxu0 %v3215_v24  ;;  %v783_v54 = vld [vmem:[%s4077_s28 + $0x1258] sm:$0xff]  ;;  %v3301_v24 = vpack.c.bf16 %v799_v18, %v797_v17  ;;  %v3257_v18 = vpack.c.bf16 %v755_v12, %v753_v11  ;;  %v764_v12 = vld [vmem:[%s4077_s28 + $0x11c0] sm:$0xff] }
 0x237   : > { %3280 = vmatpush1.bf16.xpose.msra.mxu1 %v3279_v25  ;;  %3218 = vmatprep.subr.bf16.mxu0 %v3217_v26  ;;  %v3285_v37 = vpack.c.bf16 %v783_v54, %v781_v34  ;;  %v732_v25 = vld [vmem:[%s4077_s28 + $0x10c0] sm:$0xff]  ;;  %v734_v26 = vld [vmem:[%s4077_s28 + $0x10d0] sm:$0xff]  ;;  %v3241_v54 = vpack.c.bf16 %v739_v30, %v737_v29 }
 0x238   : > { %3282 = vmatprep.subr.bf16.mxu1 %v3281_v27  ;;  %1858 = vmatprep.mubr.f32.mxu0 %v4536_v61  ;;  %v796_v27 = vld [vmem:[%s4077_s28 + $0x12c0] sm:$0xff]  ;;  %v3239_v33 = vpack.c.bf16 %v734_v26, %v732_v25  ;;  %v818_v26 = vld [vmem:[%s4077_s28 + $0x1370] sm:$0xff] }
 0x239   : > { %1929 = vmatprep.mubr.f32.mxu1 %v4536_v61  ;;  %v723_v61 = vld [vmem:[%s4077_s28 + $0x1078] sm:$0xff]  ;;  %v3303_v34 = vpack.c.bf16 %v798_v28, %v796_v27  ;;  %v757_v27 = vld [vmem:[%s4077_s28 + $0x1188] sm:$0xff] }
 0x23a   : > { %v3225_v46 = vpack.c.bf16 %v723_v61, %v721_v42  ;;  %v807_v42 = vld [vmem:[%s4077_s28 + $0x1318] sm:$0xff] }
 0x23b   : > { %v759_v28 = vld [vmem:[%s4077_s28 + $0x1198] sm:$0xff] }
 0x23c   : > { %v3261_v39 = vpack.c.bf16 %v759_v28, %v757_v27 }
 0x23e   : > { %3220 = vmatpush1.bf16.xpose.msra.mxu0 %v3219_v35  ;;  %v3305_v35 = vpack.c.bf16 %v803_v32, %v801_v31  ;;  %v821_v32 = vld [vmem:[%s4077_s28 + $0x1388] sm:$0xff] }
 0x23f   : > { %3284 = vmatpush1.bf16.xpose.msra.mxu1 %v3283_v36  ;;  %3222 = vmatprep.subr.bf16.mxu0 %v3221_v19  ;;  %v736_v36 = vld [vmem:[%s4077_s28 + $0x10e0] sm:$0xff]  ;;  %v738_v19 = vld [vmem:[%s4077_s28 + $0x10f0] sm:$0xff] }
 0x240   : > { %3286 = vmatprep.subr.bf16.mxu1 %v3285_v37  ;;  %v800_v37 = vld [vmem:[%s4077_s28 + $0x12e0] sm:$0xff]  ;;  %v3243_v61 = vpack.c.bf16 %v738_v19, %v736_v36 }
 0x241   : > { %v3307_v43 = vpack.c.bf16 %v802_v38, %v800_v37 }
 0x246   : > { %3224 = vmatpush1.bf16.xpose.msra.mxu0 %v3223_v45  ;;  %v3309_v45 = vpack.c.bf16 %v807_v42, %v805_v41 }
 0x247   : > { %3288 = vmatpush1.bf16.xpose.msra.mxu1 %v3287_v14  ;;  %3226 = vmatprep.subr.bf16.mxu0 %v3225_v46  ;;  %v740_v14 = vld [vmem:[%s4077_s28 + $0x1100] sm:$0xff]  ;;  %v742_v46 = vld [vmem:[%s4077_s28 + $0x1110] sm:$0xff] }
 0x248   : > { %3290 = vmatprep.subr.bf16.mxu1 %v3289_v47  ;;  %v804_v47 = vld [vmem:[%s4077_s28 + $0x1300] sm:$0xff]  ;;  %v3247_v53 = vpack.c.bf16 %v742_v46, %v740_v14  ;;  %v822_v14 = vld [vmem:[%s4077_s28 + $0x1390] sm:$0xff]  ;;  %v761_v46 = vld [vmem:[%s4077_s28 + $0x11a8] sm:$0xff] }
 0x249   : > { %v3311_v55 = vpack.c.bf16 %v806_v48, %v804_v47  ;;  %v763_v47 = vld [vmem:[%s4077_s28 + $0x11b8] sm:$0xff]  ;;  %v825_v48 = vld [vmem:[%s4077_s28 + $0x13a8] sm:$0xff] }
 0x24e   : > { %3228 = vmatpush1.bf16.xpose.msra.mxu0 %v3227_v57  ;;  %v3313_v57 = vpack.c.bf16 %v811_v52, %v809_v51  ;;  %v3265_v52 = vpack.c.bf16 %v763_v47, %v761_v46  ;;  %v907_v46 = vld [vmem:[%s4077_s28 + $0x1638] sm:$0xff] }
 0x24f   : > { %3292 = vmatpush1.bf16.xpose.msra.mxu1 %v3291_v58  ;;  %3230 = vmatprep.subr.bf16.mxu0 %v3229_v59  ;;  %v744_v58 = vld [vmem:[%s4077_s28 + $0x1120] sm:$0xff]  ;;  %v746_v59 = vld [vmem:[%s4077_s28 + $0x1130] sm:$0xff] }
 0x250   : > { %3294 = vmatprep.subr.bf16.mxu1 %v3293_v60  ;;  %v808_v60 = vld [vmem:[%s4077_s28 + $0x1320] sm:$0xff]  ;;  %v3251_v3 = vpack.c.bf16 %v746_v59, %v744_v58 }
 0x251   : > { %v3315_v4 = vpack.c.bf16 %v810_v62, %v808_v60  ;;  %v824_v58 = vld [vmem:[%s4077_s28 + $0x13a0] sm:$0xff]  ;;  %v826_v62 = vld [vmem:[%s4077_s28 + $0x13b0] sm:$0xff] }
 0x256   : > { %3232 = vmatpush1.bf16.xpose.msra.mxu0 %v3231_v6  ;;  %v3317_v6 = vpack.c.bf16 %v815_v2, %v813_v1 }
 0x257   : > { %3296 = vmatpush1.bf16.xpose.msra.mxu1 %v3295_v7  ;;  %3234 = vmatprep.subr.bf16.mxu0 %v3233_v8  ;;  %v748_v7 = vld [vmem:[%s4077_s28 + $0x1140] sm:$0xff]  ;;  %v750_v8 = vld [vmem:[%s4077_s28 + $0x1150] sm:$0xff] }
 0x258   : > { %3298 = vmatprep.subr.bf16.mxu1 %v3297_v9  ;;  %v812_v9 = vld [vmem:[%s4077_s28 + $0x1340] sm:$0xff]  ;;  %v3255_v16 = vpack.c.bf16 %v750_v8, %v748_v7 }
 0x259   : > { %v3319_v17 = vpack.c.bf16 %v814_v10, %v812_v9  ;;  %v3331_v9 = vpack.c.bf16 %v826_v62, %v824_v58  ;;  %v3269_v10 = vpack.c.bf16 %v767_v0, %v765_v63  ;;  %v847_v58 = vld [vmem:[%s4077_s28 + $0x1458] sm:$0xff] }
 0x25a   : > { %v911_v62 = vld [vmem:[%s4077_s28 + $0x1658] sm:$0xff] }
 0x25e   : > { %3236 = vmatpush1.bf16.xpose.msra.mxu0 %v3235_v20  ;;  %v3321_v20 = vpack.c.bf16 %v819_v15, %v817_v13  ;;  %v766_v13 = vld [vmem:[%s4077_s28 + $0x11d0] sm:$0xff]  ;;  %v828_v15 = vld [vmem:[%s4077_s28 + $0x13c0] sm:$0xff] }
 0x25f   : > { %3300 = vmatpush1.bf16.xpose.msra.mxu1 %v3299_v21  ;;  %3238 = vmatprep.subr.bf16.mxu0 %v3237_v23  ;;  %v752_v21 = vld [vmem:[%s4077_s28 + $0x1160] sm:$0xff]  ;;  %v754_v23 = vld [vmem:[%s4077_s28 + $0x1170] sm:$0xff] }
 0x260   : > { %3302 = vmatprep.subr.bf16.mxu1 %v3301_v24  ;;  %v816_v24 = vld [vmem:[%s4077_s28 + $0x1360] sm:$0xff]  ;;  %v3259_v36 = vpack.c.bf16 %v754_v23, %v752_v21  ;;  %v835_v21 = vld [vmem:[%s4077_s28 + $0x13f8] sm:$0xff]  ;;  %v3271_v23 = vpack.c.bf16 %v766_v13, %v764_v12 }
 0x261   : > { %v3323_v38 = vpack.c.bf16 %v818_v26, %v816_v24 }
 0x266   : > { %3240 = vmatpush1.bf16.xpose.msra.mxu0 %v3239_v33  ;;  %v823_v33 = vld [vmem:[%s4077_s28 + $0x1398] sm:$0xff] }
 0x267   : > { %3304 = vmatpush1.bf16.xpose.msra.mxu1 %v3303_v34  ;;  %3242 = vmatprep.subr.bf16.mxu0 %v3241_v54  ;;  %v3325_v42 = vpack.c.bf16 %v823_v33, %v821_v32  ;;  %v770_v32 = vld [vmem:[%s4077_s28 + $0x11f0] sm:$0xff]  ;;  %v832_v33 = vld [vmem:[%s4077_s28 + $0x13e0] sm:$0xff] }
 0x268   : > { %3306 = vmatprep.subr.bf16.mxu1 %v3305_v35 }
 0x26e   : > { %3244 = vmatpush1.bf16.xpose.msra.mxu0 %v3243_v61 }
 0x26f   : > { %3308 = vmatpush1.bf16.xpose.msra.mxu1 %v3307_v43  ;;  %3246 = vmatprep.subr.bf16.mxu0 %v3245_v44  ;;  %v756_v43 = vld [vmem:[%s4077_s28 + $0x1180] sm:$0xff]  ;;  %v758_v44 = vld [vmem:[%s4077_s28 + $0x1190] sm:$0xff] }
 0x270   : > { %3310 = vmatprep.subr.bf16.mxu1 %v3309_v45  ;;  %v820_v45 = vld [vmem:[%s4077_s28 + $0x1380] sm:$0xff]  ;;  %v3263_v50 = vpack.c.bf16 %v758_v44, %v756_v43  ;;  %v902_v43 = vld [vmem:[%s4077_s28 + $0x1610] sm:$0xff]  ;;  %v841_v44 = vld [vmem:[%s4077_s28 + $0x1428] sm:$0xff] }
 0x271   : > { %v3327_v51 = vpack.c.bf16 %v822_v14, %v820_v45  ;;  %v843_v45 = vld [vmem:[%s4077_s28 + $0x1438] sm:$0xff]  ;;  %v905_v14 = vld [vmem:[%s4077_s28 + $0x1628] sm:$0xff] }
 0x276   : > { %3248 = vmatpush1.bf16.xpose.msra.mxu0 %v3247_v53  ;;  %v3329_v53 = vpack.c.bf16 %v827_v49, %v825_v48  ;;  %v3345_v49 = vpack.c.bf16 %v843_v45, %v841_v44  ;;  %v863_v44 = vld [vmem:[%s4077_s28 + $0x14d8] sm:$0xff]  ;;  %v925_v45 = vld [vmem:[%s4077_s28 + $0x16c8] sm:$0xff] }
 0x277   : > { %3312 = vmatpush1.bf16.xpose.msra.mxu1 %v3311_v55  ;;  %3250 = vmatprep.subr.bf16.mxu0 %v3249_v56  ;;  %v760_v56 = vld [vmem:[%s4077_s28 + $0x11a0] sm:$0xff] }
 0x278   : > { %3314 = vmatprep.subr.bf16.mxu1 %v3313_v57  ;;  %v762_v57 = vld [vmem:[%s4077_s28 + $0x11b0] sm:$0xff] }
 0x279   : > { %v3267_v7 = vpack.c.bf16 %v762_v57, %v760_v56  ;;  %v906_v56 = vld [vmem:[%s4077_s28 + $0x1630] sm:$0xff]  ;;  %v845_v57 = vld [vmem:[%s4077_s28 + $0x1448] sm:$0xff] }
 0x27e   : > { %3252 = vmatpush1.bf16.xpose.msra.mxu0 %v3251_v3  ;;  %v829_v3 = vld [vmem:[%s4077_s28 + $0x13c8] sm:$0xff] }
 0x27f   : > { %3316 = vmatpush1.bf16.xpose.msra.mxu1 %v3315_v4  ;;  %3254 = vmatprep.subr.bf16.mxu0 %v3253_v5  ;;  %v831_v4 = vld [vmem:[%s4077_s28 + $0x13d8] sm:$0xff] }
 0x280   : > { %3318 = vmatprep.subr.bf16.mxu1 %v3317_v6  ;;  %v3333_v11 = vpack.c.bf16 %v831_v4, %v829_v3  ;;  %v844_v3 = vld [vmem:[%s4077_s28 + $0x1440] sm:$0xff]  ;;  %v846_v4 = vld [vmem:[%s4077_s28 + $0x1450] sm:$0xff] }
 0x286   : > { %3256 = vmatpush1.bf16.xpose.msra.mxu0 %v3255_v16  ;;  %v830_v16 = vld [vmem:[%s4077_s28 + $0x13d0] sm:$0xff] }
 0x287   : > { %3320 = vmatpush1.bf16.xpose.msra.mxu1 %v3319_v17  ;;  %3258 = vmatprep.subr.bf16.mxu0 %v3257_v18  ;;  %v769_v17 = vld [vmem:[%s4077_s28 + $0x11e8] sm:$0xff]  ;;  %v771_v18 = vld [vmem:[%s4077_s28 + $0x11f8] sm:$0xff]  ;;  %v3335_v24 = vpack.c.bf16 %v830_v16, %v828_v15  ;;  %v848_v16 = vld [vmem:[%s4077_s28 + $0x1460] sm:$0xff] }
 0x288   : > { %v1576_v25 = vpop.f32.mrb[4].mxu0  ;;  %3322 = vmatprep.subr.bf16.mxu1 %v3321_v20  ;;  %v833_v20 = vld [vmem:[%s4077_s28 + $0x13e8] sm:$0xff] }
 0x289   : > { %v1577_v29 = vadd.f32 %v1576_v25, %v4454_v22  ;;  %v1647_v30 = vpop.f32.mrb[4].mxu1  ;;  %v1578_v31 = vpop.f32.mrb[5].mxu0  ;;  %v3273_v25 = vpack.c.bf16 %v771_v18, %v769_v17  ;;  %v3337_v27 = vpack.c.bf16 %v835_v21, %v833_v20  ;;  %v850_v17 = vld [vmem:[%s4077_s28 + $0x1470] sm:$0xff]  ;;  %v912_v18 = vld [vmem:[%s4077_s28 + $0x1660] sm:$0xff]  ;;  %v853_v21 = vld [vmem:[%s4077_s28 + $0x1488] sm:$0xff] }
 0x28a   : > { %v1648_v34 = vadd.f32 %v1647_v30, %v4454_v22  ;;  %v1579_v54 = vadd.f32 %v1578_v31, %v4454_v22  ;;  %v1649_v35 = vpop.f32.mrb[5].mxu1  ;;  %v768_v31 = vld [vmem:[%s4077_s28 + $0x11e0] sm:$0xff]  ;;  %v914_v20 = vld [vmem:[%s4077_s28 + $0x1670] sm:$0xff] }
 0x28b   : > { %v2673_v19 = vmul.f32 -1.442695, %v1577_v29  ;;  %v1650_v37 = vadd.f32 %v1649_v35, %v4454_v22  ;;  %v839_v35 = vld [vmem:[%s4077_s28 + $0x1418] sm:$0xff] }
 0x28c   : > { %v2675_v40 = vmul.f32 -1.442695, %v1648_v34  ;;  %v2674_v41 = vmul.f32 -1.442695, %v1579_v54  ;;  %v834_v34 = vld [vmem:[%s4077_s28 + $0x13f0] sm:$0xff]  ;;  %v837_v54 = vld [vmem:[%s4077_s28 + $0x1408] sm:$0xff] }
 0x28d   : > { %3800 = vpow2.f32 %v2673_v19  ;;  %v2676_v61 = vmul.f32 -1.442695, %v1650_v37  ;;  %v903_v19 = vld [vmem:[%s4077_s28 + $0x1618] sm:$0xff]  ;;  %v3275_v37 = vpack.c.bf16 %v770_v32, %v768_v31  ;;  %v854_v31 = vld [vmem:[%s4077_s28 + $0x1490] sm:$0xff]  ;;  %v916_v32 = vld [vmem:[%s4077_s28 + $0x1680] sm:$0xff] }
 0x28e   : > { %3802 = vpow2.f32 %v2675_v40  ;;  %3260 = vmatpush1.bf16.xpose.msra.mxu0 %v3259_v36  ;;  %v901_v36 = vld [vmem:[%s4077_s28 + $0x1608] sm:$0xff] }
 0x28f   : > { %3804 = vpow2.f32 %v2674_v41  ;;  %3324 = vmatpush1.bf16.xpose.msra.mxu1 %v3323_v38  ;;  %3262 = vmatprep.subr.bf16.mxu0 %v3261_v39  ;;  %v3339_v38 = vpack.c.bf16 %v834_v34, %v832_v33  ;;  %v3341_v39 = vpack.c.bf16 %v839_v35, %v837_v54  ;;  %v3405_v40 = vpack.c.bf16 %v903_v19, %v901_v36  ;;  %v836_v41 = vld [vmem:[%s4077_s28 + $0x1400] sm:$0xff]  ;;  %v918_v33 = vld [vmem:[%s4077_s28 + $0x1690] sm:$0xff]  ;;  %v857_v34 = vld [vmem:[%s4077_s28 + $0x14a8] sm:$0xff] }
 0x290   : > { %3806 = vpow2.f32 %v2676_v61  ;;  %3326 = vmatprep.subr.bf16.mxu1 %v3325_v42  ;;  %v838_v42 = vld [vmem:[%s4077_s28 + $0x1410] sm:$0xff]  ;;  %v900_v61 = vld [vmem:[%s4077_s28 + $0x1600] sm:$0xff]  ;;  %v859_v54 = vld [vmem:[%s4077_s28 + $0x14b8] sm:$0xff] }
 0x291   : > { %v3343_v47 = vpack.c.bf16 %v838_v42, %v836_v41  ;;  %v3407_v48 = vpack.c.bf16 %v902_v43, %v900_v61  ;;  %v921_v35 = vld [vmem:[%s4077_s28 + $0x16a8] sm:$0xff]  ;;  %v923_v36 = vld [vmem:[%s4077_s28 + $0x16b8] sm:$0xff]  ;;  %v858_v41 = vld [vmem:[%s4077_s28 + $0x14b0] sm:$0xff] }
 0x292   : > { %v920_v42 = vld [vmem:[%s4077_s28 + $0x16a0] sm:$0xff]  ;;  %v922_v61 = vld [vmem:[%s4077_s28 + $0x16b0] sm:$0xff]  ;;  %v861_v43 = vld [vmem:[%s4077_s28 + $0x14c8] sm:$0xff] }
 0x296   : > { %3264 = vmatpush1.bf16.xpose.msra.mxu0 %v3263_v50  ;;  %v3409_v50 = vpack.c.bf16 %v907_v46, %v905_v14  ;;  %v927_v14 = vld [vmem:[%s4077_s28 + $0x16d8] sm:$0xff] }
 0x297   : > { %v3801_v55 = vpop.eup %3800  ;;  %3328 = vmatpush1.bf16.xpose.msra.mxu1 %v3327_v51  ;;  %3266 = vmatprep.subr.bf16.mxu0 %v3265_v52  ;;  %v4813_v51 = vld [vmem:[%s5265_s0] sm:$0xff] }
 0x298   : > { %v3803_v59 = vpop.eup %3802  ;;  %v2466_v60 = vadd.f32 1.0, %v3801_v55  ;;  %3330 = vmatprep.subr.bf16.mxu1 %v3329_v53  ;;  %v840_v52 = vld [vmem:[%s4077_s28 + $0x1420] sm:$0xff]  ;;  %v842_v53 = vld [vmem:[%s4077_s28 + $0x1430] sm:$0xff] }
 0x299   : > { %v3805_v1 = vpop.eup %3804  ;;  %v2468_v2 = vadd.f32 1.0, %v3803_v59  ;;  %v904_v55 = vld [vmem:[%s4077_s28 + $0x1620] sm:$0xff]  ;;  %v4826_v59 = vld [vmem:[%s5265_s0 + $0x8] sm:$0xff]  ;;  %v3347_v63 = vpack.c.bf16 %v842_v53, %v840_v52  ;;  %v862_v52 = vld [vmem:[%s4077_s28 + $0x14d0] sm:$0xff] }
 0x29a   : > { %v3807_v5 = vpop.eup %3806  ;;  %3808 = vrcp.f32 %v2466_v60  ;;  %v2467_v6 = vadd.f32 1.0, %v3805_v1  ;;  %v909_v60 = vld [vmem:[%s4077_s28 + $0x1648] sm:$0xff]  ;;  %v3411_v0 = vpack.c.bf16 %v906_v56, %v904_v55  ;;  %v3349_v1 = vpack.c.bf16 %v847_v58, %v845_v57  ;;  %v924_v53 = vld [vmem:[%s4077_s28 + $0x16c0] sm:$0xff]  ;;  %v926_v55 = vld [vmem:[%s4077_s28 + $0x16d0] sm:$0xff] }
 0x29b   : > { %3810 = vrcp.f32 %v2468_v2  ;;  %v2469_v8 = vadd.f32 1.0, %v3807_v5  ;;  %v3413_v2 = vpack.c.bf16 %v911_v62, %v909_v60  ;;  %v908_v5 = vld [vmem:[%s4077_s28 + $0x1640] sm:$0xff]  ;;  %v865_v56 = vld [vmem:[%s4077_s28 + $0x14e8] sm:$0xff]  ;;  %v867_v57 = vld [vmem:[%s4077_s28 + $0x14f8] sm:$0xff] }
 0x29c   : > { %3812 = vrcp.f32 %v2467_v6  ;;  %v910_v6 = vld [vmem:[%s4077_s28 + $0x1650] sm:$0xff]  ;;  %v929_v58 = vld [vmem:[%s4077_s28 + $0x16e8] sm:$0xff]  ;;  %v931_v60 = vld [vmem:[%s4077_s28 + $0x16f8] sm:$0xff] }
 0x29d   : > { %3814 = vrcp.f32 %v2469_v8  ;;  %v851_v8 = vld [vmem:[%s4077_s28 + $0x1478] sm:$0xff]  ;;  %v3415_v12 = vpack.c.bf16 %v910_v6, %v908_v5  ;;  %v930_v5 = vld [vmem:[%s4077_s28 + $0x16f0] sm:$0xff]  ;;  %v869_v6 = vld [vmem:[%s4077_s28 + $0x1508] sm:$0xff] }
 0x29e   : > { %3268 = vmatpush1.bf16.xpose.msra.mxu0 %v3267_v7  ;;  %v849_v7 = vld [vmem:[%s4077_s28 + $0x1468] sm:$0xff] }
 0x29f   : > { %3332 = vmatpush1.bf16.xpose.msra.mxu1 %v3331_v9  ;;  %3270 = vmatprep.subr.bf16.mxu0 %v3269_v10  ;;  %v913_v9 = vld [vmem:[%s4077_s28 + $0x1668] sm:$0xff]  ;;  %v915_v10 = vld [vmem:[%s4077_s28 + $0x1678] sm:$0xff]  ;;  %v3353_v13 = vpack.c.bf16 %v851_v8, %v849_v7 }
 0x2a0   : > { %3334 = vmatprep.subr.bf16.mxu1 %v3333_v11  ;;  %v3351_v11 = vpack.c.bf16 %v846_v4, %v844_v3  ;;  %v3417_v15 = vpack.c.bf16 %v915_v10, %v913_v9  ;;  %v866_v3 = vld [vmem:[%s4077_s28 + $0x14f0] sm:$0xff]  ;;  %v928_v4 = vld [vmem:[%s4077_s28 + $0x16e0] sm:$0xff]  ;;  %v871_v7 = vld [vmem:[%s4077_s28 + $0x1518] sm:$0xff] }
 0x2a1   : > { %v933_v8 = vld [vmem:[%s4077_s28 + $0x1708] sm:$0xff]  ;;  %v935_v9 = vld [vmem:[%s4077_s28 + $0x1718] sm:$0xff] }
 0x2a4   : > { %v3809_v26 = vpop.eup %3808 }
 0x2a5   : > { %v3811_v28 = vpop.eup %3810  ;;  %2562 = vst [vmem:[%s4498_s8 + $0x40] sm:$0xff] %v3809_v26  ;;  %v3355_v26 = vpack.c.bf16 %v850_v17, %v848_v16  ;;  %v870_v16 = vld [vmem:[%s4077_s28 + $0x1510] sm:$0xff]  ;;  %v932_v17 = vld [vmem:[%s4077_s28 + $0x1700] sm:$0xff] }
 0x2a6   : > { %v3813_v29 = vpop.eup %3812  ;;  %2564 = vst [vmem:[%s4498_s8 + $0x50] sm:$0xff] %v3811_v28  ;;  %3272 = vmatpush1.bf16.xpose.msra.mxu0 %v3271_v23  ;;  %v855_v23 = vld [vmem:[%s4077_s28 + $0x1498] sm:$0xff] }
 0x2a7   : > { %v3815_v30 = vpop.eup %3814  ;;  %2563 = vst [vmem:[%s4498_s8 + $0x48] sm:$0xff] %v3813_v29  ;;  %3336 = vmatpush1.bf16.xpose.msra.mxu1 %v3335_v24  ;;  %3274 = vmatprep.subr.bf16.mxu0 %v3273_v25  ;;  %v917_v24 = vld [vmem:[%s4077_s28 + $0x1688] sm:$0xff]  ;;  %v919_v25 = vld [vmem:[%s4077_s28 + $0x1698] sm:$0xff]  ;;  %v3357_v28 = vpack.c.bf16 %v855_v23, %v853_v21 }
 0x2a8   : > { %2565 = vst [vmem:[%s4498_s8 + $0x58] sm:$0xff] %v3815_v30  ;;  %3338 = vmatprep.subr.bf16.mxu1 %v3337_v27  ;;  %v3419_v27 = vpack.c.bf16 %v914_v20, %v912_v18  ;;  %v3421_v29 = vpack.c.bf16 %v919_v25, %v917_v24  ;;  %v852_v30 = vld [vmem:[%s4077_s28 + $0x1480] sm:$0xff]  ;;  %v934_v18 = vld [vmem:[%s4077_s28 + $0x1710] sm:$0xff]  ;;  %v873_v20 = vld [vmem:[%s4077_s28 + $0x1528] sm:$0xff] }
 0x2a9   : > { %v3359_v19 = vpack.c.bf16 %v854_v31, %v852_v30  ;;  %v875_v21 = vld [vmem:[%s4077_s28 + $0x1538] sm:$0xff]  ;;  %v937_v23 = vld [vmem:[%s4077_s28 + $0x1728] sm:$0xff]  ;;  %v874_v30 = vld [vmem:[%s4077_s28 + $0x1530] sm:$0xff] }
 0x2aa   : > { %v939_v24 = vld [vmem:[%s4077_s28 + $0x1738] sm:$0xff]  ;;  %v936_v31 = vld [vmem:[%s4077_s28 + $0x1720] sm:$0xff] }
 0x2ae   : > { %3276 = vmatpush1.bf16.xpose.msra.mxu0 %v3275_v37  ;;  %v3423_v37 = vpack.c.bf16 %v918_v33, %v916_v32  ;;  %v938_v32 = vld [vmem:[%s4077_s28 + $0x1730] sm:$0xff]  ;;  %v877_v33 = vld [vmem:[%s4077_s28 + $0x1548] sm:$0xff] }
 0x2af   : > { %3340 = vmatpush1.bf16.xpose.msra.mxu1 %v3339_v38  ;;  %3342 = vmatprep.subr.bf16.mxu0 %v3341_v39  ;;  %v3361_v38 = vpack.c.bf16 %v859_v54, %v857_v34  ;;  %v3425_v39 = vpack.c.bf16 %v923_v36, %v921_v35  ;;  %v879_v34 = vld [vmem:[%s4077_s28 + $0x1558] sm:$0xff]  ;;  %v941_v54 = vld [vmem:[%s4077_s28 + $0x1748] sm:$0xff] }
 0x2b0   : > { %3406 = vmatprep.subr.bf16.mxu1 %v3405_v40  ;;  %v856_v40 = vld [vmem:[%s4077_s28 + $0x14a0] sm:$0xff]  ;;  %v943_v35 = vld [vmem:[%s4077_s28 + $0x1758] sm:$0xff] }
 0x2b1   : > { %v3363_v46 = vpack.c.bf16 %v858_v41, %v856_v40  ;;  %v878_v40 = vld [vmem:[%s4077_s28 + $0x1550] sm:$0xff]  ;;  %v940_v41 = vld [vmem:[%s4077_s28 + $0x1740] sm:$0xff] }
 0x2b5   : > { %1859 = vmatmul.mubr.f32.vlgmr.msra.gmra.mrb[8].mxu0 %v4813_v51 }
 0x2b6   : > { %1930 = vmatmul.mubr.f32.vlgmr.msra.gmra.mrb[8].mxu1 %v4813_v51  ;;  %3344 = vmatpush1.bf16.xpose.msra.mxu0 %v3343_v47  ;;  %v3427_v47 = vpack.c.bf16 %v922_v61, %v920_v42  ;;  %v942_v42 = vld [vmem:[%s4077_s28 + $0x1750] sm:$0xff]  ;;  %v881_v61 = vld [vmem:[%s4077_s28 + $0x1568] sm:$0xff] }
 0x2b7   : > { %3408 = vmatpush1.bf16.xpose.msra.mxu1 %v3407_v48  ;;  %3346 = vmatprep.subr.bf16.mxu0 %v3345_v49  ;;  %v3365_v48 = vpack.c.bf16 %v863_v44, %v861_v43  ;;  %v3429_v49 = vpack.c.bf16 %v927_v14, %v925_v45  ;;  %v883_v43 = vld [vmem:[%s4077_s28 + $0x1578] sm:$0xff]  ;;  %v945_v44 = vld [vmem:[%s4077_s28 + $0x1768] sm:$0xff] }
 0x2b8   : > { %3410 = vmatprep.subr.bf16.mxu1 %v3409_v50  ;;  %2000 = vmatprep.mubr.f32.mxu0 %v4826_v59  ;;  %v860_v50 = vld [vmem:[%s4077_s28 + $0x14c0] sm:$0xff]  ;;  %v947_v45 = vld [vmem:[%s4077_s28 + $0x1778] sm:$0xff] }
 0x2b9   : > { %2071 = vmatprep.mubr.f32.mxu1 %v4826_v59  ;;  %v3367_v62 = vpack.c.bf16 %v862_v52, %v860_v50  ;;  %v882_v50 = vld [vmem:[%s4077_s28 + $0x1570] sm:$0xff]  ;;  %v944_v52 = vld [vmem:[%s4077_s28 + $0x1760] sm:$0xff] }
 0x2be   : > { %3348 = vmatpush1.bf16.xpose.msra.mxu0 %v3347_v63  ;;  %v3431_v63 = vpack.c.bf16 %v926_v55, %v924_v53  ;;  %v946_v55 = vld [vmem:[%s4077_s28 + $0x1770] sm:$0xff] }
 0x2bf   : > { %3412 = vmatpush1.bf16.xpose.msra.mxu1 %v3411_v0  ;;  %3350 = vmatprep.subr.bf16.mxu0 %v3349_v1  ;;  %v3369_v0 = vpack.c.bf16 %v867_v57, %v865_v56  ;;  %v3433_v1 = vpack.c.bf16 %v931_v60, %v929_v58  ;;  %v885_v56 = vld [vmem:[%s4077_s28 + $0x1588] sm:$0xff]  ;;  %v887_v57 = vld [vmem:[%s4077_s28 + $0x1598] sm:$0xff] }
 0x2c0   : > { %3414 = vmatprep.subr.bf16.mxu1 %v3413_v2  ;;  %v864_v2 = vld [vmem:[%s4077_s28 + $0x14e0] sm:$0xff] }
 0x2c1   : > { %v3371_v10 = vpack.c.bf16 %v866_v3, %v864_v2 }
 0x2c6   : > { %3352 = vmatpush1.bf16.xpose.msra.mxu0 %v3351_v11  ;;  %v3435_v11 = vpack.c.bf16 %v930_v5, %v928_v4 }
 0x2c7   : > { %3416 = vmatpush1.bf16.xpose.msra.mxu1 %v3415_v12  ;;  %3354 = vmatprep.subr.bf16.mxu0 %v3353_v13  ;;  %v3373_v12 = vpack.c.bf16 %v871_v7, %v869_v6  ;;  %v3437_v13 = vpack.c.bf16 %v935_v9, %v933_v8  ;;  %v3451_v7 = vpack.c.bf16 %v946_v55, %v944_v52  ;;  %v963_v52 = vld [vmem:[%s4077_s28 + $0x17f8] sm:$0xff] }
 0x2c8   : > { %3418 = vmatprep.subr.bf16.mxu1 %v3417_v15  ;;  %v868_v15 = vld [vmem:[%s4077_s28 + $0x1500] sm:$0xff]  ;;  %v3389_v8 = vpack.c.bf16 %v887_v57, %v885_v56 }
 0x2c9   : > { %v3375_v25 = vpack.c.bf16 %v870_v16, %v868_v15  ;;  %v886_v15 = vld [vmem:[%s4077_s28 + $0x1590] sm:$0xff]  ;;  %v948_v16 = vld [vmem:[%s4077_s28 + $0x1780] sm:$0xff] }
 0x2ce   : > { %3356 = vmatpush1.bf16.xpose.msra.mxu0 %v3355_v26  ;;  %v3439_v26 = vpack.c.bf16 %v934_v18, %v932_v17  ;;  %v950_v17 = vld [vmem:[%s4077_s28 + $0x1790] sm:$0xff]  ;;  %v889_v18 = vld [vmem:[%s4077_s28 + $0x15a8] sm:$0xff] }
 0x2cf   : > { %3420 = vmatpush1.bf16.xpose.msra.mxu1 %v3419_v27  ;;  %3358 = vmatprep.subr.bf16.mxu0 %v3357_v28  ;;  %v3377_v27 = vpack.c.bf16 %v875_v21, %v873_v20  ;;  %v3441_v28 = vpack.c.bf16 %v939_v24, %v937_v23  ;;  %v891_v20 = vld [vmem:[%s4077_s28 + $0x15b8] sm:$0xff]  ;;  %v953_v21 = vld [vmem:[%s4077_s28 + $0x17a8] sm:$0xff] }
 0x2d0   : > { %3422 = vmatprep.subr.bf16.mxu1 %v3421_v29  ;;  %v872_v29 = vld [vmem:[%s4077_s28 + $0x1520] sm:$0xff]  ;;  %v955_v23 = vld [vmem:[%s4077_s28 + $0x17b8] sm:$0xff] }
 0x2d1   : > { %v3379_v36 = vpack.c.bf16 %v874_v30, %v872_v29  ;;  %v888_v29 = vld [vmem:[%s4077_s28 + $0x15a0] sm:$0xff]  ;;  %v890_v30 = vld [vmem:[%s4077_s28 + $0x15b0] sm:$0xff] }
 0x2d6   : > { %3360 = vmatpush1.bf16.xpose.msra.mxu0 %v3359_v19  ;;  %v3443_v19 = vpack.c.bf16 %v938_v32, %v936_v31  ;;  %v952_v31 = vld [vmem:[%s4077_s28 + $0x17a0] sm:$0xff] }
 0x2d7   : > { %3424 = vmatpush1.bf16.xpose.msra.mxu1 %v3423_v37  ;;  %3362 = vmatprep.subr.bf16.mxu0 %v3361_v38  ;;  %v3381_v37 = vpack.c.bf16 %v879_v34, %v877_v33  ;;  %v3445_v38 = vpack.c.bf16 %v943_v35, %v941_v54  ;;  %v954_v34 = vld [vmem:[%s4077_s28 + $0x17b0] sm:$0xff]  ;;  %v893_v54 = vld [vmem:[%s4077_s28 + $0x15c8] sm:$0xff]  ;;  %v895_v35 = vld [vmem:[%s4077_s28 + $0x15d8] sm:$0xff] }
 0x2d8   : > { %3426 = vmatprep.subr.bf16.mxu1 %v3425_v39  ;;  %v876_v39 = vld [vmem:[%s4077_s28 + $0x1540] sm:$0xff] }
 0x2d9   : > { %v3383_v14 = vpack.c.bf16 %v878_v40, %v876_v39 }
 0x2de   : > { %3364 = vmatpush1.bf16.xpose.msra.mxu0 %v3363_v46  ;;  %v3447_v46 = vpack.c.bf16 %v942_v42, %v940_v41  ;;  %v3395_v41 = vpack.c.bf16 %v890_v30, %v888_v29  ;;  %v1032_v29 = vld [vmem:[%s4077_s28 + $0x1a20] sm:$0xff]  ;;  %v1034_v30 = vld [vmem:[%s4077_s28 + $0x1a30] sm:$0xff] }
 0x2df   : > { %3428 = vmatpush1.bf16.xpose.msra.mxu1 %v3427_v47  ;;  %3366 = vmatprep.subr.bf16.mxu0 %v3365_v48  ;;  %v3385_v47 = vpack.c.bf16 %v883_v43, %v881_v61  ;;  %v3449_v48 = vpack.c.bf16 %v947_v45, %v945_v44  ;;  %v3459_v61 = vpack.c.bf16 %v954_v34, %v952_v31  ;;  %v892_v45 = vld [vmem:[%s4077_s28 + $0x15c0] sm:$0xff]  ;;  %v973_v31 = vld [vmem:[%s4077_s28 + $0x1848] sm:$0xff] }
 0x2e0   : > { %3430 = vmatprep.subr.bf16.mxu1 %v3429_v49  ;;  %v880_v49 = vld [vmem:[%s4077_s28 + $0x1560] sm:$0xff]  ;;  %v3397_v43 = vpack.c.bf16 %v895_v35, %v893_v54  ;;  %v3539_v54 = vpack.c.bf16 %v1034_v30, %v1032_v29  ;;  %v995_v29 = vld [vmem:[%s4077_s28 + $0x18f8] sm:$0xff]  ;;  %v1057_v30 = vld [vmem:[%s4077_s28 + $0x1ae8] sm:$0xff] }
 0x2e1   : > { %v3387_v4 = vpack.c.bf16 %v882_v50, %v880_v49  ;;  %v899_v49 = vld [vmem:[%s4077_s28 + $0x15f8] sm:$0xff]  ;;  %v961_v50 = vld [vmem:[%s4077_s28 + $0x17e8] sm:$0xff] }
 0x2e6   : > { %3368 = vmatpush1.bf16.xpose.msra.mxu0 %v3367_v62 }
 0x2e7   : > { %3432 = vmatpush1.bf16.xpose.msra.mxu1 %v3431_v63  ;;  %3370 = vmatprep.subr.bf16.mxu0 %v3369_v0  ;;  %v949_v63 = vld [vmem:[%s4077_s28 + $0x1788] sm:$0xff]  ;;  %v951_v0 = vld [vmem:[%s4077_s28 + $0x1798] sm:$0xff] }
 0x2e8   : > { %3434 = vmatprep.subr.bf16.mxu1 %v3433_v1 }
 0x2ee   : > { %3372 = vmatpush1.bf16.xpose.msra.mxu0 %v3371_v10 }
 0x2ef   : > { %3436 = vmatpush1.bf16.xpose.msra.mxu1 %v3435_v11  ;;  %3374 = vmatprep.subr.bf16.mxu0 %v3373_v12  ;;  %v3453_v11 = vpack.c.bf16 %v951_v0, %v949_v63  ;;  %v896_v0 = vld [vmem:[%s4077_s28 + $0x15e0] sm:$0xff] }
 0x2f0   : > { %3438 = vmatprep.subr.bf16.mxu1 %v3437_v13  ;;  %v884_v13 = vld [vmem:[%s4077_s28 + $0x1580] sm:$0xff] }
 0x2f1   : > { %v3391_v24 = vpack.c.bf16 %v886_v15, %v884_v13  ;;  %v966_v13 = vld [vmem:[%s4077_s28 + $0x1810] sm:$0xff]  ;;  %v1028_v15 = vld [vmem:[%s4077_s28 + $0x1a00] sm:$0xff] }
 0x2f6   : > { %3376 = vmatpush1.bf16.xpose.msra.mxu0 %v3375_v25  ;;  %v3455_v25 = vpack.c.bf16 %v950_v17, %v948_v16  ;;  %v1030_v16 = vld [vmem:[%s4077_s28 + $0x1a10] sm:$0xff]  ;;  %v969_v17 = vld [vmem:[%s4077_s28 + $0x1828] sm:$0xff] }
 0x2f7   : > { %3440 = vmatpush1.bf16.xpose.msra.mxu1 %v3439_v26  ;;  %3378 = vmatprep.subr.bf16.mxu0 %v3377_v27  ;;  %v3393_v26 = vpack.c.bf16 %v891_v20, %v889_v18  ;;  %v3457_v27 = vpack.c.bf16 %v955_v23, %v953_v21  ;;  %v971_v18 = vld [vmem:[%s4077_s28 + $0x1838] sm:$0xff]  ;;  %v1033_v20 = vld [vmem:[%s4077_s28 + $0x1a28] sm:$0xff] }
 0x2f8   : > { %3442 = vmatprep.subr.bf16.mxu1 %v3441_v28  ;;  %v1035_v21 = vld [vmem:[%s4077_s28 + $0x1a38] sm:$0xff] }
 0x2fe   : > { %3380 = vmatpush1.bf16.xpose.msra.mxu0 %v3379_v36 }
 0x2ff   : > { %3444 = vmatpush1.bf16.xpose.msra.mxu1 %v3443_v19  ;;  %3382 = vmatprep.subr.bf16.mxu0 %v3381_v37  ;;  %v957_v37 = vld [vmem:[%s4077_s28 + $0x17c8] sm:$0xff] }
 0x300   : > { %3446 = vmatprep.subr.bf16.mxu1 %v3445_v38  ;;  %v959_v38 = vld [vmem:[%s4077_s28 + $0x17d8] sm:$0xff] }
 0x301   : > { %v3461_v44 = vpack.c.bf16 %v959_v38, %v957_v37  ;;  %v974_v37 = vld [vmem:[%s4077_s28 + $0x1850] sm:$0xff]  ;;  %v1036_v38 = vld [vmem:[%s4077_s28 + $0x1a40] sm:$0xff] }
 0x306   : > { %3384 = vmatpush1.bf16.xpose.msra.mxu0 %v3383_v14  ;;  %v894_v14 = vld [vmem:[%s4077_s28 + $0x15d0] sm:$0xff] }
 0x307   : > { %3448 = vmatpush1.bf16.xpose.msra.mxu1 %v3447_v46  ;;  %3386 = vmatprep.subr.bf16.mxu0 %v3385_v47  ;;  %v956_v46 = vld [vmem:[%s4077_s28 + $0x17c0] sm:$0xff]  ;;  %v958_v47 = vld [vmem:[%s4077_s28 + $0x17d0] sm:$0xff] }
 0x308   : > { %v1718_v53 = vpop.f32.mrb[6].mxu0  ;;  %3450 = vmatprep.subr.bf16.mxu1 %v3449_v48  ;;  %v897_v48 = vld [vmem:[%s4077_s28 + $0x15e8] sm:$0xff]  ;;  %v3463_v55 = vpack.c.bf16 %v958_v47, %v956_v46  ;;  %v978_v46 = vld [vmem:[%s4077_s28 + $0x1870] sm:$0xff]  ;;  %v1040_v47 = vld [vmem:[%s4077_s28 + $0x1a60] sm:$0xff] }
 0x309   : > { %v1719_v58 = vadd.f32 %v1718_v53, %v4454_v22  ;;  %v1789_v60 = vpop.f32.mrb[6].mxu1  ;;  %v1720_v62 = vpop.f32.mrb[7].mxu0  ;;  %v3399_v53 = vpack.c.bf16 %v894_v14, %v892_v45  ;;  %v3401_v56 = vpack.c.bf16 %v899_v49, %v897_v48  ;;  %v976_v14 = vld [vmem:[%s4077_s28 + $0x1860] sm:$0xff]  ;;  %v1042_v48 = vld [vmem:[%s4077_s28 + $0x1a70] sm:$0xff]  ;;  %v981_v49 = vld [vmem:[%s4077_s28 + $0x1888] sm:$0xff] }
 0x30a   : > { %v1790_v1 = vadd.f32 %v1789_v60, %v4454_v22  ;;  %v1721_v2 = vadd.f32 %v1720_v62, %v4454_v22  ;;  %v1791_v3 = vpop.f32.mrb[7].mxu1 }
 0x30b   : > { %v2677_v5 = vmul.f32 -1.442695, %v1719_v58  ;;  %v1792_v6 = vadd.f32 %v1791_v3, %v4454_v22  ;;  %v3465_v58 = vpack.c.bf16 %v963_v52, %v961_v50  ;;  %v962_v3 = vld [vmem:[%s4077_s28 + $0x17f0] sm:$0xff]  ;;  %v983_v50 = vld [vmem:[%s4077_s28 + $0x1898] sm:$0xff]  ;;  %v1045_v52 = vld [vmem:[%s4077_s28 + $0x1a88] sm:$0xff] }
 0x30c   : > { %v2679_v9 = vmul.f32 -1.442695, %v1790_v1  ;;  %v2678_v10 = vmul.f32 -1.442695, %v1721_v2  ;;  %v898_v1 = vld [vmem:[%s4077_s28 + $0x15f0] sm:$0xff]  ;;  %v960_v2 = vld [vmem:[%s4077_s28 + $0x17e0] sm:$0xff] }
 0x30d   : > { %3816 = vpow2.f32 %v2677_v5  ;;  %v2680_v12 = vmul.f32 -1.442695, %v1792_v6  ;;  %v967_v5 = vld [vmem:[%s4077_s28 + $0x1818] sm:$0xff]  ;;  %v1029_v6 = vld [vmem:[%s4077_s28 + $0x1a08] sm:$0xff] }
 0x30e   : > { %3818 = vpow2.f32 %v2679_v9  ;;  %3388 = vmatpush1.bf16.xpose.msra.mxu0 %v3387_v4  ;;  %v965_v4 = vld [vmem:[%s4077_s28 + $0x1808] sm:$0xff]  ;;  %v3467_v9 = vpack.c.bf16 %v962_v3, %v960_v2  ;;  %v987_v2 = vld [vmem:[%s4077_s28 + $0x18b8] sm:$0xff] }
 0x30f   : > { %3820 = vpow2.f32 %v2678_v10  ;;  %3452 = vmatpush1.bf16.xpose.msra.mxu1 %v3451_v7  ;;  %3390 = vmatprep.subr.bf16.mxu0 %v3389_v8  ;;  %v1031_v7 = vld [vmem:[%s4077_s28 + $0x1a18] sm:$0xff]  ;;  %v3403_v8 = vpack.c.bf16 %v898_v1, %v896_v0  ;;  %v3469_v10 = vpack.c.bf16 %v967_v5, %v965_v4  ;;  %v1046_v0 = vld [vmem:[%s4077_s28 + $0x1a90] sm:$0xff]  ;;  %v985_v1 = vld [vmem:[%s4077_s28 + $0x18a8] sm:$0xff] }
 0x310   : > { %3822 = vpow2.f32 %v2680_v12  ;;  %3454 = vmatprep.subr.bf16.mxu1 %v3453_v11  ;;  %v3533_v11 = vpack.c.bf16 %v1031_v7, %v1029_v6  ;;  %v964_v12 = vld [vmem:[%s4077_s28 + $0x1800] sm:$0xff]  ;;  %v1049_v3 = vld [vmem:[%s4077_s28 + $0x1aa8] sm:$0xff]  ;;  %v1051_v4 = vld [vmem:[%s4077_s28 + $0x1ab8] sm:$0xff]  ;;  %v3489_v7 = vpack.c.bf16 %v987_v2, %v985_v1 }
 0x311   : > { %v3471_v23 = vpack.c.bf16 %v966_v13, %v964_v12  ;;  %v1050_v12 = vld [vmem:[%s4077_s28 + $0x1ab0] sm:$0xff]  ;;  %v989_v13 = vld [vmem:[%s4077_s28 + $0x18c8] sm:$0xff]  ;;  %v1071_v1 = vld [vmem:[%s4077_s28 + $0x1b58] sm:$0xff] }
 0x316   : > { %3392 = vmatpush1.bf16.xpose.msra.mxu0 %v3391_v24  ;;  %v3535_v24 = vpack.c.bf16 %v1030_v16, %v1028_v15  ;;  %v991_v15 = vld [vmem:[%s4077_s28 + $0x18d8] sm:$0xff]  ;;  %v1053_v16 = vld [vmem:[%s4077_s28 + $0x1ac8] sm:$0xff] }
 0x317   : > { %v3817_v28 = vpop.eup %3816  ;;  %3456 = vmatpush1.bf16.xpose.msra.mxu1 %v3455_v25  ;;  %3394 = vmatprep.subr.bf16.mxu0 %v3393_v26  ;;  %v3473_v25 = vpack.c.bf16 %v971_v18, %v969_v17  ;;  %v3537_v26 = vpack.c.bf16 %v1035_v21, %v1033_v20  ;;  %v1055_v17 = vld [vmem:[%s4077_s28 + $0x1ad8] sm:$0xff]  ;;  %v3493_v21 = vpack.c.bf16 %v991_v15, %v989_v13 }
 0x318   : > { %v3819_v32 = vpop.eup %3818  ;;  %v2470_v33 = vadd.f32 1.0, %v3817_v28  ;;  %3458 = vmatprep.subr.bf16.mxu1 %v3457_v27  ;;  %v968_v27 = vld [vmem:[%s4077_s28 + $0x1820] sm:$0xff]  ;;  %v970_v28 = vld [vmem:[%s4077_s28 + $0x1830] sm:$0xff]  ;;  %v1075_v13 = vld [vmem:[%s4077_s28 + $0x1b78] sm:$0xff] }
 0x319   : > { %v3821_v36 = vpop.eup %3820  ;;  %v2472_v19 = vadd.f32 1.0, %v3819_v32  ;;  %v975_v32 = vld [vmem:[%s4077_s28 + $0x1858] sm:$0xff]  ;;  %v3475_v34 = vpack.c.bf16 %v970_v28, %v968_v27  ;;  %v1054_v27 = vld [vmem:[%s4077_s28 + $0x1ad0] sm:$0xff]  ;;  %v993_v28 = vld [vmem:[%s4077_s28 + $0x18e8] sm:$0xff] }
 0x31a   : > { %v3823_v39 = vpop.eup %3822  ;;  %3824 = vrcp.f32 %v2470_v33  ;;  %v2471_v40 = vadd.f32 1.0, %v3821_v36  ;;  %v1037_v33 = vld [vmem:[%s4077_s28 + $0x1a48] sm:$0xff]  ;;  %v3477_v35 = vpack.c.bf16 %v975_v32, %v973_v31  ;;  %v1059_v31 = vld [vmem:[%s4077_s28 + $0x1af8] sm:$0xff] }
 0x31b   : > { %3826 = vrcp.f32 %v2472_v19  ;;  %v2473_v42 = vadd.f32 1.0, %v3823_v39  ;;  %v972_v19 = vld [vmem:[%s4077_s28 + $0x1840] sm:$0xff]  ;;  %v1038_v39 = vld [vmem:[%s4077_s28 + $0x1a50] sm:$0xff] }
 0x31c   : > { %3828 = vrcp.f32 %v2471_v40  ;;  %v977_v40 = vld [vmem:[%s4077_s28 + $0x1868] sm:$0xff] }
 0x31d   : > { %3830 = vrcp.f32 %v2473_v42  ;;  %v1043_v42 = vld [vmem:[%s4077_s28 + $0x1a78] sm:$0xff] }
 0x31e   : > { %3396 = vmatpush1.bf16.xpose.msra.mxu0 %v3395_v41  ;;  %v1041_v41 = vld [vmem:[%s4077_s28 + $0x1a68] sm:$0xff] }
 0x31f   : > { %3460 = vmatpush1.bf16.xpose.msra.mxu1 %v3459_v61  ;;  %3398 = vmatprep.subr.bf16.mxu0 %v3397_v43  ;;  %v3479_v61 = vpack.c.bf16 %v974_v37, %v972_v19  ;;  %v3543_v43 = vpack.c.bf16 %v1038_v39, %v1036_v38  ;;  %v3545_v45 = vpack.c.bf16 %v1043_v42, %v1041_v41  ;;  %v1058_v19 = vld [vmem:[%s4077_s28 + $0x1af0] sm:$0xff]  ;;  %v997_v37 = vld [vmem:[%s4077_s28 + $0x1908] sm:$0xff]  ;;  %v999_v38 = vld [vmem:[%s4077_s28 + $0x1918] sm:$0xff] }
 0x320   : > { %3462 = vmatprep.subr.bf16.mxu1 %v3461_v44  ;;  %v1061_v39 = vld [vmem:[%s4077_s28 + $0x1b08] sm:$0xff]  ;;  %v3501_v42 = vpack.c.bf16 %v999_v38, %v997_v37 }
 0x324   : > { %v3825_v57 = vpop.eup %3824 }
 0x325   : > { %v3827_v60 = vpop.eup %3826  ;;  %2566 = vst [vmem:[%s4498_s8 + $0x60] sm:$0xff] %v3825_v57  ;;  %v3485_v57 = vpack.c.bf16 %v983_v50, %v981_v49  ;;  %v1067_v49 = vld [vmem:[%s4077_s28 + $0x1b38] sm:$0xff] }
 0x326   : > { %v3829_v62 = vpop.eup %3828  ;;  %2568 = vst [vmem:[%s4498_s8 + $0x70] sm:$0xff] %v3827_v60  ;;  %3400 = vmatpush1.bf16.xpose.msra.mxu0 %v3399_v53  ;;  %v1047_v53 = vld [vmem:[%s4077_s28 + $0x1a98] sm:$0xff]  ;;  %v980_v60 = vld [vmem:[%s4077_s28 + $0x1880] sm:$0xff] }
 0x327   : > { %v3831_v63 = vpop.eup %3830  ;;  %2567 = vst [vmem:[%s4498_s8 + $0x68] sm:$0xff] %v3829_v62  ;;  %3464 = vmatpush1.bf16.xpose.msra.mxu1 %v3463_v55  ;;  %3402 = vmatprep.subr.bf16.mxu0 %v3401_v56  ;;  %v3483_v55 = vpack.c.bf16 %v978_v46, %v976_v14  ;;  %v3547_v56 = vpack.c.bf16 %v1042_v48, %v1040_v47  ;;  %v982_v62 = vld [vmem:[%s4077_s28 + $0x1890] sm:$0xff]  ;;  %v1001_v46 = vld [vmem:[%s4077_s28 + $0x1928] sm:$0xff]  ;;  %v1003_v47 = vld [vmem:[%s4077_s28 + $0x1938] sm:$0xff] }
 0x328   : > { %2569 = vst [vmem:[%s4498_s8 + $0x78] sm:$0xff] %v3831_v63  ;;  %3466 = vmatprep.subr.bf16.mxu1 %v3465_v58  ;;  %v3549_v58 = vpack.c.bf16 %v1047_v53, %v1045_v52  ;;  %v1044_v63 = vld [vmem:[%s4077_s28 + $0x1a80] sm:$0xff]  ;;  %v3487_v5 = vpack.c.bf16 %v982_v62, %v980_v60  ;;  %v1062_v14 = vld [vmem:[%s4077_s28 + $0x1b10] sm:$0xff]  ;;  %v1065_v48 = vld [vmem:[%s4077_s28 + $0x1b28] sm:$0xff]  ;;  %v3505_v53 = vpack.c.bf16 %v1003_v47, %v1001_v46 }
 0x329   : > { %v3551_v6 = vpack.c.bf16 %v1046_v0, %v1044_v63  ;;  %v1066_v60 = vld [vmem:[%s4077_s28 + $0x1b30] sm:$0xff]  ;;  %v1005_v62 = vld [vmem:[%s4077_s28 + $0x1948] sm:$0xff]  ;;  %v1007_v63 = vld [vmem:[%s4077_s28 + $0x1958] sm:$0xff] }
 0x32a   : > { %v1069_v0 = vld [vmem:[%s4077_s28 + $0x1b48] sm:$0xff]  ;;  %v1083_v46 = vld [vmem:[%s4077_s28 + $0x1bb8] sm:$0xff] }
 0x32e   : > { %3404 = vmatpush1.bf16.xpose.msra.mxu0 %v3403_v8  ;;  %v3553_v8 = vpack.c.bf16 %v1051_v4, %v1049_v3  ;;  %v3509_v4 = vpack.c.bf16 %v1007_v63, %v1005_v62  ;;  %v1021_v62 = vld [vmem:[%s4077_s28 + $0x19c8] sm:$0xff]  ;;  %v1023_v63 = vld [vmem:[%s4077_s28 + $0x19d8] sm:$0xff] }
 0x32f   : > { %3468 = vmatpush1.bf16.xpose.msra.mxu1 %v3467_v9  ;;  %3470 = vmatprep.subr.bf16.mxu0 %v3469_v10  ;;  %v984_v9 = vld [vmem:[%s4077_s28 + $0x18a0] sm:$0xff]  ;;  %v986_v10 = vld [vmem:[%s4077_s28 + $0x18b0] sm:$0xff] }
 0x330   : > { %3534 = vmatprep.subr.bf16.mxu1 %v3533_v11  ;;  %v1048_v11 = vld [vmem:[%s4077_s28 + $0x1aa0] sm:$0xff]  ;;  %v3491_v18 = vpack.c.bf16 %v986_v10, %v984_v9  ;;  %v1070_v9 = vld [vmem:[%s4077_s28 + $0x1b50] sm:$0xff]  ;;  %v1009_v10 = vld [vmem:[%s4077_s28 + $0x1968] sm:$0xff] }
 0x331   : > { %v3555_v20 = vpack.c.bf16 %v1050_v12, %v1048_v11  ;;  %v1011_v11 = vld [vmem:[%s4077_s28 + $0x1978] sm:$0xff]  ;;  %v1073_v12 = vld [vmem:[%s4077_s28 + $0x1b68] sm:$0xff] }
 0x335   : > { %2001 = vmatmul.mubr.f32.vlgmr.msra.gmra.mrb[10].mxu0 %v4813_v51 }
 0x336   : > { %2072 = vmatmul.mubr.f32.vlgmr.msra.gmra.mrb[10].mxu1 %v4813_v51  ;;  %3472 = vmatpush1.bf16.xpose.msra.mxu0 %v3471_v23  ;;  %v1039_v51 = vld [vmem:[%s4077_s28 + $0x1a58] sm:$0xff]  ;;  %v3557_v23 = vpack.c.bf16 %v1055_v17, %v1053_v16  ;;  %v3513_v17 = vpack.c.bf16 %v1011_v11, %v1009_v10  ;;  %v1020_v11 = vld [vmem:[%s4077_s28 + $0x19c0] sm:$0xff] }
 0x337   : > { %3536 = vmatpush1.bf16.xpose.msra.mxu1 %v3535_v24  ;;  %3474 = vmatprep.subr.bf16.mxu0 %v3473_v25  ;;  %v3541_v36 = vpack.c.bf16 %v1039_v51, %v1037_v33  ;;  %v988_v24 = vld [vmem:[%s4077_s28 + $0x18c0] sm:$0xff]  ;;  %v990_v25 = vld [vmem:[%s4077_s28 + $0x18d0] sm:$0xff]  ;;  %v3497_v51 = vpack.c.bf16 %v995_v29, %v993_v28 }
 0x338   : > { %3538 = vmatprep.subr.bf16.mxu1 %v3537_v26  ;;  %2142 = vmatprep.mubr.f32.mxu0 %v4826_v59  ;;  %v1052_v26 = vld [vmem:[%s4077_s28 + $0x1ac0] sm:$0xff]  ;;  %v3495_v32 = vpack.c.bf16 %v990_v25, %v988_v24  ;;  %v1074_v25 = vld [vmem:[%s4077_s28 + $0x1b70] sm:$0xff] }
 0x339   : > { %2213 = vmatprep.mubr.f32.mxu1 %v4826_v59  ;;  %v979_v59 = vld [vmem:[%s4077_s28 + $0x1878] sm:$0xff]  ;;  %v3559_v33 = vpack.c.bf16 %v1054_v27, %v1052_v26  ;;  %v1013_v26 = vld [vmem:[%s4077_s28 + $0x1988] sm:$0xff] }
 0x33a   : > { %v3481_v44 = vpack.c.bf16 %v979_v59, %v977_v40  ;;  %v1063_v40 = vld [vmem:[%s4077_s28 + $0x1b18] sm:$0xff] }
 0x33b   : > { %v1015_v27 = vld [vmem:[%s4077_s28 + $0x1998] sm:$0xff] }
 0x33c   : > { %v3517_v37 = vpack.c.bf16 %v1015_v27, %v1013_v26 }
 0x33e   : > { %3476 = vmatpush1.bf16.xpose.msra.mxu0 %v3475_v34  ;;  %v3561_v34 = vpack.c.bf16 %v1059_v31, %v1057_v30  ;;  %v1077_v31 = vld [vmem:[%s4077_s28 + $0x1b88] sm:$0xff] }
 0x33f   : > { %3540 = vmatpush1.bf16.xpose.msra.mxu1 %v3539_v54  ;;  %3478 = vmatprep.subr.bf16.mxu0 %v3477_v35  ;;  %v992_v54 = vld [vmem:[%s4077_s28 + $0x18e0] sm:$0xff]  ;;  %v994_v35 = vld [vmem:[%s4077_s28 + $0x18f0] sm:$0xff] }
 0x340   : > { %3542 = vmatprep.subr.bf16.mxu1 %v3541_v36  ;;  %v1056_v36 = vld [vmem:[%s4077_s28 + $0x1ae0] sm:$0xff]  ;;  %v3499_v59 = vpack.c.bf16 %v994_v35, %v992_v54 }
 0x341   : > { %v3563_v41 = vpack.c.bf16 %v1058_v19, %v1056_v36 }
 0x346   : > { %3480 = vmatpush1.bf16.xpose.msra.mxu0 %v3479_v61  ;;  %v3565_v61 = vpack.c.bf16 %v1063_v40, %v1061_v39 }
 0x347   : > { %3544 = vmatpush1.bf16.xpose.msra.mxu1 %v3543_v43  ;;  %3482 = vmatprep.subr.bf16.mxu0 %v3481_v44  ;;  %v996_v43 = vld [vmem:[%s4077_s28 + $0x1900] sm:$0xff]  ;;  %v998_v44 = vld [vmem:[%s4077_s28 + $0x1910] sm:$0xff] }
 0x348   : > { %3546 = vmatprep.subr.bf16.mxu1 %v3545_v45  ;;  %v1060_v45 = vld [vmem:[%s4077_s28 + $0x1b00] sm:$0xff]  ;;  %v3503_v50 = vpack.c.bf16 %v998_v44, %v996_v43  ;;  %v1078_v43 = vld [vmem:[%s4077_s28 + $0x1b90] sm:$0xff]  ;;  %v1017_v44 = vld [vmem:[%s4077_s28 + $0x19a8] sm:$0xff] }
 0x349   : > { %v3567_v52 = vpack.c.bf16 %v1062_v14, %v1060_v45  ;;  %v1019_v45 = vld [vmem:[%s4077_s28 + $0x19b8] sm:$0xff]  ;;  %v1081_v14 = vld [vmem:[%s4077_s28 + $0x1ba8] sm:$0xff] }
 0x34e   : > { %3484 = vmatpush1.bf16.xpose.msra.mxu0 %v3483_v55  ;;  %v3569_v55 = vpack.c.bf16 %v1067_v49, %v1065_v48  ;;  %v3521_v49 = vpack.c.bf16 %v1019_v45, %v1017_v44  ;;  %v1163_v44 = vld [vmem:[%s4077_s28 + $0x1e38] sm:$0xff] }
 0x34f   : > { %3548 = vmatpush1.bf16.xpose.msra.mxu1 %v3547_v56  ;;  %3486 = vmatprep.subr.bf16.mxu0 %v3485_v57  ;;  %v1000_v56 = vld [vmem:[%s4077_s28 + $0x1920] sm:$0xff]  ;;  %v1002_v57 = vld [vmem:[%s4077_s28 + $0x1930] sm:$0xff] }
 0x350   : > { %3550 = vmatprep.subr.bf16.mxu1 %v3549_v58  ;;  %v1064_v58 = vld [vmem:[%s4077_s28 + $0x1b20] sm:$0xff]  ;;  %v3507_v2 = vpack.c.bf16 %v1002_v57, %v1000_v56 }
 0x351   : > { %v3571_v3 = vpack.c.bf16 %v1066_v60, %v1064_v58  ;;  %v1080_v56 = vld [vmem:[%s4077_s28 + $0x1ba0] sm:$0xff]  ;;  %v1082_v60 = vld [vmem:[%s4077_s28 + $0x1bb0] sm:$0xff] }
 0x356   : > { %3488 = vmatpush1.bf16.xpose.msra.mxu0 %v3487_v5  ;;  %v3573_v5 = vpack.c.bf16 %v1071_v1, %v1069_v0 }
 0x357   : > { %3552 = vmatpush1.bf16.xpose.msra.mxu1 %v3551_v6  ;;  %3490 = vmatprep.subr.bf16.mxu0 %v3489_v7  ;;  %v1004_v6 = vld [vmem:[%s4077_s28 + $0x1940] sm:$0xff]  ;;  %v1006_v7 = vld [vmem:[%s4077_s28 + $0x1950] sm:$0xff] }
 0x358   : > { %3554 = vmatprep.subr.bf16.mxu1 %v3553_v8  ;;  %v1068_v8 = vld [vmem:[%s4077_s28 + $0x1b40] sm:$0xff]  ;;  %v3511_v15 = vpack.c.bf16 %v1006_v7, %v1004_v6 }
 0x359   : > { %v3575_v16 = vpack.c.bf16 %v1070_v9, %v1068_v8  ;;  %v3587_v8 = vpack.c.bf16 %v1082_v60, %v1080_v56  ;;  %v3525_v9 = vpack.c.bf16 %v1023_v63, %v1021_v62  ;;  %v1103_v56 = vld [vmem:[%s4077_s28 + $0x1c58] sm:$0xff] }
 0x35a   : > { %v1167_v60 = vld [vmem:[%s4077_s28 + $0x1e58] sm:$0xff] }
 0x35e   : > { %3492 = vmatpush1.bf16.xpose.msra.mxu0 %v3491_v18  ;;  %v3577_v18 = vpack.c.bf16 %v1075_v13, %v1073_v12  ;;  %v1022_v12 = vld [vmem:[%s4077_s28 + $0x19d0] sm:$0xff]  ;;  %v1084_v13 = vld [vmem:[%s4077_s28 + $0x1bc0] sm:$0xff] }
 0x35f   : > { %3556 = vmatpush1.bf16.xpose.msra.mxu1 %v3555_v20  ;;  %3494 = vmatprep.subr.bf16.mxu0 %v3493_v21  ;;  %v1008_v20 = vld [vmem:[%s4077_s28 + $0x1960] sm:$0xff]  ;;  %v1010_v21 = vld [vmem:[%s4077_s28 + $0x1970] sm:$0xff] }
 0x360   : > { %3558 = vmatprep.subr.bf16.mxu1 %v3557_v23  ;;  %v1072_v23 = vld [vmem:[%s4077_s28 + $0x1b60] sm:$0xff]  ;;  %v3515_v54 = vpack.c.bf16 %v1010_v21, %v1008_v20  ;;  %v1091_v20 = vld [vmem:[%s4077_s28 + $0x1bf8] sm:$0xff]  ;;  %v3527_v21 = vpack.c.bf16 %v1022_v12, %v1020_v11 }
 0x361   : > { %v3579_v19 = vpack.c.bf16 %v1074_v25, %v1072_v23 }
 0x366   : > { %3496 = vmatpush1.bf16.xpose.msra.mxu0 %v3495_v32  ;;  %v1079_v32 = vld [vmem:[%s4077_s28 + $0x1b98] sm:$0xff] }
 0x367   : > { %3560 = vmatpush1.bf16.xpose.msra.mxu1 %v3559_v33  ;;  %3498 = vmatprep.subr.bf16.mxu0 %v3497_v51  ;;  %v3581_v40 = vpack.c.bf16 %v1079_v32, %v1077_v31  ;;  %v1026_v31 = vld [vmem:[%s4077_s28 + $0x19f0] sm:$0xff]  ;;  %v1088_v32 = vld [vmem:[%s4077_s28 + $0x1be0] sm:$0xff] }
 0x368   : > { %3562 = vmatprep.subr.bf16.mxu1 %v3561_v34 }
 0x36e   : > { %3500 = vmatpush1.bf16.xpose.msra.mxu0 %v3499_v59 }
 0x36f   : > { %3564 = vmatpush1.bf16.xpose.msra.mxu1 %v3563_v41  ;;  %3502 = vmatprep.subr.bf16.mxu0 %v3501_v42  ;;  %v1012_v41 = vld [vmem:[%s4077_s28 + $0x1980] sm:$0xff]  ;;  %v1014_v42 = vld [vmem:[%s4077_s28 + $0x1990] sm:$0xff] }
 0x370   : > { %3566 = vmatprep.subr.bf16.mxu1 %v3565_v61  ;;  %v1076_v61 = vld [vmem:[%s4077_s28 + $0x1b80] sm:$0xff]  ;;  %v3519_v47 = vpack.c.bf16 %v1014_v42, %v1012_v41  ;;  %v1158_v41 = vld [vmem:[%s4077_s28 + $0x1e10] sm:$0xff]  ;;  %v1097_v42 = vld [vmem:[%s4077_s28 + $0x1c28] sm:$0xff] }
 0x371   : > { %v3583_v48 = vpack.c.bf16 %v1078_v43, %v1076_v61  ;;  %v1099_v61 = vld [vmem:[%s4077_s28 + $0x1c38] sm:$0xff]  ;;  %v1161_v43 = vld [vmem:[%s4077_s28 + $0x1e28] sm:$0xff] }
 0x376   : > { %3504 = vmatpush1.bf16.xpose.msra.mxu0 %v3503_v50  ;;  %v3585_v50 = vpack.c.bf16 %v1083_v46, %v1081_v14  ;;  %v3601_v46 = vpack.c.bf16 %v1099_v61, %v1097_v42  ;;  %v1119_v42 = vld [vmem:[%s4077_s28 + $0x1cd8] sm:$0xff]  ;;  %v1181_v61 = vld [vmem:[%s4077_s28 + $0x1ec8] sm:$0xff] }
 0x377   : > { %3568 = vmatpush1.bf16.xpose.msra.mxu1 %v3567_v52  ;;  %3506 = vmatprep.subr.bf16.mxu0 %v3505_v53  ;;  %v1016_v53 = vld [vmem:[%s4077_s28 + $0x19a0] sm:$0xff] }
 0x378   : > { %3570 = vmatprep.subr.bf16.mxu1 %v3569_v55  ;;  %v1018_v55 = vld [vmem:[%s4077_s28 + $0x19b0] sm:$0xff] }
 0x379   : > { %v3523_v6 = vpack.c.bf16 %v1018_v55, %v1016_v53  ;;  %v1162_v53 = vld [vmem:[%s4077_s28 + $0x1e30] sm:$0xff]  ;;  %v1101_v55 = vld [vmem:[%s4077_s28 + $0x1c48] sm:$0xff] }
 0x37e   : > { %3508 = vmatpush1.bf16.xpose.msra.mxu0 %v3507_v2  ;;  %v1085_v2 = vld [vmem:[%s4077_s28 + $0x1bc8] sm:$0xff] }
 0x37f   : > { %3572 = vmatpush1.bf16.xpose.msra.mxu1 %v3571_v3  ;;  %3510 = vmatprep.subr.bf16.mxu0 %v3509_v4  ;;  %v1087_v3 = vld [vmem:[%s4077_s28 + $0x1bd8] sm:$0xff] }
 0x380   : > { %3574 = vmatprep.subr.bf16.mxu1 %v3573_v5  ;;  %v3589_v10 = vpack.c.bf16 %v1087_v3, %v1085_v2  ;;  %v1100_v2 = vld [vmem:[%s4077_s28 + $0x1c40] sm:$0xff]  ;;  %v1102_v3 = vld [vmem:[%s4077_s28 + $0x1c50] sm:$0xff] }
 0x386   : > { %3512 = vmatpush1.bf16.xpose.msra.mxu0 %v3511_v15  ;;  %v1086_v15 = vld [vmem:[%s4077_s28 + $0x1bd0] sm:$0xff] }
 0x387   : > { %3576 = vmatpush1.bf16.xpose.msra.mxu1 %v3575_v16  ;;  %3514 = vmatprep.subr.bf16.mxu0 %v3513_v17  ;;  %v1025_v16 = vld [vmem:[%s4077_s28 + $0x19e8] sm:$0xff]  ;;  %v1027_v17 = vld [vmem:[%s4077_s28 + $0x19f8] sm:$0xff]  ;;  %v3591_v23 = vpack.c.bf16 %v1086_v15, %v1084_v13  ;;  %v1104_v15 = vld [vmem:[%s4077_s28 + $0x1c60] sm:$0xff] }
 0x388   : > { %v1860_v24 = vpop.f32.mrb[8].mxu0  ;;  %3578 = vmatprep.subr.bf16.mxu1 %v3577_v18  ;;  %v1089_v18 = vld [vmem:[%s4077_s28 + $0x1be8] sm:$0xff] }
 0x389   : > { %v1861_v28 = vadd.f32 %v1860_v24, %v4454_v22  ;;  %v1931_v29 = vpop.f32.mrb[8].mxu1  ;;  %v1862_v30 = vpop.f32.mrb[9].mxu0  ;;  %v3529_v24 = vpack.c.bf16 %v1027_v17, %v1025_v16  ;;  %v3593_v26 = vpack.c.bf16 %v1091_v20, %v1089_v18  ;;  %v1106_v16 = vld [vmem:[%s4077_s28 + $0x1c70] sm:$0xff]  ;;  %v1168_v17 = vld [vmem:[%s4077_s28 + $0x1e60] sm:$0xff]  ;;  %v1109_v20 = vld [vmem:[%s4077_s28 + $0x1c88] sm:$0xff] }
 0x38a   : > { %v1932_v33 = vadd.f32 %v1931_v29, %v4454_v22  ;;  %v1863_v51 = vadd.f32 %v1862_v30, %v4454_v22  ;;  %v1933_v34 = vpop.f32.mrb[9].mxu1  ;;  %v1024_v30 = vld [vmem:[%s4077_s28 + $0x19e0] sm:$0xff]  ;;  %v1170_v18 = vld [vmem:[%s4077_s28 + $0x1e70] sm:$0xff] }
 0x38b   : > { %v2681_v35 = vmul.f32 -1.442695, %v1861_v28  ;;  %v1934_v36 = vadd.f32 %v1933_v34, %v4454_v22  ;;  %v1095_v34 = vld [vmem:[%s4077_s28 + $0x1c18] sm:$0xff] }
 0x38c   : > { %v2683_v38 = vmul.f32 -1.442695, %v1932_v33  ;;  %v2682_v39 = vmul.f32 -1.442695, %v1863_v51  ;;  %v1090_v33 = vld [vmem:[%s4077_s28 + $0x1bf0] sm:$0xff]  ;;  %v1093_v51 = vld [vmem:[%s4077_s28 + $0x1c08] sm:$0xff] }
 0x38d   : > { %3832 = vpow2.f32 %v2681_v35  ;;  %v2684_v59 = vmul.f32 -1.442695, %v1934_v36  ;;  %v1159_v35 = vld [vmem:[%s4077_s28 + $0x1e18] sm:$0xff]  ;;  %v3531_v36 = vpack.c.bf16 %v1026_v31, %v1024_v30  ;;  %v1110_v30 = vld [vmem:[%s4077_s28 + $0x1c90] sm:$0xff]  ;;  %v1172_v31 = vld [vmem:[%s4077_s28 + $0x1e80] sm:$0xff] }
 0x38e   : > { %3834 = vpow2.f32 %v2683_v38  ;;  %3516 = vmatpush1.bf16.xpose.msra.mxu0 %v3515_v54  ;;  %v1157_v54 = vld [vmem:[%s4077_s28 + $0x1e08] sm:$0xff] }
 0x38f   : > { %3836 = vpow2.f32 %v2682_v39  ;;  %3580 = vmatpush1.bf16.xpose.msra.mxu1 %v3579_v19  ;;  %3518 = vmatprep.subr.bf16.mxu0 %v3517_v37  ;;  %v3595_v19 = vpack.c.bf16 %v1090_v33, %v1088_v32  ;;  %v3597_v37 = vpack.c.bf16 %v1095_v34, %v1093_v51  ;;  %v3661_v38 = vpack.c.bf16 %v1159_v35, %v1157_v54  ;;  %v1092_v39 = vld [vmem:[%s4077_s28 + $0x1c00] sm:$0xff]  ;;  %v1174_v32 = vld [vmem:[%s4077_s28 + $0x1e90] sm:$0xff]  ;;  %v1113_v33 = vld [vmem:[%s4077_s28 + $0x1ca8] sm:$0xff] }
 0x390   : > { %3838 = vpow2.f32 %v2684_v59  ;;  %3582 = vmatprep.subr.bf16.mxu1 %v3581_v40  ;;  %v1094_v40 = vld [vmem:[%s4077_s28 + $0x1c10] sm:$0xff]  ;;  %v1156_v59 = vld [vmem:[%s4077_s28 + $0x1e00] sm:$0xff]  ;;  %v1115_v51 = vld [vmem:[%s4077_s28 + $0x1cb8] sm:$0xff] }
 0x391   : > { %v3599_v45 = vpack.c.bf16 %v1094_v40, %v1092_v39  ;;  %v3663_v14 = vpack.c.bf16 %v1158_v41, %v1156_v59  ;;  %v1177_v34 = vld [vmem:[%s4077_s28 + $0x1ea8] sm:$0xff]  ;;  %v1179_v54 = vld [vmem:[%s4077_s28 + $0x1eb8] sm:$0xff]  ;;  %v1114_v39 = vld [vmem:[%s4077_s28 + $0x1cb0] sm:$0xff] }
 0x392   : > { %v1176_v40 = vld [vmem:[%s4077_s28 + $0x1ea0] sm:$0xff]  ;;  %v1178_v59 = vld [vmem:[%s4077_s28 + $0x1eb0] sm:$0xff]  ;;  %v1117_v41 = vld [vmem:[%s4077_s28 + $0x1cc8] sm:$0xff] }
 0x396   : > { %3520 = vmatpush1.bf16.xpose.msra.mxu0 %v3519_v47  ;;  %v3665_v47 = vpack.c.bf16 %v1163_v44, %v1161_v43  ;;  %v1183_v43 = vld [vmem:[%s4077_s28 + $0x1ed8] sm:$0xff] }
 0x397   : > { %v3833_v52 = vpop.eup %3832  ;;  %3584 = vmatpush1.bf16.xpose.msra.mxu1 %v3583_v48  ;;  %3522 = vmatprep.subr.bf16.mxu0 %v3521_v49  ;;  %v5103_v48 = vld [vmem:[%s5265_s0] sm:$0xff] }
 0x398   : > { %v3835_v57 = vpop.eup %3834  ;;  %v2474_v58 = vadd.f32 1.0, %v3833_v52  ;;  %3586 = vmatprep.subr.bf16.mxu1 %v3585_v50  ;;  %v1096_v49 = vld [vmem:[%s4077_s28 + $0x1c20] sm:$0xff]  ;;  %v1098_v50 = vld [vmem:[%s4077_s28 + $0x1c30] sm:$0xff] }
 0x399   : > { %v3837_v0 = vpop.eup %3836  ;;  %v2476_v1 = vadd.f32 1.0, %v3835_v57  ;;  %v1160_v52 = vld [vmem:[%s4077_s28 + $0x1e20] sm:$0xff]  ;;  %v3901_v57 = vld [vmem:[%s5265_s0 + $0x8] sm:$0xff]  ;;  %v3603_v62 = vpack.c.bf16 %v1098_v50, %v1096_v49  ;;  %v1118_v49 = vld [vmem:[%s4077_s28 + $0x1cd0] sm:$0xff] }
 0x39a   : > { %v3839_v4 = vpop.eup %3838  ;;  %3840 = vrcp.f32 %v2474_v58  ;;  %v2475_v5 = vadd.f32 1.0, %v3837_v0  ;;  %v1165_v58 = vld [vmem:[%s4077_s28 + $0x1e48] sm:$0xff]  ;;  %v3667_v63 = vpack.c.bf16 %v1162_v53, %v1160_v52  ;;  %v3605_v0 = vpack.c.bf16 %v1103_v56, %v1101_v55  ;;  %v1180_v50 = vld [vmem:[%s4077_s28 + $0x1ec0] sm:$0xff]  ;;  %v1182_v52 = vld [vmem:[%s4077_s28 + $0x1ed0] sm:$0xff] }
 0x39b   : > { %3842 = vrcp.f32 %v2476_v1  ;;  %v2477_v7 = vadd.f32 1.0, %v3839_v4  ;;  %v3669_v1 = vpack.c.bf16 %v1167_v60, %v1165_v58  ;;  %v1164_v4 = vld [vmem:[%s4077_s28 + $0x1e40] sm:$0xff]  ;;  %v1121_v53 = vld [vmem:[%s4077_s28 + $0x1ce8] sm:$0xff]  ;;  %v1123_v55 = vld [vmem:[%s4077_s28 + $0x1cf8] sm:$0xff]  ;;  %v3687_v60 = vpack.c.bf16 %v1182_v52, %v1180_v50 }
 0x39c   : > { %3844 = vrcp.f32 %v2475_v5  ;;  %v1166_v5 = vld [vmem:[%s4077_s28 + $0x1e50] sm:$0xff]  ;;  %v1185_v56 = vld [vmem:[%s4077_s28 + $0x1ee8] sm:$0xff] }
 0x39d   : > { %3846 = vrcp.f32 %v2477_v7  ;;  %v1107_v7 = vld [vmem:[%s4077_s28 + $0x1c78] sm:$0xff]  ;;  %v3671_v11 = vpack.c.bf16 %v1166_v5, %v1164_v4  ;;  %v1125_v4 = vld [vmem:[%s4077_s28 + $0x1d08] sm:$0xff]  ;;  %v1202_v50 = vld [vmem:[%s4077_s28 + $0x1f70] sm:$0xff] }
 0x39e   : > { %3524 = vmatpush1.bf16.xpose.msra.mxu0 %v3523_v6  ;;  %v1105_v6 = vld [vmem:[%s4077_s28 + $0x1c68] sm:$0xff]  ;;  %v1127_v5 = vld [vmem:[%s4077_s28 + $0x1d18] sm:$0xff] }
 0x39f   : > { %3588 = vmatpush1.bf16.xpose.msra.mxu1 %v3587_v8  ;;  %3526 = vmatprep.subr.bf16.mxu0 %v3525_v9  ;;  %v1169_v8 = vld [vmem:[%s4077_s28 + $0x1e68] sm:$0xff]  ;;  %v1171_v9 = vld [vmem:[%s4077_s28 + $0x1e78] sm:$0xff]  ;;  %v3609_v12 = vpack.c.bf16 %v1107_v7, %v1105_v6 }
 0x3a0   : > { %3590 = vmatprep.subr.bf16.mxu1 %v3589_v10  ;;  %v3607_v10 = vpack.c.bf16 %v1102_v3, %v1100_v2  ;;  %v3673_v13 = vpack.c.bf16 %v1171_v9, %v1169_v8  ;;  %v1184_v2 = vld [vmem:[%s4077_s28 + $0x1ee0] sm:$0xff]  ;;  %v1186_v3 = vld [vmem:[%s4077_s28 + $0x1ef0] sm:$0xff]  ;;  %v1189_v6 = vld [vmem:[%s4077_s28 + $0x1f08] sm:$0xff] }
 0x3a1   : > { %v1191_v7 = vld [vmem:[%s4077_s28 + $0x1f18] sm:$0xff]  ;;  %v3691_v9 = vpack.c.bf16 %v1186_v3, %v1184_v2  ;;  %v1141_v52 = vld [vmem:[%s4077_s28 + $0x1d88] sm:$0xff] }
 0x3a4   : > { %v3841_v25 = vpop.eup %3840 }
 0x3a5   : > { %v3843_v27 = vpop.eup %3842  ;;  %2570 = vst [vmem:[%s4498_s8 + $0x80] sm:$0xff] %v3841_v25  ;;  %v3611_v25 = vpack.c.bf16 %v1106_v16, %v1104_v15  ;;  %v1188_v15 = vld [vmem:[%s4077_s28 + $0x1f00] sm:$0xff]  ;;  %v1190_v16 = vld [vmem:[%s4077_s28 + $0x1f10] sm:$0xff] }
 0x3a6   : > { %v3845_v28 = vpop.eup %3844  ;;  %2572 = vst [vmem:[%s4498_s8 + $0x90] sm:$0xff] %v3843_v27  ;;  %3528 = vmatpush1.bf16.xpose.msra.mxu0 %v3527_v21  ;;  %v1111_v21 = vld [vmem:[%s4077_s28 + $0x1c98] sm:$0xff] }
 0x3a7   : > { %v3847_v29 = vpop.eup %3846  ;;  %2571 = vst [vmem:[%s4498_s8 + $0x88] sm:$0xff] %v3845_v28  ;;  %3592 = vmatpush1.bf16.xpose.msra.mxu1 %v3591_v23  ;;  %3530 = vmatprep.subr.bf16.mxu0 %v3529_v24  ;;  %v1173_v23 = vld [vmem:[%s4077_s28 + $0x1e88] sm:$0xff]  ;;  %v1175_v24 = vld [vmem:[%s4077_s28 + $0x1e98] sm:$0xff]  ;;  %v3613_v27 = vpack.c.bf16 %v1111_v21, %v1109_v20 }
 0x3a8   : > { %2573 = vst [vmem:[%s4498_s8 + $0x98] sm:$0xff] %v3847_v29  ;;  %3594 = vmatprep.subr.bf16.mxu1 %v3593_v26  ;;  %v3675_v26 = vpack.c.bf16 %v1170_v18, %v1168_v17  ;;  %v3677_v28 = vpack.c.bf16 %v1175_v24, %v1173_v23  ;;  %v1108_v29 = vld [vmem:[%s4077_s28 + $0x1c80] sm:$0xff]  ;;  %v1129_v17 = vld [vmem:[%s4077_s28 + $0x1d28] sm:$0xff]  ;;  %v1131_v18 = vld [vmem:[%s4077_s28 + $0x1d38] sm:$0xff]  ;;  %v3695_v24 = vpack.c.bf16 %v1190_v16, %v1188_v15 }
 0x3a9   : > { %v3615_v35 = vpack.c.bf16 %v1110_v30, %v1108_v29  ;;  %v1193_v20 = vld [vmem:[%s4077_s28 + $0x1f28] sm:$0xff]  ;;  %v1195_v21 = vld [vmem:[%s4077_s28 + $0x1f38] sm:$0xff]  ;;  %v1192_v29 = vld [vmem:[%s4077_s28 + $0x1f20] sm:$0xff] }
 0x3aa   : > { %v1194_v30 = vld [vmem:[%s4077_s28 + $0x1f30] sm:$0xff]  ;;  %v1145_v15 = vld [vmem:[%s4077_s28 + $0x1da8] sm:$0xff]  ;;  %v1147_v16 = vld [vmem:[%s4077_s28 + $0x1db8] sm:$0xff] }
 0x3ae   : > { %3532 = vmatpush1.bf16.xpose.msra.mxu0 %v3531_v36  ;;  %v3679_v36 = vpack.c.bf16 %v1174_v32, %v1172_v31  ;;  %v1133_v31 = vld [vmem:[%s4077_s28 + $0x1d48] sm:$0xff]  ;;  %v1135_v32 = vld [vmem:[%s4077_s28 + $0x1d58] sm:$0xff] }
 0x3af   : > { %3596 = vmatpush1.bf16.xpose.msra.mxu1 %v3595_v19  ;;  %3598 = vmatprep.subr.bf16.mxu0 %v3597_v37  ;;  %v3617_v19 = vpack.c.bf16 %v1115_v51, %v1113_v33  ;;  %v3681_v37 = vpack.c.bf16 %v1179_v54, %v1177_v34  ;;  %v1197_v33 = vld [vmem:[%s4077_s28 + $0x1f48] sm:$0xff]  ;;  %v1199_v51 = vld [vmem:[%s4077_s28 + $0x1f58] sm:$0xff]  ;;  %v3699_v54 = vpack.c.bf16 %v1194_v30, %v1192_v29 }
 0x3b0   : > { %3662 = vmatprep.subr.bf16.mxu1 %v3661_v38  ;;  %v1112_v38 = vld [vmem:[%s4077_s28 + $0x1ca0] sm:$0xff] }
 0x3b1   : > { %v3619_v44 = vpack.c.bf16 %v1114_v39, %v1112_v38  ;;  %v1196_v38 = vld [vmem:[%s4077_s28 + $0x1f40] sm:$0xff]  ;;  %v1198_v39 = vld [vmem:[%s4077_s28 + $0x1f50] sm:$0xff] }
 0x3b5   : > { %2143 = vmatmul.mubr.f32.vlgmr.msra.gmra.mrb[12].mxu0 %v5103_v48 }
 0x3b6   : > { %2214 = vmatmul.mubr.f32.vlgmr.msra.gmra.mrb[12].mxu1 %v5103_v48  ;;  %3600 = vmatpush1.bf16.xpose.msra.mxu0 %v3599_v45  ;;  %v3683_v45 = vpack.c.bf16 %v1178_v59, %v1176_v40  ;;  %v1137_v40 = vld [vmem:[%s4077_s28 + $0x1d68] sm:$0xff]  ;;  %v1139_v59 = vld [vmem:[%s4077_s28 + $0x1d78] sm:$0xff] }
 0x3b7   : > { %3664 = vmatpush1.bf16.xpose.msra.mxu1 %v3663_v14  ;;  %3602 = vmatprep.subr.bf16.mxu0 %v3601_v46  ;;  %v3621_v14 = vpack.c.bf16 %v1119_v42, %v1117_v41  ;;  %v3685_v46 = vpack.c.bf16 %v1183_v43, %v1181_v61  ;;  %v1201_v41 = vld [vmem:[%s4077_s28 + $0x1f68] sm:$0xff]  ;;  %v1203_v42 = vld [vmem:[%s4077_s28 + $0x1f78] sm:$0xff]  ;;  %v3703_v43 = vpack.c.bf16 %v1198_v39, %v1196_v38 }
 0x3b8   : > { %3666 = vmatprep.subr.bf16.mxu1 %v3665_v47  ;;  %2284 = vmatprep.mubr.f32.mxu0 %v3901_v57  ;;  %v1116_v47 = vld [vmem:[%s4077_s28 + $0x1cc0] sm:$0xff] }
 0x3b9   : > { %2355 = vmatprep.mubr.f32.mxu1 %v3901_v57  ;;  %v1187_v57 = vld [vmem:[%s4077_s28 + $0x1ef8] sm:$0xff]  ;;  %v3623_v58 = vpack.c.bf16 %v1118_v49, %v1116_v47  ;;  %v1200_v47 = vld [vmem:[%s4077_s28 + $0x1f60] sm:$0xff] }
 0x3be   : > { %3604 = vmatpush1.bf16.xpose.msra.mxu0 %v3603_v62  ;;  %v3625_v62 = vpack.c.bf16 %v1123_v55, %v1121_v53  ;;  %v1143_v53 = vld [vmem:[%s4077_s28 + $0x1d98] sm:$0xff] }
 0x3bf   : > { %3668 = vmatpush1.bf16.xpose.msra.mxu1 %v3667_v63  ;;  %3606 = vmatprep.subr.bf16.mxu0 %v3605_v0  ;;  %v3689_v63 = vpack.c.bf16 %v1187_v57, %v1185_v56  ;;  %v1120_v0 = vld [vmem:[%s4077_s28 + $0x1ce0] sm:$0xff] }
 0x3c0   : > { %3670 = vmatprep.subr.bf16.mxu1 %v3669_v1  ;;  %v1122_v1 = vld [vmem:[%s4077_s28 + $0x1cf0] sm:$0xff] }
 0x3c1   : > { %v3627_v8 = vpack.c.bf16 %v1122_v1, %v1120_v0 }
 0x3c6   : > { %3608 = vmatpush1.bf16.xpose.msra.mxu0 %v3607_v10  ;;  %v3629_v10 = vpack.c.bf16 %v1127_v5, %v1125_v4  ;;  %v3707_v4 = vpack.c.bf16 %v1202_v50, %v1200_v47  ;;  %v3645_v5 = vpack.c.bf16 %v1143_v53, %v1141_v52 }
 0x3c7   : > { %3672 = vmatpush1.bf16.xpose.msra.mxu1 %v3671_v11  ;;  %3610 = vmatprep.subr.bf16.mxu0 %v3609_v12  ;;  %v3693_v11 = vpack.c.bf16 %v1191_v7, %v1189_v6  ;;  %v1124_v12 = vld [vmem:[%s4077_s28 + $0x1d00] sm:$0xff] }
 0x3c8   : > { %3674 = vmatprep.subr.bf16.mxu1 %v3673_v13  ;;  %v1126_v13 = vld [vmem:[%s4077_s28 + $0x1d10] sm:$0xff] }
 0x3c9   : > { %v3631_v23 = vpack.c.bf16 %v1126_v13, %v1124_v12  ;;  %v1204_v12 = vld [vmem:[%s4077_s28 + $0x1f80] sm:$0xff]  ;;  %v1206_v13 = vld [vmem:[%s4077_s28 + $0x1f90] sm:$0xff] }
 0x3ce   : > { %3612 = vmatpush1.bf16.xpose.msra.mxu0 %v3611_v25  ;;  %v3633_v25 = vpack.c.bf16 %v1131_v18, %v1129_v17  ;;  %v1209_v17 = vld [vmem:[%s4077_s28 + $0x1fa8] sm:$0xff]  ;;  %v1211_v18 = vld [vmem:[%s4077_s28 + $0x1fb8] sm:$0xff] }
 0x3cf   : > { %3676 = vmatpush1.bf16.xpose.msra.mxu1 %v3675_v26  ;;  %3614 = vmatprep.subr.bf16.mxu0 %v3613_v27  ;;  %v3697_v26 = vpack.c.bf16 %v1195_v21, %v1193_v20  ;;  %v1128_v27 = vld [vmem:[%s4077_s28 + $0x1d20] sm:$0xff]  ;;  %v3711_v21 = vpack.c.bf16 %v1206_v13, %v1204_v12 }
 0x3d0   : > { %3678 = vmatprep.subr.bf16.mxu1 %v3677_v28  ;;  %v1130_v28 = vld [vmem:[%s4077_s28 + $0x1d30] sm:$0xff] }
 0x3d1   : > { %v3635_v34 = vpack.c.bf16 %v1130_v28, %v1128_v27  ;;  %v1146_v27 = vld [vmem:[%s4077_s28 + $0x1db0] sm:$0xff]  ;;  %v1208_v28 = vld [vmem:[%s4077_s28 + $0x1fa0] sm:$0xff] }
 0x3d6   : > { %3616 = vmatpush1.bf16.xpose.msra.mxu0 %v3615_v35  ;;  %v3637_v35 = vpack.c.bf16 %v1135_v32, %v1133_v31  ;;  %v1210_v31 = vld [vmem:[%s4077_s28 + $0x1fb0] sm:$0xff]  ;;  %v1149_v32 = vld [vmem:[%s4077_s28 + $0x1dc8] sm:$0xff] }
 0x3d7   : > { %3680 = vmatpush1.bf16.xpose.msra.mxu1 %v3679_v36  ;;  %3618 = vmatprep.subr.bf16.mxu0 %v3617_v19  ;;  %v3701_v36 = vpack.c.bf16 %v1199_v51, %v1197_v33  ;;  %v1132_v19 = vld [vmem:[%s4077_s28 + $0x1d40] sm:$0xff]  ;;  %v1151_v33 = vld [vmem:[%s4077_s28 + $0x1dd8] sm:$0xff]  ;;  %v3715_v39 = vpack.c.bf16 %v1210_v31, %v1208_v28 }
 0x3d8   : > { %3682 = vmatprep.subr.bf16.mxu1 %v3681_v37  ;;  %v1134_v37 = vld [vmem:[%s4077_s28 + $0x1d50] sm:$0xff] }
 0x3d9   : > { %v3639_v61 = vpack.c.bf16 %v1134_v37, %v1132_v19 }
 0x3de   : > { %3620 = vmatpush1.bf16.xpose.msra.mxu0 %v3619_v44  ;;  %v3641_v44 = vpack.c.bf16 %v1139_v59, %v1137_v40  ;;  %v3653_v40 = vpack.c.bf16 %v1151_v33, %v1149_v32 }
 0x3df   : > { %3684 = vmatpush1.bf16.xpose.msra.mxu1 %v3683_v45  ;;  %3622 = vmatprep.subr.bf16.mxu0 %v3621_v14  ;;  %v3705_v45 = vpack.c.bf16 %v1203_v42, %v1201_v41  ;;  %v1136_v14 = vld [vmem:[%s4077_s28 + $0x1d60] sm:$0xff]  ;;  %v1150_v42 = vld [vmem:[%s4077_s28 + $0x1dd0] sm:$0xff] }
 0x3e0   : > { %3686 = vmatprep.subr.bf16.mxu1 %v3685_v46  ;;  %v1138_v46 = vld [vmem:[%s4077_s28 + $0x1d70] sm:$0xff]  ;;  %v1148_v41 = vld [vmem:[%s4077_s28 + $0x1dc0] sm:$0xff] }
 0x3e1   : > { %v3643_v1 = vpack.c.bf16 %v1138_v46, %v1136_v14  ;;  %v1217_v14 = vld [vmem:[%s4077_s28 + $0x1fe8] sm:$0xff]  ;;  %v1219_v46 = vld [vmem:[%s4077_s28 + $0x1ff8] sm:$0xff]  ;;  %v3655_v47 = vpack.c.bf16 %v1150_v42, %v1148_v41 }
 0x3e2   : > { %v3721_v53 = vpack.c.bf16 %v1219_v46, %v1217_v14 }
 0x3e6   : > { %3624 = vmatpush1.bf16.xpose.msra.mxu0 %v3623_v58  ;;  %v1205_v58 = vld [vmem:[%s4077_s28 + $0x1f88] sm:$0xff] }
 0x3e7   : > { %3688 = vmatpush1.bf16.xpose.msra.mxu1 %v3687_v60  ;;  %3626 = vmatprep.subr.bf16.mxu0 %v3625_v62  ;;  %v1207_v60 = vld [vmem:[%s4077_s28 + $0x1f98] sm:$0xff] }
 0x3e8   : > { %3690 = vmatprep.subr.bf16.mxu1 %v3689_v63 }
 0x3ee   : > { %3628 = vmatpush1.bf16.xpose.msra.mxu0 %v3627_v8  ;;  %v3709_v8 = vpack.c.bf16 %v1207_v60, %v1205_v58  ;;  %v1152_v58 = vld [vmem:[%s4077_s28 + $0x1de0] sm:$0xff]  ;;  %v1154_v60 = vld [vmem:[%s4077_s28 + $0x1df0] sm:$0xff] }
 0x3ef   : > { %3692 = vmatpush1.bf16.xpose.msra.mxu1 %v3691_v9  ;;  %3630 = vmatprep.subr.bf16.mxu0 %v3629_v10  ;;  %v1140_v10 = vld [vmem:[%s4077_s28 + $0x1d80] sm:$0xff] }
 0x3f0   : > { %3694 = vmatprep.subr.bf16.mxu1 %v3693_v11  ;;  %v1142_v11 = vld [vmem:[%s4077_s28 + $0x1d90] sm:$0xff] }
 0x3f1   : > { %v3647_v20 = vpack.c.bf16 %v1142_v11, %v1140_v10 }
 0x3f6   : > { %3632 = vmatpush1.bf16.xpose.msra.mxu0 %v3631_v23  ;;  %v3649_v23 = vpack.c.bf16 %v1147_v16, %v1145_v15 }
 0x3f7   : > { %3696 = vmatpush1.bf16.xpose.msra.mxu1 %v3695_v24  ;;  %3634 = vmatprep.subr.bf16.mxu0 %v3633_v25  ;;  %v3713_v24 = vpack.c.bf16 %v1211_v18, %v1209_v17 }
 0x3f8   : > { %3698 = vmatprep.subr.bf16.mxu1 %v3697_v26  ;;  %v1144_v26 = vld [vmem:[%s4077_s28 + $0x1da0] sm:$0xff] }
 0x3f9   : > { %v3651_v37 = vpack.c.bf16 %v1146_v27, %v1144_v26 }
 0x3fe   : > { %3636 = vmatpush1.bf16.xpose.msra.mxu0 %v3635_v34 }
 0x3ff   : > { %3700 = vmatpush1.bf16.xpose.msra.mxu1 %v3699_v54  ;;  %3638 = vmatprep.subr.bf16.mxu0 %v3637_v35  ;;  %v1213_v54 = vld [vmem:[%s4077_s28 + $0x1fc8] sm:$0xff]  ;;  %v1215_v35 = vld [vmem:[%s4077_s28 + $0x1fd8] sm:$0xff] }
 0x400   : > { %3702 = vmatprep.subr.bf16.mxu1 %v3701_v36  ;;  %v3717_v59 = vpack.c.bf16 %v1215_v35, %v1213_v54 }
 0x406   : > { %3640 = vmatpush1.bf16.xpose.msra.mxu0 %v3639_v61  ;;  %v1212_v61 = vld [vmem:[%s4077_s28 + $0x1fc0] sm:$0xff] }
 0x407   : > { %3704 = vmatpush1.bf16.xpose.msra.mxu1 %v3703_v43  ;;  %3642 = vmatprep.subr.bf16.mxu0 %v3641_v44  ;;  %v1214_v43 = vld [vmem:[%s4077_s28 + $0x1fd0] sm:$0xff]  ;;  %v1153_v44 = vld [vmem:[%s4077_s28 + $0x1de8] sm:$0xff] }
 0x408   : > { %v2002_v49 = vpop.f32.mrb[10].mxu0  ;;  %3706 = vmatprep.subr.bf16.mxu1 %v3705_v45  ;;  %v1155_v45 = vld [vmem:[%s4077_s28 + $0x1df8] sm:$0xff] }
 0x409   : > { %v2003_v55 = vadd.f32 %v2002_v49, %v4454_v22  ;;  %v2073_v56 = vpop.f32.mrb[10].mxu1  ;;  %v2004_v57 = vpop.f32.mrb[11].mxu0  ;;  %v3719_v49 = vpack.c.bf16 %v1214_v43, %v1212_v61  ;;  %v3657_v50 = vpack.c.bf16 %v1155_v45, %v1153_v44 }
 0x40a   : > { %v2074_v62 = vadd.f32 %v2073_v56, %v4454_v22  ;;  %v2005_v63 = vadd.f32 %v2004_v57, %v4454_v22  ;;  %v2075_v0 = vpop.f32.mrb[11].mxu1 }
 0x40b   : > { %v2685_v2 = vmul.f32 -1.442695, %v2003_v55  ;;  %v2076_v3 = vadd.f32 %v2075_v0, %v4454_v22  ;;  %v3659_v0 = vpack.c.bf16 %v1154_v60, %v1152_v58 }
 0x40c   : > { %v2687_v6 = vmul.f32 -1.442695, %v2074_v62  ;;  %v2686_v7 = vmul.f32 -1.442695, %v2005_v63  ;;  %v1216_v62 = vld [vmem:[%s4077_s28 + $0x1fe0] sm:$0xff]  ;;  %v1218_v63 = vld [vmem:[%s4077_s28 + $0x1ff0] sm:$0xff] }
 0x40d   : > { %3848 = vpow2.f32 %v2685_v2  ;;  %v2688_v9 = vmul.f32 -1.442695, %v2076_v3 }
 0x40e   : > { %3850 = vpow2.f32 %v2687_v6  ;;  %3644 = vmatpush1.bf16.xpose.msra.mxu0 %v3643_v1  ;;  %v3723_v1 = vpack.c.bf16 %v1218_v63, %v1216_v62 }
 0x40f   : > { %3852 = vpow2.f32 %v2686_v7  ;;  %3708 = vmatpush1.bf16.xpose.msra.mxu1 %v3707_v4  ;;  %3646 = vmatprep.subr.bf16.mxu0 %v3645_v5 }
 0x410   : > { %3854 = vpow2.f32 %v2688_v9  ;;  %3710 = vmatprep.subr.bf16.mxu1 %v3709_v8 }
 0x416   : > { %3648 = vmatpush1.bf16.xpose.msra.mxu0 %v3647_v20 }
 0x417   : > { %v3849_v25 = vpop.eup %3848  ;;  %3712 = vmatpush1.bf16.xpose.msra.mxu1 %v3711_v21  ;;  %3650 = vmatprep.subr.bf16.mxu0 %v3649_v23 }
 0x418   : > { %v3851_v29 = vpop.eup %3850  ;;  %v2478_v30 = vadd.f32 1.0, %v3849_v25  ;;  %3714 = vmatprep.subr.bf16.mxu1 %v3713_v24 }
 0x419   : > { %v3853_v51 = vpop.eup %3852  ;;  %v2480_v34 = vadd.f32 1.0, %v3851_v29 }
 0x41a   : > { %v3855_v36 = vpop.eup %3854  ;;  %3856 = vrcp.f32 %v2478_v30  ;;  %v2479_v19 = vadd.f32 1.0, %v3853_v51 }
 0x41b   : > { %3858 = vrcp.f32 %v2480_v34  ;;  %v2481_v38 = vadd.f32 1.0, %v3855_v36 }
 0x41c   : > { %3860 = vrcp.f32 %v2479_v19 }
 0x41d   : > { %3862 = vrcp.f32 %v2481_v38 }
 0x41e   : > { %3652 = vmatpush1.bf16.xpose.msra.mxu0 %v3651_v37 }
 0x41f   : > { %3716 = vmatpush1.bf16.xpose.msra.mxu1 %v3715_v39  ;;  %3654 = vmatprep.subr.bf16.mxu0 %v3653_v40 }
 0x420   : > { %3718 = vmatprep.subr.bf16.mxu1 %v3717_v59 }
 0x424   : > { %v3857_v52 = vpop.eup %3856 }
 0x425   : > { %v3859_v55 = vpop.eup %3858  ;;  %2574 = vst [vmem:[%s4498_s8 + $0xa0] sm:$0xff] %v3857_v52 }
 0x426   : > { %v3861_v56 = vpop.eup %3860  ;;  %2576 = vst [vmem:[%s4498_s8 + $0xb0] sm:$0xff] %v3859_v55  ;;  %3656 = vmatpush1.bf16.xpose.msra.mxu0 %v3655_v47 }
 0x427   : > { %v3863_v57 = vpop.eup %3862  ;;  %2575 = vst [vmem:[%s4498_s8 + $0xa8] sm:$0xff] %v3861_v56  ;;  %3720 = vmatpush1.bf16.xpose.msra.mxu1 %v3719_v49  ;;  %3658 = vmatprep.subr.bf16.mxu0 %v3657_v50 }
 0x428   : > { %2577 = vst [vmem:[%s4498_s8 + $0xb8] sm:$0xff] %v3863_v57  ;;  %3722 = vmatprep.subr.bf16.mxu1 %v3721_v53 }
 0x42e   : > { %3660 = vmatpush1.bf16.xpose.msra.mxu0 %v3659_v0 }
 0x42f   : > { %3724 = vmatpush1.bf16.xpose.msra.mxu1 %v3723_v1 }
 0x435   : > { %2285 = vmatmul.mubr.f32.vlgmr.msra.gmra.mrb[14].mxu0 %v5103_v48 }
 0x436   : > { %2356 = vmatmul.mubr.f32.vlgmr.msra.gmra.mrb[14].mxu1 %v5103_v48 }
 0x488   : > { %v2144_v2 = vpop.f32.mrb[12].mxu0 }
 0x489   : > { %v2145_v3 = vadd.f32 %v2144_v2, %v4454_v22  ;;  %v2215_v4 = vpop.f32.mrb[12].mxu1  ;;  %v2146_v5 = vpop.f32.mrb[13].mxu0 }
 0x48a   : > { %v2216_v6 = vadd.f32 %v2215_v4, %v4454_v22  ;;  %v2147_v7 = vadd.f32 %v2146_v5, %v4454_v22  ;;  %v2217_v8 = vpop.f32.mrb[13].mxu1 }
 0x48b   : > { %v2689_v9 = vmul.f32 -1.442695, %v2145_v3  ;;  %v2218_v10 = vadd.f32 %v2217_v8, %v4454_v22 }
 0x48c   : > { %v2691_v11 = vmul.f32 -1.442695, %v2216_v6  ;;  %v2690_v12 = vmul.f32 -1.442695, %v2147_v7 }
 0x48d   : > { %3864 = vpow2.f32 %v2689_v9  ;;  %v2692_v13 = vmul.f32 -1.442695, %v2218_v10 }
 0x48e   : > { %3866 = vpow2.f32 %v2691_v11 }
 0x48f   : > { %3868 = vpow2.f32 %v2690_v12 }
 0x490   : > { %3870 = vpow2.f32 %v2692_v13 }
 0x497   : > { %v3865_v48 = vpop.eup %3864 }
 0x498   : > { %v3867_v15 = vpop.eup %3866  ;;  %v2482_v16 = vadd.f32 1.0, %v3865_v48 }
 0x499   : > { %v3869_v17 = vpop.eup %3868  ;;  %v2484_v18 = vadd.f32 1.0, %v3867_v15 }
 0x49a   : > { %v3871_v20 = vpop.eup %3870  ;;  %3872 = vrcp.f32 %v2482_v16  ;;  %v2483_v21 = vadd.f32 1.0, %v3869_v17 }
 0x49b   : > { %3874 = vrcp.f32 %v2484_v18  ;;  %v2485_v23 = vadd.f32 1.0, %v3871_v20 }
 0x49c   : > { %3876 = vrcp.f32 %v2483_v21 }
 0x49d   : > { %3878 = vrcp.f32 %v2485_v23 }
 0x4a4   : > { %v3873_v24 = vpop.eup %3872 }
 0x4a5   : > { %v3875_v25 = vpop.eup %3874  ;;  %2578 = vst [vmem:[%s4498_s8 + $0xc0] sm:$0xff] %v3873_v24 }
 0x4a6   : > { %v3877_v26 = vpop.eup %3876  ;;  %2580 = vst [vmem:[%s4498_s8 + $0xd0] sm:$0xff] %v3875_v25 }
 0x4a7   : > { %v3879_v27 = vpop.eup %3878  ;;  %2579 = vst [vmem:[%s4498_s8 + $0xc8] sm:$0xff] %v3877_v26 }
 0x4a8   : > { %2581 = vst [vmem:[%s4498_s8 + $0xd8] sm:$0xff] %v3879_v27 }
 0x508   : > { %v2286_v28 = vpop.f32.mrb[14].mxu0 }
 0x509   : > { %v2287_v29 = vadd.f32 %v2286_v28, %v4454_v22  ;;  %v2357_v30 = vpop.f32.mrb[14].mxu1  ;;  %v2288_v31 = vpop.f32.mrb[15].mxu0 }
 0x50a   : > { %v2358_v32 = vadd.f32 %v2357_v30, %v4454_v22  ;;  %v2289_v33 = vadd.f32 %v2288_v31, %v4454_v22  ;;  %v2359_v51 = vpop.f32.mrb[15].mxu1 }
 0x50b   : > { %v2693_v34 = vmul.f32 -1.442695, %v2287_v29  ;;  %v2360_v54 = vadd.f32 %v2359_v51, %v4454_v22 }
 0x50c   : > { %v2695_v35 = vmul.f32 -1.442695, %v2358_v32  ;;  %v2694_v36 = vmul.f32 -1.442695, %v2289_v33 }
 0x50d   : > { %3880 = vpow2.f32 %v2693_v34  ;;  %v2696_v19 = vmul.f32 -1.442695, %v2360_v54 }
 0x50e   : > { %3882 = vpow2.f32 %v2695_v35 }
 0x50f   : > { %3884 = vpow2.f32 %v2694_v36 }
 0x510   : > { %3886 = vpow2.f32 %v2696_v19 }
 0x517   : > { %v3881_v37 = vpop.eup %3880 }
 0x518   : > { %v3883_v38 = vpop.eup %3882  ;;  %v2486_v39 = vadd.f32 1.0, %v3881_v37 }
 0x519   : > { %v3885_v40 = vpop.eup %3884  ;;  %v2488_v59 = vadd.f32 1.0, %v3883_v38 }
 0x51a   : > { %v3887_v41 = vpop.eup %3886  ;;  %3888 = vrcp.f32 %v2486_v39  ;;  %v2487_v42 = vadd.f32 1.0, %v3885_v40 }
 0x51b   : > { %3890 = vrcp.f32 %v2488_v59  ;;  %v2489_v22 = vadd.f32 1.0, %v3887_v41 }
 0x51c   : > { %3892 = vrcp.f32 %v2487_v42 }
 0x51d   : > { %3894 = vrcp.f32 %v2489_v22 }
 0x524   : > { %v3889_v61 = vpop.eup %3888 }
 0x525   : > { %v3891_v43 = vpop.eup %3890  ;;  %2582 = vst [vmem:[%s4498_s8 + $0xe0] sm:$0xff] %v3889_v61 }
 0x526   : > { %v3893_v44 = vpop.eup %3892  ;;  %2584 = vst [vmem:[%s4498_s8 + $0xf0] sm:$0xff] %v3891_v43 }
 0x527   : > { %v3895_v45 = vpop.eup %3894  ;;  %2583 = vst [vmem:[%s4498_s8 + $0xe8] sm:$0xff] %v3893_v44 }
 0x528   : > { %2585 = vst [vmem:[%s4498_s8 + $0xf8] sm:$0xff] %v3895_v45 }
 0x529 PF: > { %p13_p8 = scmp.ge.s32.totalorder %s4012_s17, 5   ;;  %s5272_s12 = smov %s3958_s13 }
 0x52a   : > { %s5273_s13 = smov %s3962_s14  ;;  %s5274_s14 = smov %s4022_s20 }
 0x52b   : > { %s5275_s15 = smov %s4012_s17  ;;  %15 = sbr.rel (!%p13_p8) target bundleno = 3 (0x3), region = 72 }
 0x532   :  { %2608 = vsyncpa [#allocation3], 1 }
 0x533   :  { %2610 = vsyncpa [#allocation3 + $0x1], 1 }

</bundles_post_ra>
